<compile_context>
chip_gen: v7x
topology: tpu7x:2x2x1
jax: 0.10.0
libtpu: 0.0.40
codegen_flags: <defaults>
</compile_context>

<pallas_src>
import functools
import math

import jax
import jax.numpy as jnp
from jax import lax
from jax.experimental import pallas as pl
from jax.experimental.pallas import tpu as pltpu

F32 = jnp.float32
BF16 = jnp.bfloat16


def _layernorm(h, w, b, eps=1e-5):
    mu = jnp.mean(h, axis=-1, keepdims=True)
    var = jnp.mean((h - mu) ** 2, axis=-1, keepdims=True)
    return (h - mu) * lax.rsqrt(var + eps) * w + b


def block_kernel(n_heads, q_tile, n_tiles, n_ck,
                 x_ref, ln1w_ref, ln1b_ref,
                 la_ref, lb_ref, lam_ref, wqkv_ref,
                 pw_ref, pb_ref,
                 cos_ref, sin_ref,
                 ln2w_ref, ln2b_ref,
                 rw_ref, kw_ref,
                 wr_ref, wkc_ref, wvc_ref,
                 o_ref,
                 q_s, kt_s, v_s, attn_s, prev1_s, prev2_s):
    D = x_ref.shape[2]
    hd = D // n_heads
    half = hd // 2
    scale = 1.0 / math.sqrt(hd)
    qt = q_tile

    # Hoisted masks (iota/broadcast are not CSE'd by JAX).  (qt,1) not (qt,D).
    first_row = lax.broadcasted_iota(jnp.int32, (qt, 1), 0) == 0
    tri_mask = (lax.broadcasted_iota(jnp.int32, (qt, qt), 1)
                <= lax.broadcasted_iota(jnp.int32, (qt, qt), 0))   # col <= row

    ln1w = ln1w_ref[...]; ln1b = ln1b_ref[...]
    ln2w = ln2w_ref[...]; ln2b = ln2b_ref[...]
    rw = rw_ref[...]; kw = kw_ref[...]
    pb = pb_ref[...]

    # Timeshift carries: shifted[t] = h[t-1], shifted[0] = 0 (ZeroPad2d).
    prev1_s[...] = jnp.zeros_like(prev1_s)
    prev2_s[...] = jnp.zeros_like(prev2_s)

    # ---------------- Phase A: Q (rope'd, pre-scaled), K^T (rope'd), V --------
    @pl.loop(0, n_tiles)
    def _phase_a(i):
        qs = pl.multiple_of(i * qt, qt)
        xt = x_ref[0, pl.ds(qs, qt), :]                     # (qt, D) f32
        h1 = _layernorm(xt, ln1w, ln1b)
        shifted = jnp.where(first_row, prev1_s[...],
                            pltpu.roll(h1, shift=1, axis=0))
        prev1_s[...] = h1[qt - 1:qt, :]                     # carry to next tile
        dxx = shifted - h1
        h1_16 = h1.astype(BF16)

        # Fused LoRA: one (qt,D)x(D,3L) matmul + one block-diagonal (3L,3D).
        t_all = jnp.tanh(jnp.dot(h1_16, la_ref[...], preferred_element_type=F32))
        lora_all = lam_ref[...] + jnp.dot(t_all.astype(BF16), lb_ref[...],
                                          preferred_element_type=F32)  # (qt,3D)

        m_q = (h1 + dxx * lora_all[:, 0 * D:1 * D]).astype(BF16)
        m_k = (h1 + dxx * lora_all[:, 1 * D:2 * D]).astype(BF16)
        m_v = (h1 + dxx * lora_all[:, 2 * D:3 * D]).astype(BF16)
        # Pre-scale Q by 1/sqrt(hd) here (RoPE is linear), saves per-chunk mul.
        q = jnp.dot(m_q, wqkv_ref[0], preferred_element_type=F32) * scale
        k = jnp.dot(m_k, wqkv_ref[1], preferred_element_type=F32)
        v = jnp.dot(m_v, wqkv_ref[2], preferred_element_type=F32)

        cos_t = cos_ref[pl.ds(qs, qt), :]                   # (qt, hd)
        sin_t = sin_ref[pl.ds(qs, qt), :]
        # Static head loop (hd is lane-aligned); LLO interleaves the chains.
        for h in range(n_heads):
            hb = h * hd
            slot = h * n_tiles + i
            qh = q[:, hb:hb + hd]
            kh = k[:, hb:hb + hd]
            qh = qh * cos_t + pltpu.roll(qh, shift=half, axis=1) * sin_t
            kh = kh * cos_t + pltpu.roll(kh, shift=half, axis=1) * sin_t
            q_s[slot] = qh.astype(BF16)
            kt_s[slot] = kh.T.astype(BF16)                  # K transpose hoisted
            v_s[slot] = v[:, hb:hb + hd].astype(BF16)

    # ---------------- Phase B: causal flash attention + proj + channel mix ----
    # TODO(synk): attention dropout (dropout_p) omitted — deterministic p=0 path.
    @pl.loop(0, n_tiles)
    def _phase_b(i):
        qs = pl.multiple_of(i * qt, qt)

        for h in range(n_heads):
            hoff = h * n_tiles
            qh = q_s[hoff + i]                              # (qt, hd) bf16
            m0 = jnp.full((qt, 1), -1e30, F32)
            l0 = jnp.zeros((qt, 1), F32)
            a0 = jnp.zeros((qt, hd), F32)

            # Fully-past KV chunks: causal-skip of future chunks, no mask here.
            def past_chunk(c, carry):
                m_i, l_i, acc = carry
                s = jnp.dot(qh, kt_s[hoff + c], preferred_element_type=F32)
                m_new = jnp.maximum(m_i, jnp.max(s, axis=-1, keepdims=True))
                alpha = jnp.exp(m_i - m_new)
                p = jnp.exp(s - m_new)
                l_new = alpha * l_i + jnp.sum(p, axis=-1, keepdims=True)
                acc_new = alpha * acc + jnp.dot(p.astype(BF16), v_s[hoff + c],
                                                preferred_element_type=F32)
                return m_new, l_new, acc_new

            m_i, l_i, acc = lax.fori_loop(0, i, past_chunk, (m0, l0, a0))

            # Diagonal chunk (c == i): the only place a causal mask is needed.
            s = jnp.dot(qh, kt_s[hoff + i], preferred_element_type=F32)
            s = jnp.where(tri_mask, s, -1e30)
            m_new = jnp.maximum(m_i, jnp.max(s, axis=-1, keepdims=True))
            alpha = jnp.exp(m_i - m_new)
            p = jnp.exp(s - m_new)
            l_i = alpha * l_i + jnp.sum(p, axis=-1, keepdims=True)
            acc = alpha * acc + jnp.dot(p.astype(BF16), v_s[hoff + i],
                                        preferred_element_type=F32)
            attn_s[:, h * hd:(h + 1) * hd] = (
                acc * pl.reciprocal(l_i, approx=True)).astype(BF16)

        y = jnp.dot(attn_s[...], pw_ref[...], preferred_element_type=F32) + pb
        xt = x_ref[0, pl.ds(qs, qt), :]
        x2 = xt + y

        # channel mixing (RWKV style)
        h2 = _layernorm(x2, ln2w, ln2b)
        shifted = jnp.where(first_row, prev2_s[...],
                            pltpu.roll(h2, shift=1, axis=0))
        prev2_s[...] = h2[qt - 1:qt, :]
        d2 = shifted - h2
        r_in = (h2 + d2 * rw).astype(BF16)
        k_in = (h2 + d2 * kw).astype(BF16)
        r = jnp.dot(r_in, wr_ref[...], preferred_element_type=F32)

        if n_ck == 1:
            kk = jnp.maximum(jnp.dot(k_in, wkc_ref[0],
                                     preferred_element_type=F32), 0.0) ** 2
            vv = jnp.dot(kk.astype(BF16), wvc_ref[0], preferred_element_type=F32)
        else:
            def cmix_chunk(c, vv):
                kk = jnp.dot(k_in, wkc_ref[c], preferred_element_type=F32)
                kk = jnp.maximum(kk, 0.0) ** 2
                return vv + jnp.dot(kk.astype(BF16), wvc_ref[c],
                                    preferred_element_type=F32)
            vv = lax.fori_loop(0, n_ck, cmix_chunk,
                               jnp.zeros((qt, D), F32), unroll=2)

        # Exact sigmoid (gate error from approx reciprocal compounds per block).
        sig = 1.0 / (1.0 + jnp.exp(-r))
        o_ref[0, pl.ds(qs, qt), :] = x2 + sig * vv


def _pick_tile(n, candidates):
    for c in candidates:
        if n % c == 0:
            return c
    return n


def _vmem_limit_bytes():
    # Per-generation scoped-VMEM budget: v5e/v6e (128 MiB phys) -> ~100 MiB,
    # v7x (64 MiB phys) -> stay <= ~44 MiB.  Narrow guard: only the hardware
    # query is wrapped; the pallas_call itself is never retried/swallowed.
    try:
        phys = int(getattr(pltpu.get_tpu_info(), "vmem_capacity_bytes",
                           128 * 1024 * 1024))
    except Exception:
        phys = 128 * 1024 * 1024
    if phys >= 128 * 1024 * 1024:
        return 100 * 1024 * 1024
    return min(44 * 1024 * 1024, int(phys * 7 // 10))


def prepare_block_params(p, n_heads):
    """One-time (load-time) weight prep: concat/stack/bf16 casts, rotate-half
    RoPE tables, channel-mix weights reshaped into hidden chunks."""
    D = p["wq"].shape[0]
    L = p["q_la"].shape[1]
    la = jnp.concatenate([p["q_la"], p["k_la"], p["v_la"]], axis=1).astype(BF16)  # (D,3L)
    Z = jnp.zeros((L, D), F32)
    lb = jnp.concatenate([
        jnp.concatenate([p["q_lb"], Z, Z], axis=1),
        jnp.concatenate([Z, p["k_lb"], Z], axis=1),
        jnp.concatenate([Z, Z, p["v_lb"]], axis=1)], axis=0).astype(BF16)         # (3L,3D)
    lam = jnp.concatenate([p["q_ll"], p["k_ll"], p["v_ll"]], axis=1)              # (1,3D)
    wqkv = jnp.stack([p["wq"], p["wk"], p["wv"]], axis=0).astype(BF16)            # (3,D,D)
    # full-width rotate-half RoPE tables (first half of sin negated)
    cosf = jnp.concatenate([p["cos"], p["cos"]], axis=1)                          # (T,hd)
    sinf = jnp.concatenate([-p["sin"], p["sin"]], axis=1)                         # (T,hd)
    hidden = p["wkc"].shape[1]
    ck = _pick_tile(hidden, (2048, 1024, 512, 256, 128))
    n_ck = hidden // ck
    wkc3 = p["wkc"].reshape(D, n_ck, ck).transpose(1, 0, 2).astype(BF16)          # (n_ck,D,ck)
    wvc3 = p["wvc"].reshape(n_ck, ck, D).astype(BF16)                             # (n_ck,ck,D)

    ordered = [p["ln1_w"], p["ln1_b"], la, lb, lam, wqkv,
               p["proj_w"].astype(BF16), p["proj_b"], cosf, sinf,
               p["ln2_w"], p["ln2_b"], p["r_weight"], p["k_weight"],
               p["wr"].astype(BF16), wkc3, wvc3]
    return ordered, n_ck


def block_forward(x, ordered, n_ck, n_heads):
    B, T, D = x.shape
    hd = D // n_heads
    q_tile = _pick_tile(T, (512, 256, 128, 64, 32, 16, 8))
    n_tiles = T // q_tile

    kernel = functools.partial(block_kernel, n_heads, q_tile, n_tiles, n_ck)

    L3 = ordered[2].shape[1]  # 3*lora_dim
    flops = 2 * B * T * (D * L3 + L3 * 3 * D + 13 * D * D) + 2 * B * T * T * D
    transcendentals = B * T * (L3 + n_heads * T + 2 * D)
    bytes_accessed = 2 * x.size * x.dtype.itemsize + sum(
        int(a.size) * a.dtype.itemsize for a in ordered)
    cost = pl.CostEstimate(flops=int(flops),
                           transcendentals=int(transcendentals),
                           bytes_accessed=int(bytes_accessed))

    def _const_map(nd):
        return lambda b: (0,) * nd

    in_specs = [pl.BlockSpec((1, T, D), lambda b: (b, 0, 0))]
    for a in ordered:
        in_specs.append(pl.BlockSpec(a.shape, _const_map(a.ndim)))
    out_specs = pl.BlockSpec((1, T, D), lambda b: (b, 0, 0))

    fn = pl.pallas_call(
        kernel,
        out_shape=jax.ShapeDtypeStruct((B, T, D), jnp.float32),
        grid=(B,),
        in_specs=in_specs,
        out_specs=out_specs,
        scratch_shapes=[
            pltpu.VMEM((n_heads * n_tiles, q_tile, hd), BF16),  # Q (rope'd, pre-scaled)
            pltpu.VMEM((n_heads * n_tiles, hd, q_tile), BF16),  # K^T (transpose hoisted)
            pltpu.VMEM((n_heads * n_tiles, q_tile, hd), BF16),  # V
            pltpu.VMEM((q_tile, D), BF16),                      # per-tile attention output
            pltpu.VMEM((1, D), F32),                            # timeshift carry (attn)
            pltpu.VMEM((1, D), F32),                            # timeshift carry (cmix)
        ],
        compiler_params=pltpu.CompilerParams(
            dimension_semantics=("parallel",),
            vmem_limit_bytes=_vmem_limit_bytes()),
        cost_estimate=cost,
    )
    return fn(x, *ordered)


# ---------------- pure-JAX reference for correctness check ----------------
def reference(x, p, n_heads):
    B, T, D = x.shape
    hd = D // n_heads
    half = hd // 2

    def mm(a, b):
        return jnp.dot(a.astype(BF16), b.astype(BF16),
                       preferred_element_type=jnp.float32)

    def ln(h, w, b):
        mu = h.mean(-1, keepdims=True)
        var = ((h - mu) ** 2).mean(-1, keepdims=True)
        return (h - mu) / jnp.sqrt(var + 1e-5) * w + b

    def tshift(h):
        return jnp.concatenate([jnp.zeros_like(h[:, :1]), h[:, :-1]], axis=1) - h

    def lora(h, a, bm, lam):
        return lam + mm(jnp.tanh(mm(h, a)), bm)

    h1 = ln(x, p["ln1_w"], p["ln1_b"])
    dxx = tshift(h1)
    q = mm(h1 + dxx * lora(h1, p["q_la"], p["q_lb"], p["q_ll"]), p["wq"])
    k = mm(h1 + dxx * lora(h1, p["k_la"], p["k_lb"], p["k_ll"]), p["wk"])
    v = mm(h1 + dxx * lora(h1, p["v_la"], p["v_lb"], p["v_ll"]), p["wv"])

    def split(t):
        return t.reshape(B, T, n_heads, hd).transpose(0, 2, 1, 3)   # (B,H,T,hd)

    cos, sin = p["cos"], p["sin"]

    def rope(t):
        tr, ti = t[..., :half], t[..., half:]
        return jnp.concatenate([tr * cos - ti * sin, tr * sin + ti * cos], axis=-1)

    qh, kh, vh = rope(split(q)), rope(split(k)), split(v)
    s = jnp.einsum("bhtd,bhsd->bhts", qh.astype(BF16), kh.astype(BF16),
                   preferred_element_type=jnp.float32) * (1.0 / (hd ** 0.5))
    mask = jnp.tril(jnp.ones((T, T), bool))
    s = jnp.where(mask, s, -jnp.inf)
    a = jax.nn.softmax(s, axis=-1)
    o = jnp.einsum("bhts,bhsd->bhtd", a.astype(BF16), vh.astype(BF16),
                   preferred_element_type=jnp.float32)
    o = o.transpose(0, 2, 1, 3).reshape(B, T, D)
    x2 = x + mm(o, p["proj_w"]) + p["proj_b"]

    h2 = ln(x2, p["ln2_w"], p["ln2_b"])
    d2 = tshift(h2)
    r = mm(h2 + d2 * p["r_weight"], p["wr"])
    kk = jnp.maximum(mm(h2 + d2 * p["k_weight"], p["wkc"]), 0.0) ** 2
    vv = mm(kk, p["wvc"])
    return x2 + jax.nn.sigmoid(r) * vv


# ---------------- deterministic parameter init ----------------
def init_params(key, D, T, n_heads, lora_dim, block_id, n_blocks):
    hd = D // n_heads
    ks = jax.random.split(key, 24)

    def nrm(k, shape, s):
        return jax.random.normal(k, shape, jnp.float32) * s

    p = {}
    p["ln1_w"] = jnp.ones((1, D), jnp.float32) + nrm(ks[0], (1, D), 0.02)
    p["ln1_b"] = nrm(ks[1], (1, D), 0.02)
    p["ln2_w"] = jnp.ones((1, D), jnp.float32) + nrm(ks[2], (1, D), 0.02)
    p["ln2_b"] = nrm(ks[3], (1, D), 0.02)
    # attention projections, stored transposed (in, out) so kernel does x @ W
    p["wq"] = nrm(ks[4], (D, D), 0.05)
    p["wk"] = nrm(ks[5], (D, D), 0.05)
    p["wv"] = nrm(ks[6], (D, D), 0.05)
    p["proj_w"] = nrm(ks[7], (D, D), 0.05)
    p["proj_b"] = nrm(ks[8], (1, D), 0.02)
    # LoRA params: a (D, L), b (L, D), lambd (1, D)
    p["q_la"] = nrm(ks[9], (D, lora_dim), 0.001)
    p["q_lb"] = nrm(ks[10], (lora_dim, D), 0.001)
    p["k_la"] = nrm(ks[11], (D, lora_dim), 0.001)
    p["k_lb"] = nrm(ks[12], (lora_dim, D), 0.001)
    p["v_la"] = nrm(ks[13], (D, lora_dim), 0.001)
    p["v_lb"] = nrm(ks[14], (lora_dim, D), 0.001)
    p["q_ll"] = nrm(ks[15], (1, D), 1.0)
    p["k_ll"] = nrm(ks[16], (1, D), 1.0)
    p["v_ll"] = nrm(ks[17], (1, D), 1.0)
    # RoPE tables (first T positions, per-head dim = hd)
    pos = jnp.arange(T, dtype=jnp.float32)[:, None]
    theta = (1.0 / (10000.0 ** (jnp.arange(0, hd, 2, dtype=jnp.float32) / hd)))[None, :]
    p["cos"] = jnp.cos(pos * theta)
    p["sin"] = jnp.sin(pos * theta)
    # channel mixing
    r1 = 1.0 - block_id / n_blocks
    i = jnp.arange(D, dtype=jnp.float32)
    p["r_weight"] = (1.0 - (i / D) ** r1).reshape(1, D)
    p["k_weight"] = (1.0 - (i / D) ** r1).reshape(1, D)
    p["wr"] = nrm(ks[18], (D, D), 0.05)
    p["wkc"] = nrm(ks[19], (D, 4 * D), 0.05)
    p["wvc"] = nrm(ks[20], (4 * D, D), 0.05)
    return p


if __name__ == "__main__":
    # D multiple of 128 (lane-dense output) and hd = 128 (lane-aligned head
    # slices / RoPE roll) while staying small: B=2, T=8, D=256, H=2, LoRA=64.
    B, T, D, H, LORA = 2, 8, 256, 2, 64
    key = jax.random.PRNGKey(0)
    kx, kp = jax.random.split(key)
    x = jax.random.normal(kx, (B, T, D), jnp.float32)
    params = init_params(kp, D, T, H, LORA, block_id=0, n_blocks=2)

    ordered, n_ck = prepare_block_params(params, H)   # one-time load-time prep
    out = jax.block_until_ready(block_forward(x, ordered, n_ck, H))
    ref = reference(x, params, H)

    assert out.shape == (B, T, D)
    err = float(jnp.max(jnp.abs(out - ref)))
    assert jnp.allclose(out, ref, atol=3e-2, rtol=3e-2), f"max abs err {err}"
    print("KERNEL_OK")
</pallas_src>

<mosaic_0001>
module attributes {stable_mosaic.version = 11 : i64} {
  func.func @block_kernel(%arg0: i32, %arg1: memref<1x8x256xf32, #tpu.memory_space<vmem>>, %arg2: memref<1x256xf32, #tpu.memory_space<vmem>>, %arg3: memref<1x256xf32, #tpu.memory_space<vmem>>, %arg4: memref<256x192xbf16, #tpu.memory_space<vmem>>, %arg5: memref<192x768xbf16, #tpu.memory_space<vmem>>, %arg6: memref<1x768xf32, #tpu.memory_space<vmem>>, %arg7: memref<3x256x256xbf16, #tpu.memory_space<vmem>>, %arg8: memref<256x256xbf16, #tpu.memory_space<vmem>>, %arg9: memref<1x256xf32, #tpu.memory_space<vmem>>, %arg10: memref<8x128xf32, #tpu.memory_space<vmem>>, %arg11: memref<8x128xf32, #tpu.memory_space<vmem>>, %arg12: memref<1x256xf32, #tpu.memory_space<vmem>>, %arg13: memref<1x256xf32, #tpu.memory_space<vmem>>, %arg14: memref<1x256xf32, #tpu.memory_space<vmem>>, %arg15: memref<1x256xf32, #tpu.memory_space<vmem>>, %arg16: memref<256x256xbf16, #tpu.memory_space<vmem>>, %arg17: memref<1x256x1024xbf16, #tpu.memory_space<vmem>>, %arg18: memref<1x1024x256xbf16, #tpu.memory_space<vmem>>, %arg19: memref<1x8x256xf32, #tpu.memory_space<vmem>>, %arg20: memref<2x8x128xbf16, #tpu.memory_space<vmem>>, %arg21: memref<2x128x8xbf16, #tpu.memory_space<vmem>>, %arg22: memref<2x8x128xbf16, #tpu.memory_space<vmem>>, %arg23: memref<8x256xbf16, #tpu.memory_space<vmem>>, %arg24: memref<1x256xf32, #tpu.memory_space<vmem>>, %arg25: memref<1x256xf32, #tpu.memory_space<vmem>>) attributes {dimension_semantics = [#tpu.dimension_semantics<parallel>], iteration_bounds = array<i64: 2>, scalar_prefetch = 0 : i64, scratch_operands = 6 : i64, tpu.core_type = #tpu.core_type<tc>, window_params = [{transform_indices = @transform_0, window_bounds = array<i64: 1, 8, 256>}, {pipeline_mode = #tpu.pipeline_mode<synchronous>, transform_indices = @transform_1, window_bounds = array<i64: 1, 256>}, {pipeline_mode = #tpu.pipeline_mode<synchronous>, transform_indices = @transform_2, window_bounds = array<i64: 1, 256>}, {pipeline_mode = #tpu.pipeline_mode<synchronous>, transform_indices = @transform_3, window_bounds = array<i64: 256, 192>}, {pipeline_mode = #tpu.pipeline_mode<synchronous>, transform_indices = @transform_4, window_bounds = array<i64: 192, 768>}, {pipeline_mode = #tpu.pipeline_mode<synchronous>, transform_indices = @transform_5, window_bounds = array<i64: 1, 768>}, {pipeline_mode = #tpu.pipeline_mode<synchronous>, transform_indices = @transform_6, window_bounds = array<i64: 3, 256, 256>}, {pipeline_mode = #tpu.pipeline_mode<synchronous>, transform_indices = @transform_7, window_bounds = array<i64: 256, 256>}, {pipeline_mode = #tpu.pipeline_mode<synchronous>, transform_indices = @transform_8, window_bounds = array<i64: 1, 256>}, {pipeline_mode = #tpu.pipeline_mode<synchronous>, transform_indices = @transform_9, window_bounds = array<i64: 8, 128>}, {pipeline_mode = #tpu.pipeline_mode<synchronous>, transform_indices = @transform_10, window_bounds = array<i64: 8, 128>}, {pipeline_mode = #tpu.pipeline_mode<synchronous>, transform_indices = @transform_11, window_bounds = array<i64: 1, 256>}, {pipeline_mode = #tpu.pipeline_mode<synchronous>, transform_indices = @transform_12, window_bounds = array<i64: 1, 256>}, {pipeline_mode = #tpu.pipeline_mode<synchronous>, transform_indices = @transform_13, window_bounds = array<i64: 1, 256>}, {pipeline_mode = #tpu.pipeline_mode<synchronous>, transform_indices = @transform_14, window_bounds = array<i64: 1, 256>}, {pipeline_mode = #tpu.pipeline_mode<synchronous>, transform_indices = @transform_15, window_bounds = array<i64: 256, 256>}, {pipeline_mode = #tpu.pipeline_mode<synchronous>, transform_indices = @transform_16, window_bounds = array<i64: 1, 256, 1024>}, {pipeline_mode = #tpu.pipeline_mode<synchronous>, transform_indices = @transform_17, window_bounds = array<i64: 1, 1024, 256>}, {transform_indices = @transform_18, window_bounds = array<i64: 1, 8, 256>}]} {
    %0 = tpu.iota {dimensions = array<i32: 0>} : vector<8x1xi32>
    %c0_i32 = arith.constant 0 : i32
    %1 = vector.broadcast %c0_i32 : i32 to vector<8x1xi32>
    %2 = arith.cmpi eq, %0, %1 : vector<8x1xi32>
    %3 = tpu.iota {dimensions = array<i32: 1>} : vector<8x8xi32>
    %4 = tpu.iota {dimensions = array<i32: 0>} : vector<8x8xi32>
    %5 = arith.cmpi sle, %3, %4 : vector<8x8xi32>
    %c0 = arith.constant 0 : index
    %c0_0 = arith.constant 0 : index
    %6 = vector.load %arg2[%c0, %c0_0] : memref<1x256xf32, #tpu.memory_space<vmem>>, vector<1x256xf32>
    %c0_1 = arith.constant 0 : index
    %c0_2 = arith.constant 0 : index
    %7 = vector.load %arg3[%c0_1, %c0_2] : memref<1x256xf32, #tpu.memory_space<vmem>>, vector<1x256xf32>
    %c0_3 = arith.constant 0 : index
    %c0_4 = arith.constant 0 : index
    %8 = vector.load %arg12[%c0_3, %c0_4] : memref<1x256xf32, #tpu.memory_space<vmem>>, vector<1x256xf32>
    %c0_5 = arith.constant 0 : index
    %c0_6 = arith.constant 0 : index
    %9 = vector.load %arg13[%c0_5, %c0_6] : memref<1x256xf32, #tpu.memory_space<vmem>>, vector<1x256xf32>
    %c0_7 = arith.constant 0 : index
    %c0_8 = arith.constant 0 : index
    %10 = vector.load %arg14[%c0_7, %c0_8] : memref<1x256xf32, #tpu.memory_space<vmem>>, vector<1x256xf32>
    %c0_9 = arith.constant 0 : index
    %c0_10 = arith.constant 0 : index
    %11 = vector.load %arg15[%c0_9, %c0_10] : memref<1x256xf32, #tpu.memory_space<vmem>>, vector<1x256xf32>
    %c0_11 = arith.constant 0 : index
    %c0_12 = arith.constant 0 : index
    %12 = vector.load %arg9[%c0_11, %c0_12] : memref<1x256xf32, #tpu.memory_space<vmem>>, vector<1x256xf32>
    %cst = arith.constant 0.000000e+00 : f32
    %13 = vector.broadcast %cst : f32 to vector<1x256xf32>
    %c0_13 = arith.constant 0 : index
    %c0_14 = arith.constant 0 : index
    %14 = vector.load %arg24[%c0_13, %c0_14] : memref<1x256xf32, #tpu.memory_space<vmem>>, vector<1x256xf32>
    tpu.vector_store %arg24[%c0_13, %c0_14], %13 {strides = array<i32>} : memref<1x256xf32, #tpu.memory_space<vmem>>, vector<1x256xf32>,
    %cst_15 = arith.constant 0.000000e+00 : f32
    %15 = vector.broadcast %cst_15 : f32 to vector<1x256xf32>
    %c0_16 = arith.constant 0 : index
    %c0_17 = arith.constant 0 : index
    %16 = vector.load %arg25[%c0_16, %c0_17] : memref<1x256xf32, #tpu.memory_space<vmem>>, vector<1x256xf32>
    tpu.vector_store %arg25[%c0_16, %c0_17], %15 {strides = array<i32>} : memref<1x256xf32, #tpu.memory_space<vmem>>, vector<1x256xf32>,
    %c0_i32_18 = arith.constant 0 : i32
    %c1_i32 = arith.constant 1 : i32
    %17 = arith.muli %c0_i32_18, %c1_i32 : i32
    %c0_i32_19 = arith.constant 0 : i32
    %18 = arith.addi %c0_i32_19, %17 : i32
    %c8_i32 = arith.constant 8 : i32
    %19 = arith.muli %18, %c8_i32 : i32
    %20 = tpu.assume_multiple %19, 8 : i32
    %c0_20 = arith.constant 0 : index
    %21 = arith.index_cast %20 : i32 to index
    %c0_21 = arith.constant 0 : index
    %22 = vector.load %arg1[%c0_20, %21, %c0_21] : memref<1x8x256xf32, #tpu.memory_space<vmem>>, vector<1x8x256xf32>
    %23 = vector.shape_cast %22 : vector<1x8x256xf32> to vector<8x256xf32>
    %cst_22 = arith.constant dense<0.000000e+00> : vector<8xf32>
    %24 = vector.multi_reduction <add>, %23, %cst_22 [1] : vector<8x256xf32> to vector<8xf32>
    %25 = vector.shape_cast %24 : vector<8xf32> to vector<8x1xf32>
    %cst_23 = arith.constant 2.560000e+02 : f32
    %26 = vector.broadcast %cst_23 : f32 to vector<8x1xf32>
    %27 = arith.divf %25, %26 : vector<8x1xf32>
    %28 = vector.broadcast %27 : vector<8x1xf32> to vector<8x256xf32>
    %29 = arith.subf %23, %28 : vector<8x256xf32>
    %30 = arith.mulf %29, %29 : vector<8x256xf32>
    %cst_24 = arith.constant dense<0.000000e+00> : vector<8xf32>
    %31 = vector.multi_reduction <add>, %30, %cst_24 [1] : vector<8x256xf32> to vector<8xf32>
    %32 = vector.shape_cast %31 : vector<8xf32> to vector<8x1xf32>
    %cst_25 = arith.constant 2.560000e+02 : f32
    %33 = vector.broadcast %cst_25 : f32 to vector<8x1xf32>
    %34 = arith.divf %32, %33 : vector<8x1xf32>
    %35 = vector.broadcast %27 : vector<8x1xf32> to vector<8x256xf32>
    %36 = arith.subf %23, %35 : vector<8x256xf32>
    %cst_26 = arith.constant 9.99999974E-6 : f32
    %37 = vector.broadcast %cst_26 : f32 to vector<8x1xf32>
    %38 = arith.addf %34, %37 : vector<8x1xf32>
    %39 = math.rsqrt %38 : vector<8x1xf32>
    %40 = vector.broadcast %39 : vector<8x1xf32> to vector<8x256xf32>
    %41 = arith.mulf %36, %40 : vector<8x256xf32>
    %42 = vector.broadcast %6 : vector<1x256xf32> to vector<8x256xf32>
    %43 = arith.mulf %41, %42 : vector<8x256xf32>
    %44 = vector.broadcast %7 : vector<1x256xf32> to vector<8x256xf32>
    %45 = arith.addf %43, %44 : vector<8x256xf32>
    %c0_27 = arith.constant 0 : index
    %c0_28 = arith.constant 0 : index
    %46 = vector.load %arg24[%c0_27, %c0_28] : memref<1x256xf32, #tpu.memory_space<vmem>>, vector<1x256xf32>
    %c1_i32_29 = arith.constant 1 : i32
    %47 = tpu.dynamic_rotate %45 by %c1_i32_29 dim 0 : vector<8x256xf32>, i32 -> vector<8x256xf32>
    %48 = vector.shape_cast %2 : vector<8x1xi1> to vector<8x1xi1>
    %49 = vector.broadcast %48 : vector<8x1xi1> to vector<8x256xi1>
    %50 = vector.shape_cast %46 : vector<1x256xf32> to vector<1x256xf32>
    %51 = vector.broadcast %50 : vector<1x256xf32> to vector<8x256xf32>
    %52 = arith.select %49, %51, %47 : vector<8x256xi1>, vector<8x256xf32>
    %53 = vector.extract_strided_slice %45 {offsets = [7, 0], sizes = [1, 256], strides = [1, 1]} : vector<8x256xf32> to vector<1x256xf32>
    %c0_30 = arith.constant 0 : index
    %c0_31 = arith.constant 0 : index
    %54 = vector.load %arg24[%c0_30, %c0_31] : memref<1x256xf32, #tpu.memory_space<vmem>>, vector<1x256xf32>
    tpu.vector_store %arg24[%c0_30, %c0_31], %53 {strides = array<i32>} : memref<1x256xf32, #tpu.memory_space<vmem>>, vector<1x256xf32>,
    %55 = arith.subf %52, %45 : vector<8x256xf32>
    %56 = arith.truncf %45 : vector<8x256xf32> to vector<8x256xbf16>
    %c0_32 = arith.constant 0 : index
    %c0_33 = arith.constant 0 : index
    %57 = vector.load %arg4[%c0_32, %c0_33] : memref<256x192xbf16, #tpu.memory_space<vmem>>, vector<256x192xbf16>
    %cst_34 = arith.constant dense<0.000000e+00> : vector<8x192xf32>
    %58 = tpu.matmul %56, %57, %cst_34 {dimension_numbers = #tpu.dot_dimension_numbers<[1], [0], [0], [1], [0, 0, 1, 1], [], []>} : vector<8x256xbf16>, vector<256x192xbf16>, vector<8x192xf32> -> vector<8x192xf32>
    %59 = math.tanh %58 : vector<8x192xf32>
    %c0_35 = arith.constant 0 : index
    %c0_36 = arith.constant 0 : index
    %60 = vector.load %arg6[%c0_35, %c0_36] : memref<1x768xf32, #tpu.memory_space<vmem>>, vector<1x768xf32>
    %61 = arith.truncf %59 : vector<8x192xf32> to vector<8x192xbf16>
    %c0_37 = arith.constant 0 : index
    %c0_38 = arith.constant 0 : index
    %62 = vector.load %arg5[%c0_37, %c0_38] : memref<192x768xbf16, #tpu.memory_space<vmem>>, vector<192x768xbf16>
    %cst_39 = arith.constant dense<0.000000e+00> : vector<8x768xf32>
    %63 = tpu.matmul %61, %62, %cst_39 {dimension_numbers = #tpu.dot_dimension_numbers<[1], [0], [0], [1], [0, 0, 1, 1], [], []>} : vector<8x192xbf16>, vector<192x768xbf16>, vector<8x768xf32> -> vector<8x768xf32>
    %64 = vector.broadcast %60 : vector<1x768xf32> to vector<8x768xf32>
    %65 = arith.addf %64, %63 : vector<8x768xf32>
    %66 = vector.extract_strided_slice %65 {offsets = [0, 0], sizes = [8, 256], strides = [1, 1]} : vector<8x768xf32> to vector<8x256xf32>
    %67 = arith.mulf %55, %66 : vector<8x256xf32>
    %68 = arith.addf %45, %67 : vector<8x256xf32>
    %69 = arith.truncf %68 : vector<8x256xf32> to vector<8x256xbf16>
    %70 = vector.extract_strided_slice %65 {offsets = [0, 256], sizes = [8, 256], strides = [1, 1]} : vector<8x768xf32> to vector<8x256xf32>
    %71 = arith.mulf %55, %70 : vector<8x256xf32>
    %72 = arith.addf %45, %71 : vector<8x256xf32>
    %73 = arith.truncf %72 : vector<8x256xf32> to vector<8x256xbf16>
    %74 = vector.extract_strided_slice %65 {offsets = [0, 512], sizes = [8, 256], strides = [1, 1]} : vector<8x768xf32> to vector<8x256xf32>
    %75 = arith.mulf %55, %74 : vector<8x256xf32>
    %76 = arith.addf %45, %75 : vector<8x256xf32>
    %77 = arith.truncf %76 : vector<8x256xf32> to vector<8x256xbf16>
    %c0_40 = arith.constant 0 : index
    %c0_41 = arith.constant 0 : index
    %c0_42 = arith.constant 0 : index
    %78 = vector.load %arg7[%c0_40, %c0_41, %c0_42] : memref<3x256x256xbf16, #tpu.memory_space<vmem>>, vector<1x256x256xbf16>
    %79 = vector.shape_cast %78 : vector<1x256x256xbf16> to vector<256x256xbf16>
    %cst_43 = arith.constant dense<0.000000e+00> : vector<8x256xf32>
    %80 = tpu.matmul %69, %79, %cst_43 {dimension_numbers = #tpu.dot_dimension_numbers<[1], [0], [0], [1], [0, 0, 1, 1], [], []>} : vector<8x256xbf16>, vector<256x256xbf16>, vector<8x256xf32> -> vector<8x256xf32>
    %cst_44 = arith.constant 0.0883883461 : f32
    %81 = vector.broadcast %cst_44 : f32 to vector<8x256xf32>
    %82 = arith.mulf %80, %81 : vector<8x256xf32>
    %c1 = arith.constant 1 : index
    %c0_45 = arith.constant 0 : index
    %c0_46 = arith.constant 0 : index
    %83 = vector.load %arg7[%c1, %c0_45, %c0_46] : memref<3x256x256xbf16, #tpu.memory_space<vmem>>, vector<1x256x256xbf16>
    %84 = vector.shape_cast %83 : vector<1x256x256xbf16> to vector<256x256xbf16>
    %cst_47 = arith.constant dense<0.000000e+00> : vector<8x256xf32>
    %85 = tpu.matmul %73, %84, %cst_47 {dimension_numbers = #tpu.dot_dimension_numbers<[1], [0], [0], [1], [0, 0, 1, 1], [], []>} : vector<8x256xbf16>, vector<256x256xbf16>, vector<8x256xf32> -> vector<8x256xf32>
    %c2 = arith.constant 2 : index
    %c0_48 = arith.constant 0 : index
    %c0_49 = arith.constant 0 : index
    %86 = vector.load %arg7[%c2, %c0_48, %c0_49] : memref<3x256x256xbf16, #tpu.memory_space<vmem>>, vector<1x256x256xbf16>
    %87 = vector.shape_cast %86 : vector<1x256x256xbf16> to vector<256x256xbf16>
    %cst_50 = arith.constant dense<0.000000e+00> : vector<8x256xf32>
    %88 = tpu.matmul %77, %87, %cst_50 {dimension_numbers = #tpu.dot_dimension_numbers<[1], [0], [0], [1], [0, 0, 1, 1], [], []>} : vector<8x256xbf16>, vector<256x256xbf16>, vector<8x256xf32> -> vector<8x256xf32>
    %89 = arith.index_cast %20 : i32 to index
    %c0_51 = arith.constant 0 : index
    %90 = vector.load %arg10[%89, %c0_51] : memref<8x128xf32, #tpu.memory_space<vmem>>, vector<8x128xf32>
    %91 = arith.index_cast %20 : i32 to index
    %c0_52 = arith.constant 0 : index
    %92 = vector.load %arg11[%91, %c0_52] : memref<8x128xf32, #tpu.memory_space<vmem>>, vector<8x128xf32>
    %c0_i32_53 = arith.constant 0 : i32
    %93 = arith.addi %c0_i32_53, %18 : i32
    %94 = vector.extract_strided_slice %82 {offsets = [0, 0], sizes = [8, 128], strides = [1, 1]} : vector<8x256xf32> to vector<8x128xf32>
    %95 = vector.extract_strided_slice %85 {offsets = [0, 0], sizes = [8, 128], strides = [1, 1]} : vector<8x256xf32> to vector<8x128xf32>
    %96 = arith.mulf %94, %90 : vector<8x128xf32>
    %c64_i32 = arith.constant 64 : i32
    %97 = tpu.dynamic_rotate %94 by %c64_i32 dim 1 : vector<8x128xf32>, i32 -> vector<8x128xf32>
    %98 = arith.mulf %97, %92 : vector<8x128xf32>
    %99 = arith.addf %96, %98 : vector<8x128xf32>
    %100 = arith.mulf %95, %90 : vector<8x128xf32>
    %c64_i32_54 = arith.constant 64 : i32
    %101 = tpu.dynamic_rotate %95 by %c64_i32_54 dim 1 : vector<8x128xf32>, i32 -> vector<8x128xf32>
    %102 = arith.mulf %101, %92 : vector<8x128xf32>
    %103 = arith.addf %100, %102 : vector<8x128xf32>
    %104 = arith.truncf %99 : vector<8x128xf32> to vector<8x128xbf16>
    %105 = arith.index_cast %93 : i32 to index
    %c0_55 = arith.constant 0 : index
    %c0_56 = arith.constant 0 : index
    %106 = vector.load %arg20[%105, %c0_55, %c0_56] : memref<2x8x128xbf16, #tpu.memory_space<vmem>>, vector<1x8x128xbf16>
    %107 = vector.shape_cast %106 : vector<1x8x128xbf16> to vector<8x128xbf16>
    %108 = vector.shape_cast %104 : vector<8x128xbf16> to vector<1x8x128xbf16>
    tpu.vector_store %arg20[%105, %c0_55, %c0_56], %108 {strides = array<i32>} : memref<2x8x128xbf16, #tpu.memory_space<vmem>>, vector<1x8x128xbf16>,
    %109 = tpu.transpose %103, [1, 0] : vector<8x128xf32> -> vector<128x8xf32>
    %110 = arith.truncf %109 : vector<128x8xf32> to vector<128x8xbf16>
    %111 = arith.index_cast %93 : i32 to index
    %c0_57 = arith.constant 0 : index
    %c0_58 = arith.constant 0 : index
    %112 = vector.load %arg21[%111, %c0_57, %c0_58] : memref<2x128x8xbf16, #tpu.memory_space<vmem>>, vector<1x128x8xbf16>
    %113 = vector.shape_cast %112 : vector<1x128x8xbf16> to vector<128x8xbf16>
    %114 = vector.shape_cast %110 : vector<128x8xbf16> to vector<1x128x8xbf16>
    tpu.vector_store %arg21[%111, %c0_57, %c0_58], %114 {strides = array<i32>} : memref<2x128x8xbf16, #tpu.memory_space<vmem>>, vector<1x128x8xbf16>,
    %115 = vector.extract_strided_slice %88 {offsets = [0, 0], sizes = [8, 128], strides = [1, 1]} : vector<8x256xf32> to vector<8x128xf32>
    %116 = arith.truncf %115 : vector<8x128xf32> to vector<8x128xbf16>
    %117 = arith.index_cast %93 : i32 to index
    %c0_59 = arith.constant 0 : index
    %c0_60 = arith.constant 0 : index
    %118 = vector.load %arg22[%117, %c0_59, %c0_60] : memref<2x8x128xbf16, #tpu.memory_space<vmem>>, vector<1x8x128xbf16>
    %119 = vector.shape_cast %118 : vector<1x8x128xbf16> to vector<8x128xbf16>
    %120 = vector.shape_cast %116 : vector<8x128xbf16> to vector<1x8x128xbf16>
    tpu.vector_store %arg22[%117, %c0_59, %c0_60], %120 {strides = array<i32>} : memref<2x8x128xbf16, #tpu.memory_space<vmem>>, vector<1x8x128xbf16>,
    %c1_i32_61 = arith.constant 1 : i32
    %121 = arith.addi %c1_i32_61, %18 : i32
    %122 = vector.extract_strided_slice %82 {offsets = [0, 128], sizes = [8, 128], strides = [1, 1]} : vector<8x256xf32> to vector<8x128xf32>
    %123 = vector.extract_strided_slice %85 {offsets = [0, 128], sizes = [8, 128], strides = [1, 1]} : vector<8x256xf32> to vector<8x128xf32>
    %124 = arith.mulf %122, %90 : vector<8x128xf32>
    %c64_i32_62 = arith.constant 64 : i32
    %125 = tpu.dynamic_rotate %122 by %c64_i32_62 dim 1 : vector<8x128xf32>, i32 -> vector<8x128xf32>
    %126 = arith.mulf %125, %92 : vector<8x128xf32>
    %127 = arith.addf %124, %126 : vector<8x128xf32>
    %128 = arith.mulf %123, %90 : vector<8x128xf32>
    %c64_i32_63 = arith.constant 64 : i32
    %129 = tpu.dynamic_rotate %123 by %c64_i32_63 dim 1 : vector<8x128xf32>, i32 -> vector<8x128xf32>
    %130 = arith.mulf %129, %92 : vector<8x128xf32>
    %131 = arith.addf %128, %130 : vector<8x128xf32>
    %132 = arith.truncf %127 : vector<8x128xf32> to vector<8x128xbf16>
    %133 = arith.index_cast %121 : i32 to index
    %c0_64 = arith.constant 0 : index
    %c0_65 = arith.constant 0 : index
    %134 = vector.load %arg20[%133, %c0_64, %c0_65] : memref<2x8x128xbf16, #tpu.memory_space<vmem>>, vector<1x8x128xbf16>
    %135 = vector.shape_cast %134 : vector<1x8x128xbf16> to vector<8x128xbf16>
    %136 = vector.shape_cast %132 : vector<8x128xbf16> to vector<1x8x128xbf16>
    tpu.vector_store %arg20[%133, %c0_64, %c0_65], %136 {strides = array<i32>} : memref<2x8x128xbf16, #tpu.memory_space<vmem>>, vector<1x8x128xbf16>,
    %137 = tpu.transpose %131, [1, 0] : vector<8x128xf32> -> vector<128x8xf32>
    %138 = arith.truncf %137 : vector<128x8xf32> to vector<128x8xbf16>
    %139 = arith.index_cast %121 : i32 to index
    %c0_66 = arith.constant 0 : index
    %c0_67 = arith.constant 0 : index
    %140 = vector.load %arg21[%139, %c0_66, %c0_67] : memref<2x128x8xbf16, #tpu.memory_space<vmem>>, vector<1x128x8xbf16>
    %141 = vector.shape_cast %140 : vector<1x128x8xbf16> to vector<128x8xbf16>
    %142 = vector.shape_cast %138 : vector<128x8xbf16> to vector<1x128x8xbf16>
    tpu.vector_store %arg21[%139, %c0_66, %c0_67], %142 {strides = array<i32>} : memref<2x128x8xbf16, #tpu.memory_space<vmem>>, vector<1x128x8xbf16>,
    %143 = vector.extract_strided_slice %88 {offsets = [0, 128], sizes = [8, 128], strides = [1, 1]} : vector<8x256xf32> to vector<8x128xf32>
    %144 = arith.truncf %143 : vector<8x128xf32> to vector<8x128xbf16>
    %145 = arith.index_cast %121 : i32 to index
    %c0_68 = arith.constant 0 : index
    %c0_69 = arith.constant 0 : index
    %146 = vector.load %arg22[%145, %c0_68, %c0_69] : memref<2x8x128xbf16, #tpu.memory_space<vmem>>, vector<1x8x128xbf16>
    %147 = vector.shape_cast %146 : vector<1x8x128xbf16> to vector<8x128xbf16>
    %148 = vector.shape_cast %144 : vector<8x128xbf16> to vector<1x8x128xbf16>
    tpu.vector_store %arg22[%145, %c0_68, %c0_69], %148 {strides = array<i32>} : memref<2x8x128xbf16, #tpu.memory_space<vmem>>, vector<1x8x128xbf16>,
    %c1_i32_70 = arith.constant 1 : i32
    %c0_i32_71 = arith.constant 0 : i32
    %c1_i32_72 = arith.constant 1 : i32
    %149 = arith.muli %c0_i32_71, %c1_i32_72 : i32
    %c0_i32_73 = arith.constant 0 : i32
    %150 = arith.addi %c0_i32_73, %149 : i32
    %c8_i32_74 = arith.constant 8 : i32
    %151 = arith.muli %150, %c8_i32_74 : i32
    %152 = tpu.assume_multiple %151, 8 : i32
    %c0_i32_75 = arith.constant 0 : i32
    %153 = arith.addi %c0_i32_75, %150 : i32
    %154 = arith.index_cast %153 : i32 to index
    %c0_76 = arith.constant 0 : index
    %c0_77 = arith.constant 0 : index
    %155 = vector.load %arg20[%154, %c0_76, %c0_77] : memref<2x8x128xbf16, #tpu.memory_space<vmem>>, vector<1x8x128xbf16>
    %156 = vector.shape_cast %155 : vector<1x8x128xbf16> to vector<8x128xbf16>
    %cst_78 = arith.constant -1.000000e+30 : f32
    %157 = vector.broadcast %cst_78 : f32 to vector<8x1xf32>
    %cst_79 = arith.constant 0.000000e+00 : f32
    %158 = vector.broadcast %cst_79 : f32 to vector<8x1xf32>
    %cst_80 = arith.constant 0.000000e+00 : f32
    %159 = vector.broadcast %cst_80 : f32 to vector<8x128xf32>
    %c0_i32_81 = arith.constant 0 : i32
    %160 = arith.subi %150, %c0_i32_81 : i32
    %161 = arith.addi %c0_i32_81, %160 : i32
    %c1_i32_82 = arith.constant 1 : i32
    %162:3 = scf.for %arg26 = %c0_i32_81 to %161 step %c1_i32_82 iter_args(%arg27 = %157, %arg28 = %158, %arg29 = %159) -> (vector<8x1xf32>, vector<8x1xf32>, vector<8x128xf32>)  : i32 {
      %c0_i32_151 = arith.constant 0 : i32
      %313 = arith.addi %c0_i32_151, %arg26 : i32
      %314 = arith.index_cast %313 : i32 to index
      %c0_152 = arith.constant 0 : index
      %c0_153 = arith.constant 0 : index
      %315 = vector.load %arg21[%314, %c0_152, %c0_153] : memref<2x128x8xbf16, #tpu.memory_space<vmem>>, vector<1x128x8xbf16>
      %316 = vector.shape_cast %315 : vector<1x128x8xbf16> to vector<128x8xbf16>
      %cst_154 = arith.constant dense<0.000000e+00> : vector<8x8xf32>
      %317 = tpu.matmul %156, %316, %cst_154 {dimension_numbers = #tpu.dot_dimension_numbers<[1], [0], [0], [1], [0, 0, 1, 1], [], []>} : vector<8x128xbf16>, vector<128x8xbf16>, vector<8x8xf32> -> vector<8x8xf32>
      %cst_155 = arith.constant dense<0xFF800000> : vector<8xf32>
      %318 = vector.multi_reduction <maximumf>, %317, %cst_155 [1] : vector<8x8xf32> to vector<8xf32>
      %319 = vector.shape_cast %318 : vector<8xf32> to vector<8x1xf32>
      %320 = arith.maximumf %arg27, %319 : vector<8x1xf32>
      %321 = arith.subf %arg27, %320 : vector<8x1xf32>
      %322 = math.exp %321 : vector<8x1xf32>
      %323 = vector.broadcast %320 : vector<8x1xf32> to vector<8x8xf32>
      %324 = arith.subf %317, %323 : vector<8x8xf32>
      %325 = math.exp %324 : vector<8x8xf32>
      %326 = arith.mulf %322, %arg28 : vector<8x1xf32>
      %cst_156 = arith.constant dense<0.000000e+00> : vector<8xf32>
      %327 = vector.multi_reduction <add>, %325, %cst_156 [1] : vector<8x8xf32> to vector<8xf32>
      %328 = vector.shape_cast %327 : vector<8xf32> to vector<8x1xf32>
      %329 = arith.addf %326, %328 : vector<8x1xf32>
      %330 = vector.broadcast %322 : vector<8x1xf32> to vector<8x128xf32>
      %331 = arith.mulf %330, %arg29 : vector<8x128xf32>
      %332 = arith.truncf %325 : vector<8x8xf32> to vector<8x8xbf16>
      %c0_i32_157 = arith.constant 0 : i32
      %333 = arith.addi %c0_i32_157, %arg26 : i32
      %334 = arith.index_cast %333 : i32 to index
      %c0_158 = arith.constant 0 : index
      %c0_159 = arith.constant 0 : index
      %335 = vector.load %arg22[%334, %c0_158, %c0_159] : memref<2x8x128xbf16, #tpu.memory_space<vmem>>, vector<1x8x128xbf16>
      %336 = vector.shape_cast %335 : vector<1x8x128xbf16> to vector<8x128xbf16>
      %cst_160 = arith.constant dense<0.000000e+00> : vector<8x128xf32>
      %337 = tpu.matmul %332, %336, %cst_160 {dimension_numbers = #tpu.dot_dimension_numbers<[1], [0], [0], [1], [0, 0, 1, 1], [], []>} : vector<8x8xbf16>, vector<8x128xbf16>, vector<8x128xf32> -> vector<8x128xf32>
      %338 = arith.addf %331, %337 : vector<8x128xf32>
      scf.yield %320, %329, %338 : vector<8x1xf32>, vector<8x1xf32>, vector<8x128xf32>
    }
    %c0_i32_83 = arith.constant 0 : i32
    %163 = arith.addi %c0_i32_83, %150 : i32
    %164 = arith.index_cast %163 : i32 to index
    %c0_84 = arith.constant 0 : index
    %c0_85 = arith.constant 0 : index
    %165 = vector.load %arg21[%164, %c0_84, %c0_85] : memref<2x128x8xbf16, #tpu.memory_space<vmem>>, vector<1x128x8xbf16>
    %166 = vector.shape_cast %165 : vector<1x128x8xbf16> to vector<128x8xbf16>
    %cst_86 = arith.constant dense<0.000000e+00> : vector<8x8xf32>
    %167 = tpu.matmul %156, %166, %cst_86 {dimension_numbers = #tpu.dot_dimension_numbers<[1], [0], [0], [1], [0, 0, 1, 1], [], []>} : vector<8x128xbf16>, vector<128x8xbf16>, vector<8x8xf32> -> vector<8x8xf32>
    %cst_87 = arith.constant -1.000000e+30 : f32
    %168 = vector.broadcast %cst_87 : f32 to vector<8x8xf32>
    %169 = arith.select %5, %167, %168 : vector<8x8xi1>, vector<8x8xf32>
    %cst_88 = arith.constant dense<0xFF800000> : vector<8xf32>
    %170 = vector.multi_reduction <maximumf>, %169, %cst_88 [1] : vector<8x8xf32> to vector<8xf32>
    %171 = vector.shape_cast %170 : vector<8xf32> to vector<8x1xf32>
    %172 = arith.maximumf %162#0, %171 : vector<8x1xf32>
    %173 = arith.subf %162#0, %172 : vector<8x1xf32>
    %174 = math.exp %173 : vector<8x1xf32>
    %175 = vector.broadcast %172 : vector<8x1xf32> to vector<8x8xf32>
    %176 = arith.subf %169, %175 : vector<8x8xf32>
    %177 = math.exp %176 : vector<8x8xf32>
    %178 = arith.mulf %174, %162#1 : vector<8x1xf32>
    %cst_89 = arith.constant dense<0.000000e+00> : vector<8xf32>
    %179 = vector.multi_reduction <add>, %177, %cst_89 [1] : vector<8x8xf32> to vector<8xf32>
    %180 = vector.shape_cast %179 : vector<8xf32> to vector<8x1xf32>
    %181 = arith.addf %178, %180 : vector<8x1xf32>
    %182 = vector.broadcast %174 : vector<8x1xf32> to vector<8x128xf32>
    %183 = arith.mulf %182, %162#2 : vector<8x128xf32>
    %184 = arith.truncf %177 : vector<8x8xf32> to vector<8x8xbf16>
    %c0_i32_90 = arith.constant 0 : i32
    %185 = arith.addi %c0_i32_90, %150 : i32
    %186 = arith.index_cast %185 : i32 to index
    %c0_91 = arith.constant 0 : index
    %c0_92 = arith.constant 0 : index
    %187 = vector.load %arg22[%186, %c0_91, %c0_92] : memref<2x8x128xbf16, #tpu.memory_space<vmem>>, vector<1x8x128xbf16>
    %188 = vector.shape_cast %187 : vector<1x8x128xbf16> to vector<8x128xbf16>
    %cst_93 = arith.constant dense<0.000000e+00> : vector<8x128xf32>
    %189 = tpu.matmul %184, %188, %cst_93 {dimension_numbers = #tpu.dot_dimension_numbers<[1], [0], [0], [1], [0, 0, 1, 1], [], []>} : vector<8x8xbf16>, vector<8x128xbf16>, vector<8x128xf32> -> vector<8x128xf32>
    %190 = arith.addf %183, %189 : vector<8x128xf32>
    %191 = tpu.reciprocal %181 {approx = true} : vector<8x1xf32> -> vector<8x1xf32>
    %192 = vector.broadcast %191 : vector<8x1xf32> to vector<8x128xf32>
    %193 = arith.mulf %190, %192 : vector<8x128xf32>
    %194 = arith.truncf %193 : vector<8x128xf32> to vector<8x128xbf16>
    %c0_94 = arith.constant 0 : index
    %c0_95 = arith.constant 0 : index
    %195 = vector.load %arg23[%c0_94, %c0_95] : memref<8x256xbf16, #tpu.memory_space<vmem>>, vector<8x128xbf16>
    tpu.vector_store %arg23[%c0_94, %c0_95], %194 {strides = array<i32>} : memref<8x256xbf16, #tpu.memory_space<vmem>>, vector<8x128xbf16>,
    %c1_i32_96 = arith.constant 1 : i32
    %196 = arith.addi %c1_i32_96, %150 : i32
    %197 = arith.index_cast %196 : i32 to index
    %c0_97 = arith.constant 0 : index
    %c0_98 = arith.constant 0 : index
    %198 = vector.load %arg20[%197, %c0_97, %c0_98] : memref<2x8x128xbf16, #tpu.memory_space<vmem>>, vector<1x8x128xbf16>
    %199 = vector.shape_cast %198 : vector<1x8x128xbf16> to vector<8x128xbf16>
    %cst_99 = arith.constant -1.000000e+30 : f32
    %200 = vector.broadcast %cst_99 : f32 to vector<8x1xf32>
    %cst_100 = arith.constant 0.000000e+00 : f32
    %201 = vector.broadcast %cst_100 : f32 to vector<8x1xf32>
    %cst_101 = arith.constant 0.000000e+00 : f32
    %202 = vector.broadcast %cst_101 : f32 to vector<8x128xf32>
    %c0_i32_102 = arith.constant 0 : i32
    %203 = arith.subi %150, %c0_i32_102 : i32
    %204 = arith.addi %c0_i32_102, %203 : i32
    %c1_i32_103 = arith.constant 1 : i32
    %205:3 = scf.for %arg26 = %c0_i32_102 to %204 step %c1_i32_103 iter_args(%arg27 = %200, %arg28 = %201, %arg29 = %202) -> (vector<8x1xf32>, vector<8x1xf32>, vector<8x128xf32>)  : i32 {
      %c1_i32_151 = arith.constant 1 : i32
      %313 = arith.addi %c1_i32_151, %arg26 : i32
      %314 = arith.index_cast %313 : i32 to index
      %c0_152 = arith.constant 0 : index
      %c0_153 = arith.constant 0 : index
      %315 = vector.load %arg21[%314, %c0_152, %c0_153] : memref<2x128x8xbf16, #tpu.memory_space<vmem>>, vector<1x128x8xbf16>
      %316 = vector.shape_cast %315 : vector<1x128x8xbf16> to vector<128x8xbf16>
      %cst_154 = arith.constant dense<0.000000e+00> : vector<8x8xf32>
      %317 = tpu.matmul %199, %316, %cst_154 {dimension_numbers = #tpu.dot_dimension_numbers<[1], [0], [0], [1], [0, 0, 1, 1], [], []>} : vector<8x128xbf16>, vector<128x8xbf16>, vector<8x8xf32> -> vector<8x8xf32>
      %cst_155 = arith.constant dense<0xFF800000> : vector<8xf32>
      %318 = vector.multi_reduction <maximumf>, %317, %cst_155 [1] : vector<8x8xf32> to vector<8xf32>
      %319 = vector.shape_cast %318 : vector<8xf32> to vector<8x1xf32>
      %320 = arith.maximumf %arg27, %319 : vector<8x1xf32>
      %321 = arith.subf %arg27, %320 : vector<8x1xf32>
      %322 = math.exp %321 : vector<8x1xf32>
      %323 = vector.broadcast %320 : vector<8x1xf32> to vector<8x8xf32>
      %324 = arith.subf %317, %323 : vector<8x8xf32>
      %325 = math.exp %324 : vector<8x8xf32>
      %326 = arith.mulf %322, %arg28 : vector<8x1xf32>
      %cst_156 = arith.constant dense<0.000000e+00> : vector<8xf32>
      %327 = vector.multi_reduction <add>, %325, %cst_156 [1] : vector<8x8xf32> to vector<8xf32>
      %328 = vector.shape_cast %327 : vector<8xf32> to vector<8x1xf32>
      %329 = arith.addf %326, %328 : vector<8x1xf32>
      %330 = vector.broadcast %322 : vector<8x1xf32> to vector<8x128xf32>
      %331 = arith.mulf %330, %arg29 : vector<8x128xf32>
      %332 = arith.truncf %325 : vector<8x8xf32> to vector<8x8xbf16>
      %c1_i32_157 = arith.constant 1 : i32
      %333 = arith.addi %c1_i32_157, %arg26 : i32
      %334 = arith.index_cast %333 : i32 to index
      %c0_158 = arith.constant 0 : index
      %c0_159 = arith.constant 0 : index
      %335 = vector.load %arg22[%334, %c0_158, %c0_159] : memref<2x8x128xbf16, #tpu.memory_space<vmem>>, vector<1x8x128xbf16>
      %336 = vector.shape_cast %335 : vector<1x8x128xbf16> to vector<8x128xbf16>
      %cst_160 = arith.constant dense<0.000000e+00> : vector<8x128xf32>
      %337 = tpu.matmul %332, %336, %cst_160 {dimension_numbers = #tpu.dot_dimension_numbers<[1], [0], [0], [1], [0, 0, 1, 1], [], []>} : vector<8x8xbf16>, vector<8x128xbf16>, vector<8x128xf32> -> vector<8x128xf32>
      %338 = arith.addf %331, %337 : vector<8x128xf32>
      scf.yield %320, %329, %338 : vector<8x1xf32>, vector<8x1xf32>, vector<8x128xf32>
    }
    %c1_i32_104 = arith.constant 1 : i32
    %206 = arith.addi %c1_i32_104, %150 : i32
    %207 = arith.index_cast %206 : i32 to index
    %c0_105 = arith.constant 0 : index
    %c0_106 = arith.constant 0 : index
    %208 = vector.load %arg21[%207, %c0_105, %c0_106] : memref<2x128x8xbf16, #tpu.memory_space<vmem>>, vector<1x128x8xbf16>
    %209 = vector.shape_cast %208 : vector<1x128x8xbf16> to vector<128x8xbf16>
    %cst_107 = arith.constant dense<0.000000e+00> : vector<8x8xf32>
    %210 = tpu.matmul %199, %209, %cst_107 {dimension_numbers = #tpu.dot_dimension_numbers<[1], [0], [0], [1], [0, 0, 1, 1], [], []>} : vector<8x128xbf16>, vector<128x8xbf16>, vector<8x8xf32> -> vector<8x8xf32>
    %cst_108 = arith.constant -1.000000e+30 : f32
    %211 = vector.broadcast %cst_108 : f32 to vector<8x8xf32>
    %212 = arith.select %5, %210, %211 : vector<8x8xi1>, vector<8x8xf32>
    %cst_109 = arith.constant dense<0xFF800000> : vector<8xf32>
    %213 = vector.multi_reduction <maximumf>, %212, %cst_109 [1] : vector<8x8xf32> to vector<8xf32>
    %214 = vector.shape_cast %213 : vector<8xf32> to vector<8x1xf32>
    %215 = arith.maximumf %205#0, %214 : vector<8x1xf32>
    %216 = arith.subf %205#0, %215 : vector<8x1xf32>
    %217 = math.exp %216 : vector<8x1xf32>
    %218 = vector.broadcast %215 : vector<8x1xf32> to vector<8x8xf32>
    %219 = arith.subf %212, %218 : vector<8x8xf32>
    %220 = math.exp %219 : vector<8x8xf32>
    %221 = arith.mulf %217, %205#1 : vector<8x1xf32>
    %cst_110 = arith.constant dense<0.000000e+00> : vector<8xf32>
    %222 = vector.multi_reduction <add>, %220, %cst_110 [1] : vector<8x8xf32> to vector<8xf32>
    %223 = vector.shape_cast %222 : vector<8xf32> to vector<8x1xf32>
    %224 = arith.addf %221, %223 : vector<8x1xf32>
    %225 = vector.broadcast %217 : vector<8x1xf32> to vector<8x128xf32>
    %226 = arith.mulf %225, %205#2 : vector<8x128xf32>
    %227 = arith.truncf %220 : vector<8x8xf32> to vector<8x8xbf16>
    %c1_i32_111 = arith.constant 1 : i32
    %228 = arith.addi %c1_i32_111, %150 : i32
    %229 = arith.index_cast %228 : i32 to index
    %c0_112 = arith.constant 0 : index
    %c0_113 = arith.constant 0 : index
    %230 = vector.load %arg22[%229, %c0_112, %c0_113] : memref<2x8x128xbf16, #tpu.memory_space<vmem>>, vector<1x8x128xbf16>
    %231 = vector.shape_cast %230 : vector<1x8x128xbf16> to vector<8x128xbf16>
    %cst_114 = arith.constant dense<0.000000e+00> : vector<8x128xf32>
    %232 = tpu.matmul %227, %231, %cst_114 {dimension_numbers = #tpu.dot_dimension_numbers<[1], [0], [0], [1], [0, 0, 1, 1], [], []>} : vector<8x8xbf16>, vector<8x128xbf16>, vector<8x128xf32> -> vector<8x128xf32>
    %233 = arith.addf %226, %232 : vector<8x128xf32>
    %234 = tpu.reciprocal %224 {approx = true} : vector<8x1xf32> -> vector<8x1xf32>
    %235 = vector.broadcast %234 : vector<8x1xf32> to vector<8x128xf32>
    %236 = arith.mulf %233, %235 : vector<8x128xf32>
    %237 = arith.truncf %236 : vector<8x128xf32> to vector<8x128xbf16>
    %c0_115 = arith.constant 0 : index
    %c128 = arith.constant 128 : index
    %238 = vector.load %arg23[%c0_115, %c128] : memref<8x256xbf16, #tpu.memory_space<vmem>>, vector<8x128xbf16>
    tpu.vector_store %arg23[%c0_115, %c128], %237 {strides = array<i32>} : memref<8x256xbf16, #tpu.memory_space<vmem>>, vector<8x128xbf16>,
    %c0_116 = arith.constant 0 : index
    %c0_117 = arith.constant 0 : index
    %239 = vector.load %arg23[%c0_116, %c0_117] : memref<8x256xbf16, #tpu.memory_space<vmem>>, vector<8x256xbf16>
    %c0_118 = arith.constant 0 : index
    %c0_119 = arith.constant 0 : index
    %240 = vector.load %arg8[%c0_118, %c0_119] : memref<256x256xbf16, #tpu.memory_space<vmem>>, vector<256x256xbf16>
    %cst_120 = arith.constant dense<0.000000e+00> : vector<8x256xf32>
    %241 = tpu.matmul %239, %240, %cst_120 {dimension_numbers = #tpu.dot_dimension_numbers<[1], [0], [0], [1], [0, 0, 1, 1], [], []>} : vector<8x256xbf16>, vector<256x256xbf16>, vector<8x256xf32> -> vector<8x256xf32>
    %242 = vector.broadcast %12 : vector<1x256xf32> to vector<8x256xf32>
    %243 = arith.addf %241, %242 : vector<8x256xf32>
    %c0_121 = arith.constant 0 : index
    %244 = arith.index_cast %152 : i32 to index
    %c0_122 = arith.constant 0 : index
    %245 = vector.load %arg1[%c0_121, %244, %c0_122] : memref<1x8x256xf32, #tpu.memory_space<vmem>>, vector<1x8x256xf32>
    %246 = vector.shape_cast %245 : vector<1x8x256xf32> to vector<8x256xf32>
    %247 = arith.addf %246, %243 : vector<8x256xf32>
    %cst_123 = arith.constant dense<0.000000e+00> : vector<8xf32>
    %248 = vector.multi_reduction <add>, %247, %cst_123 [1] : vector<8x256xf32> to vector<8xf32>
    %249 = vector.shape_cast %248 : vector<8xf32> to vector<8x1xf32>
    %cst_124 = arith.constant 2.560000e+02 : f32
    %250 = vector.broadcast %cst_124 : f32 to vector<8x1xf32>
    %251 = arith.divf %249, %250 : vector<8x1xf32>
    %252 = vector.broadcast %251 : vector<8x1xf32> to vector<8x256xf32>
    %253 = arith.subf %247, %252 : vector<8x256xf32>
    %254 = arith.mulf %253, %253 : vector<8x256xf32>
    %cst_125 = arith.constant dense<0.000000e+00> : vector<8xf32>
    %255 = vector.multi_reduction <add>, %254, %cst_125 [1] : vector<8x256xf32> to vector<8xf32>
    %256 = vector.shape_cast %255 : vector<8xf32> to vector<8x1xf32>
    %cst_126 = arith.constant 2.560000e+02 : f32
    %257 = vector.broadcast %cst_126 : f32 to vector<8x1xf32>
    %258 = arith.divf %256, %257 : vector<8x1xf32>
    %259 = vector.broadcast %251 : vector<8x1xf32> to vector<8x256xf32>
    %260 = arith.subf %247, %259 : vector<8x256xf32>
    %cst_127 = arith.constant 9.99999974E-6 : f32
    %261 = vector.broadcast %cst_127 : f32 to vector<8x1xf32>
    %262 = arith.addf %258, %261 : vector<8x1xf32>
    %263 = math.rsqrt %262 : vector<8x1xf32>
    %264 = vector.broadcast %263 : vector<8x1xf32> to vector<8x256xf32>
    %265 = arith.mulf %260, %264 : vector<8x256xf32>
    %266 = vector.broadcast %8 : vector<1x256xf32> to vector<8x256xf32>
    %267 = arith.mulf %265, %266 : vector<8x256xf32>
    %268 = vector.broadcast %9 : vector<1x256xf32> to vector<8x256xf32>
    %269 = arith.addf %267, %268 : vector<8x256xf32>
    %c0_128 = arith.constant 0 : index
    %c0_129 = arith.constant 0 : index
    %270 = vector.load %arg25[%c0_128, %c0_129] : memref<1x256xf32, #tpu.memory_space<vmem>>, vector<1x256xf32>
    %c1_i32_130 = arith.constant 1 : i32
    %271 = tpu.dynamic_rotate %269 by %c1_i32_130 dim 0 : vector<8x256xf32>, i32 -> vector<8x256xf32>
    %272 = vector.shape_cast %2 : vector<8x1xi1> to vector<8x1xi1>
    %273 = vector.broadcast %272 : vector<8x1xi1> to vector<8x256xi1>
    %274 = vector.shape_cast %270 : vector<1x256xf32> to vector<1x256xf32>
    %275 = vector.broadcast %274 : vector<1x256xf32> to vector<8x256xf32>
    %276 = arith.select %273, %275, %271 : vector<8x256xi1>, vector<8x256xf32>
    %277 = vector.extract_strided_slice %269 {offsets = [7, 0], sizes = [1, 256], strides = [1, 1]} : vector<8x256xf32> to vector<1x256xf32>
    %c0_131 = arith.constant 0 : index
    %c0_132 = arith.constant 0 : index
    %278 = vector.load %arg25[%c0_131, %c0_132] : memref<1x256xf32, #tpu.memory_space<vmem>>, vector<1x256xf32>
    tpu.vector_store %arg25[%c0_131, %c0_132], %277 {strides = array<i32>} : memref<1x256xf32, #tpu.memory_space<vmem>>, vector<1x256xf32>,
    %279 = arith.subf %276, %269 : vector<8x256xf32>
    %280 = vector.broadcast %10 : vector<1x256xf32> to vector<8x256xf32>
    %281 = arith.mulf %279, %280 : vector<8x256xf32>
    %282 = arith.addf %269, %281 : vector<8x256xf32>
    %283 = arith.truncf %282 : vector<8x256xf32> to vector<8x256xbf16>
    %284 = vector.broadcast %11 : vector<1x256xf32> to vector<8x256xf32>
    %285 = arith.mulf %279, %284 : vector<8x256xf32>
    %286 = arith.addf %269, %285 : vector<8x256xf32>
    %287 = arith.truncf %286 : vector<8x256xf32> to vector<8x256xbf16>
    %c0_133 = arith.constant 0 : index
    %c0_134 = arith.constant 0 : index
    %288 = vector.load %arg16[%c0_133, %c0_134] : memref<256x256xbf16, #tpu.memory_space<vmem>>, vector<256x256xbf16>
    %cst_135 = arith.constant dense<0.000000e+00> : vector<8x256xf32>
    %289 = tpu.matmul %283, %288, %cst_135 {dimension_numbers = #tpu.dot_dimension_numbers<[1], [0], [0], [1], [0, 0, 1, 1], [], []>} : vector<8x256xbf16>, vector<256x256xbf16>, vector<8x256xf32> -> vector<8x256xf32>
    %c0_136 = arith.constant 0 : index
    %c0_137 = arith.constant 0 : index
    %c0_138 = arith.constant 0 : index
    %290 = vector.load %arg17[%c0_136, %c0_137, %c0_138] : memref<1x256x1024xbf16, #tpu.memory_space<vmem>>, vector<1x256x1024xbf16>
    %291 = vector.shape_cast %290 : vector<1x256x1024xbf16> to vector<256x1024xbf16>
    %cst_139 = arith.constant dense<0.000000e+00> : vector<8x1024xf32>
    %292 = tpu.matmul %287, %291, %cst_139 {dimension_numbers = #tpu.dot_dimension_numbers<[1], [0], [0], [1], [0, 0, 1, 1], [], []>} : vector<8x256xbf16>, vector<256x1024xbf16>, vector<8x1024xf32> -> vector<8x1024xf32>
    %cst_140 = arith.constant 0.000000e+00 : f32
    %293 = vector.broadcast %cst_140 : f32 to vector<8x1024xf32>
    %294 = arith.maximumf %292, %293 : vector<8x1024xf32>
    %295 = arith.mulf %294, %294 : vector<8x1024xf32>
    %296 = arith.truncf %295 : vector<8x1024xf32> to vector<8x1024xbf16>
    %c0_141 = arith.constant 0 : index
    %c0_142 = arith.constant 0 : index
    %c0_143 = arith.constant 0 : index
    %297 = vector.load %arg18[%c0_141, %c0_142, %c0_143] : memref<1x1024x256xbf16, #tpu.memory_space<vmem>>, vector<1x1024x256xbf16>
    %298 = vector.shape_cast %297 : vector<1x1024x256xbf16> to vector<1024x256xbf16>
    %cst_144 = arith.constant dense<0.000000e+00> : vector<8x256xf32>
    %299 = tpu.matmul %296, %298, %cst_144 {dimension_numbers = #tpu.dot_dimension_numbers<[1], [0], [0], [1], [0, 0, 1, 1], [], []>} : vector<8x1024xbf16>, vector<1024x256xbf16>, vector<8x256xf32> -> vector<8x256xf32>
    %cst_145 = arith.constant 0.000000e+00 : f32
    %300 = vector.broadcast %cst_145 : f32 to vector<8x256xf32>
    %301 = arith.subf %300, %289 : vector<8x256xf32>
    %302 = math.exp %301 : vector<8x256xf32>
    %cst_146 = arith.constant 1.000000e+00 : f32
    %303 = vector.broadcast %cst_146 : f32 to vector<8x256xf32>
    %304 = arith.addf %303, %302 : vector<8x256xf32>
    %cst_147 = arith.constant 1.000000e+00 : f32
    %305 = vector.broadcast %cst_147 : f32 to vector<8x256xf32>
    %306 = arith.divf %305, %304 : vector<8x256xf32>
    %307 = arith.mulf %306, %299 : vector<8x256xf32>
    %308 = arith.addf %247, %307 : vector<8x256xf32>
    %c0_148 = arith.constant 0 : index
    %309 = arith.index_cast %152 : i32 to index
    %c0_149 = arith.constant 0 : index
    %310 = vector.load %arg19[%c0_148, %309, %c0_149] : memref<1x8x256xf32, #tpu.memory_space<vmem>>, vector<1x8x256xf32>
    %311 = vector.shape_cast %310 : vector<1x8x256xf32> to vector<8x256xf32>
    %312 = vector.shape_cast %308 : vector<8x256xf32> to vector<1x8x256xf32>
    tpu.vector_store %arg19[%c0_148, %309, %c0_149], %312 {strides = array<i32>} : memref<1x8x256xf32, #tpu.memory_space<vmem>>, vector<1x8x256xf32>,
    %c1_i32_150 = arith.constant 1 : i32
    return
  }
  func.func @transform_0(%arg0: i32) -> (i32, i32, i32) {
    %c0_i32 = arith.constant 0 : i32
    %c0_i32_0 = arith.constant 0 : i32
    %c0_i32_1 = arith.constant 0 : i32
    return %arg0, %c0_i32, %c0_i32_0 : i32, i32, i32
  }
  func.func @transform_1(%arg0: i32) -> (i32, i32) {
    %c0_i32 = arith.constant 0 : i32
    %c0_i32_0 = arith.constant 0 : i32
    %c0_i32_1 = arith.constant 0 : i32
    return %c0_i32, %c0_i32_0 : i32, i32
  }
  func.func @transform_2(%arg0: i32) -> (i32, i32) {
    %c0_i32 = arith.constant 0 : i32
    %c0_i32_0 = arith.constant 0 : i32
    %c0_i32_1 = arith.constant 0 : i32
    return %c0_i32, %c0_i32_0 : i32, i32
  }
  func.func @transform_3(%arg0: i32) -> (i32, i32) {
    %c0_i32 = arith.constant 0 : i32
    %c0_i32_0 = arith.constant 0 : i32
    %c0_i32_1 = arith.constant 0 : i32
    return %c0_i32, %c0_i32_0 : i32, i32
  }
  func.func @transform_4(%arg0: i32) -> (i32, i32) {
    %c0_i32 = arith.constant 0 : i32
    %c0_i32_0 = arith.constant 0 : i32
    %c0_i32_1 = arith.constant 0 : i32
    return %c0_i32, %c0_i32_0 : i32, i32
  }
  func.func @transform_5(%arg0: i32) -> (i32, i32) {
    %c0_i32 = arith.constant 0 : i32
    %c0_i32_0 = arith.constant 0 : i32
    %c0_i32_1 = arith.constant 0 : i32
    return %c0_i32, %c0_i32_0 : i32, i32
  }
  func.func @transform_6(%arg0: i32) -> (i32, i32, i32) {
    %c0_i32 = arith.constant 0 : i32
    %c0_i32_0 = arith.constant 0 : i32
    %c0_i32_1 = arith.constant 0 : i32
    %c0_i32_2 = arith.constant 0 : i32
    return %c0_i32, %c0_i32_0, %c0_i32_1 : i32, i32, i32
  }
  func.func @transform_7(%arg0: i32) -> (i32, i32) {
    %c0_i32 = arith.constant 0 : i32
    %c0_i32_0 = arith.constant 0 : i32
    %c0_i32_1 = arith.constant 0 : i32
    return %c0_i32, %c0_i32_0 : i32, i32
  }
  func.func @transform_8(%arg0: i32) -> (i32, i32) {
    %c0_i32 = arith.constant 0 : i32
    %c0_i32_0 = arith.constant 0 : i32
    %c0_i32_1 = arith.constant 0 : i32
    return %c0_i32, %c0_i32_0 : i32, i32
  }
  func.func @transform_9(%arg0: i32) -> (i32, i32) {
    %c0_i32 = arith.constant 0 : i32
    %c0_i32_0 = arith.constant 0 : i32
    %c0_i32_1 = arith.constant 0 : i32
    return %c0_i32, %c0_i32_0 : i32, i32
  }
  func.func @transform_10(%arg0: i32) -> (i32, i32) {
    %c0_i32 = arith.constant 0 : i32
    %c0_i32_0 = arith.constant 0 : i32
    %c0_i32_1 = arith.constant 0 : i32
    return %c0_i32, %c0_i32_0 : i32, i32
  }
  func.func @transform_11(%arg0: i32) -> (i32, i32) {
    %c0_i32 = arith.constant 0 : i32
    %c0_i32_0 = arith.constant 0 : i32
    %c0_i32_1 = arith.constant 0 : i32
    return %c0_i32, %c0_i32_0 : i32, i32
  }
  func.func @transform_12(%arg0: i32) -> (i32, i32) {
    %c0_i32 = arith.constant 0 : i32
    %c0_i32_0 = arith.constant 0 : i32
    %c0_i32_1 = arith.constant 0 : i32
    return %c0_i32, %c0_i32_0 : i32, i32
  }
  func.func @transform_13(%arg0: i32) -> (i32, i32) {
    %c0_i32 = arith.constant 0 : i32
    %c0_i32_0 = arith.constant 0 : i32
    %c0_i32_1 = arith.constant 0 : i32
    return %c0_i32, %c0_i32_0 : i32, i32
  }
  func.func @transform_14(%arg0: i32) -> (i32, i32) {
    %c0_i32 = arith.constant 0 : i32
    %c0_i32_0 = arith.constant 0 : i32
    %c0_i32_1 = arith.constant 0 : i32
    return %c0_i32, %c0_i32_0 : i32, i32
  }
  func.func @transform_15(%arg0: i32) -> (i32, i32) {
    %c0_i32 = arith.constant 0 : i32
    %c0_i32_0 = arith.constant 0 : i32
    %c0_i32_1 = arith.constant 0 : i32
    return %c0_i32, %c0_i32_0 : i32, i32
  }
  func.func @transform_16(%arg0: i32) -> (i32, i32, i32) {
    %c0_i32 = arith.constant 0 : i32
    %c0_i32_0 = arith.constant 0 : i32
    %c0_i32_1 = arith.constant 0 : i32
    %c0_i32_2 = arith.constant 0 : i32
    return %c0_i32, %c0_i32_0, %c0_i32_1 : i32, i32, i32
  }
  func.func @transform_17(%arg0: i32) -> (i32, i32, i32) {
    %c0_i32 = arith.constant 0 : i32
    %c0_i32_0 = arith.constant 0 : i32
    %c0_i32_1 = arith.constant 0 : i32
    %c0_i32_2 = arith.constant 0 : i32
    return %c0_i32, %c0_i32_0, %c0_i32_1 : i32, i32, i32
  }
  func.func @transform_18(%arg0: i32) -> (i32, i32, i32) {
    %c0_i32 = arith.constant 0 : i32
    %c0_i32_0 = arith.constant 0 : i32
    %c0_i32_1 = arith.constant 0 : i32
    return %arg0, %c0_i32, %c0_i32_0 : i32, i32, i32
  }
}

</mosaic_0001>

<bundles_post_ra>
// kernel: tpu_custom_call.1
= control target key start
LH: loop header
LB: loop body
LE: loop exit
PB: predicated region body
PF: predicated region fallthrough
CT: control target
= control target key end

     0   :  { %s8700_s0 = inlined_call_operand.hbm [shape: f32[2,8,256], index: 0, kind: input, shape index: {}]   ;;  %s8701_s1 = inlined_call_operand.hbm [shape: f32[1,256], index: 1, kind: input, shape index: {}]   ;;  %s8702_s2 = inlined_call_operand.hbm [shape: f32[1,256], index: 2, kind: input, shape index: {}]   ;;  %s8703_s3 = inlined_call_operand.hbm [shape: bf16[256,192], index: 3, kind: input, shape index: {}]   ;;  %s8704_s4 = inlined_call_operand.hbm [shape: bf16[192,768], index: 4, kind: input, shape index: {}]   ;;  %s8705_s5 = inlined_call_operand.hbm [shape: f32[1,768], index: 5, kind: input, shape index: {}]   ;;  %s8706_s6 = inlined_call_operand.hbm [shape: bf16[3,256,256], index: 6, kind: input, shape index: {}]   ;;  %s8707_s7 = inlined_call_operand.hbm [shape: bf16[256,256], index: 7, kind: input, shape index: {}]   ;;  %s8708_s8 = inlined_call_operand.hbm [shape: f32[1,256], index: 8, kind: input, shape index: {}]   ;;  %s8709_s9 = inlined_call_operand.hbm [shape: f32[8,128], index: 9, kind: input, shape index: {}]   ;;  %s8710_s10 = inlined_call_operand.hbm [shape: f32[8,128], index: 10, kind: input, shape index: {}]   ;;  %s8711_s11 = inlined_call_operand.hbm [shape: f32[1,256], index: 11, kind: input, shape index: {}]   ;;  %s8712_s12 = inlined_call_operand.hbm [shape: f32[1,256], index: 12, kind: input, shape index: {}]   ;;  %s8713_s13 = inlined_call_operand.hbm [shape: f32[1,256], index: 13, kind: input, shape index: {}]   ;;  %s8714_s14 = inlined_call_operand.hbm [shape: f32[1,256], index: 14, kind: input, shape index: {}]   ;;  %s8715_s15 = inlined_call_operand.hbm [shape: bf16[256,256], index: 15, kind: input, shape index: {}]   ;;  %s8716_s16 = inlined_call_operand.hbm [shape: bf16[1,256,1024], index: 16, kind: input, shape index: {}]   ;;  %s8717_s17 = inlined_call_operand.hbm [shape: bf16[1,1024,256], index: 17, kind: input, shape index: {}]   ;;  %s8718_s18 = inlined_call_operand.hbm [shape: f32[2,8,256], index: 18, kind: output, shape index: {}]  }
   0x1   :  { %8737 = sst [smem:[#allocation54_spill]] %s8700_s0 }
   0x2   :  { %8738 = sst [smem:[#allocation55_spill]] %s8701_s1 }
   0x3   :  { %8739 = sst [smem:[#allocation56_spill]] %s8702_s2 }
   0x4   :  { %8740 = sst [smem:[#allocation57_spill]] %s8703_s3 }
   0x5   :  { %8741 = sst [smem:[#allocation58_spill]] %s8705_s5 }
   0x6   :  { %8742 = sst [smem:[#allocation59_spill]] %s8707_s7 }
   0x7   :  { %8743 = sst [smem:[#allocation60_spill]] %s8709_s9 }
   0x8   :  { %8744 = sst [smem:[#allocation61_spill]] %s8718_s18 }
   0x9   :  { %23 = vsyncpa [#allocation9], 0 }
   0xa   :  { %25 = vsyncpa [#allocation9 + $0x1], 0 }
   0xb   :  { %26 = vsyncpa [#allocation12], 0 }
   0xc   :  { %27 = vsyncpa [#allocation15], 0 }
   0xd   :  { %28 = vsyncpa [#allocation18], 0 }
   0xe   :  { %29 = vsyncpa [#allocation21], 0 }
   0xf   :  { %30 = vsyncpa [#allocation24], 0 }
  0x10   :  { %31 = vsyncpa [#allocation27], 0 }
  0x11   :  { %32 = vsyncpa [#allocation30], 0 }
  0x12   :  { %33 = vsyncpa [#allocation33], 0 }
  0x13   :  { %34 = vsyncpa [#allocation36], 0 }
  0x14   :  { %35 = vsyncpa [#allocation10], 0 }
  0x15   :  { %37 = vsyncpa [#allocation10 + $0x1], 0  ;;  %s7853_s27 = smov 0   ;;  %s7855_s28 = smov 0  }
  0x16   :  { %s7857_s29 = smov 0   ;;  %s7859_s30 = smov 0  }
  0x17 LB: > { %8745 = sst [smem:[#allocation49_spill]] %s7715_s27  ;;  %s7729_s0 = smov [#allocation11]   ;;  %s7727_s30 = sphi %s7859_s30, %s8802_s30   ;;  %s7723_s29 = sphi %s7857_s29, %s8801_s29   ;;  %s7719_s28 = sphi %s7855_s28, %s8800_s28   ;;  %s7715_s27 = sphi %s7853_s27, %s8799_s27  }
  0x18   : > { %8746 = sst [smem:[#allocation50_spill]] %s7719_s28  ;;  %s470_s19 = sshll.u32 %s7729_s0, 4  ;;  %s471_s19 = int_to_ptr.vmem [resolvable:$true] %s470_s19 }
  0x19   : > { %8747 = sst [smem:[#allocation51_spill]] %s7723_s29  ;;  %s7874_s1 = sadd.s32 4294967295, %s7727_s30  }
  0x1a   : > { %8748 = sst [smem:[#allocation52_spill]] %s7874_s1  ;;  %p5612_p0 = scmp.ge.s32.totalorder %s7727_s30, 1 }
  0x1b   : > { %p8727_p1 = scmp.eq.s32.totalorder %s7874_s1, 0  ;;  %p457_p2 = scmp.lt.s32.totalorder %s7727_s30, 3 }
  0x1c   : > { %s7730_s21 = smov [#allocation14]   ;;  %s7731_s23 = smov [#allocation17]  }
  0x1d   : > { %p7879_p3 = pnand %p5612_p0, %p457_p2  ;;  %s491_s22 = sshll.u32 %s7730_s21, 4  ;;  %s7886_s22 = int_to_ptr.vmem [resolvable:$true] %s491_s22 }
  0x1e   : > { %s518_s24 = sshll.u32 %s7731_s23, 4  ;;  %s8752_s0 = sld [smem:[#allocation55_spill]]  ;;  %s7894_s24 = int_to_ptr.vmem [resolvable:$true] %s518_s24 }
  0x1f   : > { %s8749_s20 = scalar_select %p7879_p3, 1, 0 }
  0x20   : > { %p6346_p5 = pneg %p7879_p3 }
  0x21   : > { %8750 = sst [smem:[#allocation53_spill]] %s8749_s20 }
  0x22   : > { %p7890_p6 = pnand %p6346_p5, %p8727_p1 }
  0x24   : > { %s7119_s18 = scalar_lea.hbm %s8752_s0, 32  ;;  %p7904_p8 = pneg %p7890_p6 }
  0x25   : > { %p7120_p7 = scmp.ne.s32.totalorder %s8752_s0, %s7119_s18  ;;  %p7126_p11 = scmp.lt.u32.totalorder %s7119_s18, %s8752_s0 }
  0x27   : > { %p7122_p9 = pnand %p7904_p8, %p7120_p7 }
  0x29   : > { %p7123_p10 = pneg %p7122_p9 }
  0x2b   : > { %p7128_p12 = pnand %p7126_p11, %p7123_p10 }
  0x2d   : > { %7131 = shalt.err (!%p7128_p12)
}
  0x2e   : > { %s7132_s25 = scalar_lea.vmem %s471_s19, 32  ;;  %p7140_p5 = scmp.lt.s32.totalorder %s471_s19, %s471_s19 }
  0x2f   : > { %p7133_p13 = scmp.ne.s32.totalorder %s471_s19, %s7132_s25  ;;  %p7141_p4 = scmp.lt.s32.totalorder %s7132_s25, %s7132_s25 }
  0x31   : > { %p7135_p0 = pnand %p7133_p13, %p7904_p8  ;;  %p7142_p1 = por %p7141_p4, %p7140_p5 }
  0x33   : > { %p7136_p2 = pneg %p7135_p0 }
  0x35   : > { %p7143_p3 = pnand %p7142_p1, %p7136_p2 }
  0x37   : > { %7146 = shalt.err (!%p7143_p3)
}
  0x38   : > { %6349 = dma.hbm_to_vmem [thread:$0]  (!%p7890_p6), %s8752_s0, 32, %s471_s19, [#allocation12]  }
  0x39   : > { %s8754_s3 = sld [smem:[#allocation57_spill]] }
  0x3f   : > { %s7147_s26 = scalar_lea.hbm %s8754_s3, 4096 }
  0x40   : > { %p7148_p7 = scmp.ne.s32.totalorder %s8754_s3, %s7147_s26  ;;  %p7154_p1 = scmp.lt.u32.totalorder %s7147_s26, %s8754_s3 }
  0x42   : > { %p7150_p9 = pnand %p7148_p7, %p7904_p8 }
  0x44   : > { %p7151_p4 = pneg %p7150_p9 }
  0x46   : > { %p7156_p3 = pnand %p7154_p1, %p7151_p4 }
  0x48   : > { %7159 = shalt.err (!%p7156_p3)
}
  0x49   : > { %s7160_s19 = scalar_lea.vmem %s7886_s22, 4096  ;;  %p7168_p13 = scmp.lt.s32.totalorder %s7886_s22, %s7886_s22 }
  0x4a   : > { %p7161_p10 = scmp.ne.s32.totalorder %s7886_s22, %s7160_s19  ;;  %p7169_p0 = scmp.lt.s32.totalorder %s7160_s19, %s7160_s19 }
  0x4c   : > { %p7163_p11 = pnand %p7161_p10, %p7904_p8  ;;  %p7170_p2 = por %p7169_p0, %p7168_p13 }
  0x4e   : > { %p7164_p12 = pneg %p7163_p11 }
  0x50   : > { %p7171_p5 = pnand %p7170_p2, %p7164_p12 }
  0x52   : > { %7174 = shalt.err (!%p7171_p5)
}
  0x53   : > { %s8732_s28 = smov 128   ;;  %s8734_s29 = smov 8  }
  0x54   : > { %6355 = dma.hbm_to_vmem [thread:$0]  (!%p7890_p6), %s8754_s3, 4096, %s7886_s22, [#allocation15], %s8732_s28, %s8732_s28, %s8734_s29  }
  0x55   : > { %s8755_s5 = sld [smem:[#allocation58_spill]] }
  0x5b   : > { %s7175_s26 = scalar_lea.hbm %s8755_s5, 96 }
  0x5c   : > { %p7176_p7 = scmp.ne.s32.totalorder %s8755_s5, %s7175_s26  ;;  %p7182_p1 = scmp.lt.u32.totalorder %s7175_s26, %s8755_s5 }
  0x5e   : > { %p7178_p9 = pnand %p7176_p7, %p7904_p8 }
  0x60   : > { %p7179_p4 = pneg %p7178_p9 }
  0x62   : > { %p7184_p3 = pnand %p7182_p1, %p7179_p4 }
  0x64   : > { %7187 = shalt.err (!%p7184_p3)
}
  0x65   : > { %s7188_s22 = scalar_lea.vmem %s7894_s24, 96  ;;  %p7196_p13 = scmp.lt.s32.totalorder %s7894_s24, %s7894_s24 }
  0x66   : > { %p7189_p10 = scmp.ne.s32.totalorder %s7894_s24, %s7188_s22  ;;  %p7197_p0 = scmp.lt.s32.totalorder %s7188_s22, %s7188_s22 }
  0x68   : > { %p7191_p11 = pnand %p7189_p10, %p7904_p8  ;;  %p7198_p2 = por %p7197_p0, %p7196_p13 }
  0x6a   : > { %p7192_p12 = pneg %p7191_p11 }
  0x6c   : > { %p7199_p5 = pnand %p7198_p2, %p7192_p12 }
  0x6e   : > { %7202 = shalt.err (!%p7199_p5)
}
  0x6f   : > { %6361 = dma.hbm_to_vmem [thread:$0]  (!%p7890_p6), %s8755_s5, 96, %s7894_s24, [#allocation18]  }
  0x70   : > { %s7734_s20 = smov [#allocation20]   ;;  %s7735_s1 = smov [#allocation23]  }
  0x71   : > { %s541_s18 = sshll.u32 %s7734_s20, 4  ;;  %s566_s26 = sshll.u32 %s7735_s1, 4  ;;  %s542_s18 = int_to_ptr.vmem [resolvable:$true] %s541_s18  ;;  %s567_s26 = int_to_ptr.vmem [resolvable:$true] %s566_s26 }
  0x72   : > { %s8756_s7 = sld [smem:[#allocation59_spill]] }
  0x78   : > { %s7203_s19 = scalar_lea.hbm %s8756_s7, 4096 }
  0x79   : > { %p7204_p7 = scmp.ne.s32.totalorder %s8756_s7, %s7203_s19  ;;  %p7210_p1 = scmp.lt.u32.totalorder %s7203_s19, %s8756_s7 }
  0x7b   : > { %p7206_p9 = pnand %p7204_p7, %p7904_p8 }
  0x7d   : > { %p7207_p4 = pneg %p7206_p9 }
  0x7f   : > { %p7212_p3 = pnand %p7210_p1, %p7207_p4 }
  0x81   : > { %7215 = shalt.err (!%p7212_p3)
}
  0x82   : > { %s7216_s24 = scalar_lea.vmem %s542_s18, 4096  ;;  %p7224_p13 = scmp.lt.s32.totalorder %s542_s18, %s542_s18 }
  0x83   : > { %p7217_p10 = scmp.ne.s32.totalorder %s542_s18, %s7216_s24  ;;  %p7225_p0 = scmp.lt.s32.totalorder %s7216_s24, %s7216_s24 }
  0x85   : > { %p7219_p11 = pnand %p7217_p10, %p7904_p8  ;;  %p7226_p2 = por %p7225_p0, %p7224_p13 }
  0x87   : > { %p7220_p12 = pneg %p7219_p11 }
  0x89   : > { %p7227_p5 = pnand %p7226_p2, %p7220_p12 }
  0x8b   : > { %7230 = shalt.err (!%p7227_p5)
}
  0x8c   : > { %s8757_s28 = smov 8   ;;  %s8758_s27 = smov 128  }
  0x8d   : > { %6367 = dma.hbm_to_vmem [thread:$0]  (!%p7890_p6), %s8756_s7, 4096, %s542_s18, [#allocation21], %s8758_s27, %s8758_s27, %s8757_s28  }
  0x8e   : > { %s8759_s9 = sld [smem:[#allocation60_spill]] }
  0x94   : > { %s7231_s25 = scalar_lea.hbm %s8759_s9, 128 }
  0x95   : > { %p7232_p7 = scmp.ne.s32.totalorder %s8759_s9, %s7231_s25  ;;  %p7238_p1 = scmp.lt.u32.totalorder %s7231_s25, %s8759_s9 }
  0x97   : > { %p7234_p9 = pnand %p7232_p7, %p7904_p8 }
  0x99   : > { %p7235_p4 = pneg %p7234_p9 }
  0x9b   : > { %p7240_p3 = pnand %p7238_p1, %p7235_p4 }
  0x9d   : > { %7243 = shalt.err (!%p7240_p3)
}
  0x9e   : > { %s7244_s29 = scalar_lea.vmem %s567_s26, 128  ;;  %p7252_p13 = scmp.lt.s32.totalorder %s567_s26, %s567_s26 }
  0x9f   : > { %p7245_p10 = scmp.ne.s32.totalorder %s567_s26, %s7244_s29  ;;  %p7253_p0 = scmp.lt.s32.totalorder %s7244_s29, %s7244_s29 }
  0xa1   : > { %p7247_p11 = pnand %p7245_p10, %p7904_p8  ;;  %p7254_p2 = por %p7253_p0, %p7252_p13 }
  0xa3   : > { %p7248_p12 = pneg %p7247_p11 }
  0xa5   : > { %p7255_p5 = pnand %p7254_p2, %p7248_p12 }
  0xa7   : > { %7258 = shalt.err (!%p7255_p5)
}
  0xa8   : > { %6373 = dma.hbm_to_vmem [thread:$0]  (!%p7890_p6), %s8759_s9, 128, %s567_s26, [#allocation24]  }
  0xa9   : > { %s7736_s1 = smov [#allocation26]   ;;  %s7737_s25 = smov [#allocation29]  }
  0xaa   : > { %s588_s23 = sshll.u32 %s7736_s1, 4  ;;  %s610_s19 = sshll.u32 %s7737_s25, 4  ;;  %s589_s23 = int_to_ptr.vmem [resolvable:$true] %s588_s23  ;;  %s611_s19 = int_to_ptr.vmem [resolvable:$true] %s610_s19 }
  0xab   : > { %s7259_s24 = scalar_lea.hbm %s8711_s11, 32 }
  0xac   : > { %p7260_p7 = scmp.ne.s32.totalorder %s8711_s11, %s7259_s24  ;;  %p7266_p1 = scmp.lt.u32.totalorder %s7259_s24, %s8711_s11 }
  0xae   : > { %p7262_p9 = pnand %p7260_p7, %p7904_p8 }
  0xb0   : > { %p7263_p4 = pneg %p7262_p9 }
  0xb2   : > { %p7268_p3 = pnand %p7266_p1, %p7263_p4 }
  0xb4   : > { %7271 = shalt.err (!%p7268_p3)
}
  0xb5   : > { %s7272_s26 = scalar_lea.vmem %s589_s23, 32  ;;  %p7280_p13 = scmp.lt.s32.totalorder %s589_s23, %s589_s23 }
  0xb6   : > { %p7273_p10 = scmp.ne.s32.totalorder %s589_s23, %s7272_s26  ;;  %p7281_p0 = scmp.lt.s32.totalorder %s7272_s26, %s7272_s26 }
  0xb8   : > { %p7275_p11 = pnand %p7273_p10, %p7904_p8  ;;  %p7282_p2 = por %p7281_p0, %p7280_p13 }
  0xba   : > { %p7276_p12 = pneg %p7275_p11 }
  0xbc   : > { %p7283_p5 = pnand %p7282_p2, %p7276_p12 }
  0xbe   : > { %7286 = shalt.err (!%p7283_p5)
}
  0xbf   : > { %6379 = dma.hbm_to_vmem [thread:$0]  (!%p7890_p6), %s8711_s11, 32, %s589_s23, [#allocation27]  }
  0xc0   : > { %s7287_s25 = scalar_lea.hbm %s8713_s13, 32 }
  0xc1   : > { %p7288_p7 = scmp.ne.s32.totalorder %s8713_s13, %s7287_s25  ;;  %p7294_p1 = scmp.lt.u32.totalorder %s7287_s25, %s8713_s13 }
  0xc3   : > { %p7290_p9 = pnand %p7288_p7, %p7904_p8 }
  0xc5   : > { %p7291_p4 = pneg %p7290_p9 }
  0xc7   : > { %p7296_p3 = pnand %p7294_p1, %p7291_p4 }
  0xc9   : > { %7299 = shalt.err (!%p7296_p3)
}
  0xca   : > { %s7300_s18 = scalar_lea.vmem %s611_s19, 32  ;;  %p7308_p13 = scmp.lt.s32.totalorder %s611_s19, %s611_s19 }
  0xcb   : > { %p7301_p10 = scmp.ne.s32.totalorder %s611_s19, %s7300_s18  ;;  %p7309_p0 = scmp.lt.s32.totalorder %s7300_s18, %s7300_s18 }
  0xcd   : > { %p7303_p11 = pnand %p7301_p10, %p7904_p8  ;;  %p7310_p2 = por %p7309_p0, %p7308_p13 }
  0xcf   : > { %p7304_p12 = pneg %p7303_p11 }
  0xd1   : > { %p7311_p5 = pnand %p7310_p2, %p7304_p12 }
  0xd3   : > { %7314 = shalt.err (!%p7311_p5)
}
  0xd4   : > { %6385 = dma.hbm_to_vmem [thread:$0]  (!%p7890_p6), %s8713_s13, 32, %s611_s19, [#allocation30]  }
  0xd5   : > { %s7738_s3 = smov [#allocation32]   ;;  %s7739_s5 = smov [#allocation13]  }
  0xd6   : > { %s631_s20 = sshll.u32 %s7738_s3, 4  ;;  %s481_s1 = sshll.u32 %s7739_s5, 4  ;;  %s632_s20 = int_to_ptr.vmem [resolvable:$true] %s631_s20  ;;  %s482_s1 = int_to_ptr.vmem [resolvable:$true] %s481_s1 }
  0xd7   : > { %s7315_s0 = scalar_lea.hbm %s8715_s15, 4096 }
  0xd8   : > { %p7316_p7 = scmp.ne.s32.totalorder %s8715_s15, %s7315_s0  ;;  %p7322_p1 = scmp.lt.u32.totalorder %s7315_s0, %s8715_s15 }
  0xda   : > { %p7318_p9 = pnand %p7316_p7, %p7904_p8 }
  0xdc   : > { %p7319_p4 = pneg %p7318_p9 }
  0xde   : > { %p7324_p3 = pnand %p7322_p1, %p7319_p4 }
  0xe0   : > { %7327 = shalt.err (!%p7324_p3)
}
  0xe1   : > { %s7328_s19 = scalar_lea.vmem %s632_s20, 4096  ;;  %p7336_p13 = scmp.lt.s32.totalorder %s632_s20, %s632_s20 }
  0xe2   : > { %p7329_p10 = scmp.ne.s32.totalorder %s632_s20, %s7328_s19  ;;  %p7337_p0 = scmp.lt.s32.totalorder %s7328_s19, %s7328_s19 }
  0xe4   : > { %p7331_p11 = pnand %p7329_p10, %p7904_p8  ;;  %p7338_p2 = por %p7337_p0, %p7336_p13 }
  0xe6   : > { %p7332_p12 = pneg %p7331_p11 }
  0xe8   : > { %p7339_p5 = pnand %p7338_p2, %p7332_p12 }
  0xea   : > { %7342 = shalt.err (!%p7339_p5)
}
  0xeb   : > { %6391 = dma.hbm_to_vmem [thread:$0]  (!%p7890_p6), %s8715_s15, 4096, %s632_s20, [#allocation33], %s8758_s27, %s8758_s27, %s8757_s28  }
  0xec   : > { %s8760_s22 = sld [smem:[#allocation56_spill]] }
  0xf2   : > { %s7343_s0 = scalar_lea.hbm %s8760_s22, 32 }
  0xf3   : > { %p7344_p7 = scmp.ne.s32.totalorder %s8760_s22, %s7343_s0  ;;  %p7350_p1 = scmp.lt.u32.totalorder %s7343_s0, %s8760_s22 }
  0xf5   : > { %p7346_p9 = pnand %p7344_p7, %p7904_p8 }
  0xf7   : > { %p7347_p4 = pneg %p7346_p9 }
  0xf9   : > { %p7352_p3 = pnand %p7350_p1, %p7347_p4 }
  0xfb   : > { %7355 = shalt.err (!%p7352_p3)
}
  0xfc   : > { %s7356_s19 = scalar_lea.vmem %s482_s1, 32  ;;  %p7364_p13 = scmp.lt.s32.totalorder %s482_s1, %s482_s1 }
  0xfd   : > { %p7357_p10 = scmp.ne.s32.totalorder %s482_s1, %s7356_s19  ;;  %p7365_p0 = scmp.lt.s32.totalorder %s7356_s19, %s7356_s19 }
  0xff   : > { %p7359_p11 = pnand %p7357_p10, %p7904_p8  ;;  %p7366_p2 = por %p7365_p0, %p7364_p13 }
 0x101   : > { %p7360_p12 = pneg %p7359_p11 }
 0x103   : > { %p7367_p5 = pnand %p7366_p2, %p7360_p12 }
 0x105   : > { %7370 = shalt.err (!%p7367_p5)
}
 0x106   : > { %6352 = dma.hbm_to_vmem [thread:$0]  (!%p7890_p6), %s8760_s22, 32, %s482_s1, [#allocation12]  }
 0x107   : > { %s7740_s3 = smov [#allocation16]   ;;  %s7371_s24 = scalar_lea.hbm %s8704_s4, 9216 }
 0x108   : > { %s504_s5 = sshll.u32 %s7740_s3, 4  ;;  %p7372_p7 = scmp.ne.s32.totalorder %s8704_s4, %s7371_s24  ;;  %s505_s5 = int_to_ptr.vmem [resolvable:$true] %s504_s5 }
 0x109   : > { %p7378_p1 = scmp.lt.u32.totalorder %s7371_s24, %s8704_s4 }
 0x10a   : > { %p7374_p9 = pnand %p7372_p7, %p7904_p8 }
 0x10c   : > { %p7375_p4 = pneg %p7374_p9 }
 0x10e   : > { %p7380_p3 = pnand %p7378_p1, %p7375_p4 }
 0x110   : > { %7383 = shalt.err (!%p7380_p3)
}
 0x111   : > { %s7384_s1 = scalar_lea.vmem %s505_s5, 9216  ;;  %p7392_p13 = scmp.lt.s32.totalorder %s505_s5, %s505_s5 }
 0x112   : > { %p7385_p10 = scmp.ne.s32.totalorder %s505_s5, %s7384_s1  ;;  %p7393_p0 = scmp.lt.s32.totalorder %s7384_s1, %s7384_s1 }
 0x114   : > { %p7387_p11 = pnand %p7385_p10, %p7904_p8  ;;  %p7394_p2 = por %p7393_p0, %p7392_p13 }
 0x116   : > { %p7388_p12 = pneg %p7387_p11 }
 0x118   : > { %p7395_p5 = pnand %p7394_p2, %p7388_p12 }
 0x11a   : > { %7398 = shalt.err (!%p7395_p5)
}
 0x11b   : > { %s7741_s20 = smov 384   ;;  %s7742_s26 = smov 24  }
 0x11c   : > { %6358 = dma.hbm_to_vmem [thread:$0]  (!%p7890_p6), %s8704_s4, 9216, %s505_s5, [#allocation15], %s7741_s20, %s7741_s20, %s7742_s26  }
 0x11d   : > { %s7743_s0 = smov [#allocation19]   ;;  %s7744_s29 = smov [#allocation22]  }
 0x11e   : > { %s528_s24 = sshll.u32 %s7743_s0, 4  ;;  %s555_s18 = sshll.u32 %s7744_s29, 4  ;;  %s529_s24 = int_to_ptr.vmem [resolvable:$true] %s528_s24  ;;  %s8101_s18 = int_to_ptr.vmem [resolvable:$true] %s555_s18 }
 0x11f   : > { %s7399_s1 = scalar_lea.hbm %s8706_s6, 12288 }
 0x120   : > { %p7400_p7 = scmp.ne.s32.totalorder %s8706_s6, %s7399_s1  ;;  %p7406_p1 = scmp.lt.u32.totalorder %s7399_s1, %s8706_s6 }
 0x122   : > { %p7402_p9 = pnand %p7400_p7, %p7904_p8 }
 0x124   : > { %p7403_p4 = pneg %p7402_p9 }
 0x126   : > { %p7408_p3 = pnand %p7406_p1, %p7403_p4 }
 0x128   : > { %7411 = shalt.err (!%p7408_p3)
}
 0x129   : > { %s7412_s20 = scalar_lea.vmem %s529_s24, 12288  ;;  %p7420_p13 = scmp.lt.s32.totalorder %s529_s24, %s529_s24 }
 0x12a   : > { %p7413_p10 = scmp.ne.s32.totalorder %s529_s24, %s7412_s20  ;;  %p7421_p0 = scmp.lt.s32.totalorder %s7412_s20, %s7412_s20 }
 0x12c   : > { %p7415_p11 = pnand %p7413_p10, %p7904_p8  ;;  %p7422_p2 = por %p7421_p0, %p7420_p13 }
 0x12e   : > { %p7416_p12 = pneg %p7415_p11 }
 0x130   : > { %p7423_p5 = pnand %p7422_p2, %p7416_p12 }
 0x132   : > { %7426 = shalt.err (!%p7423_p5)
}
 0x133   : > { %6364 = dma.hbm_to_vmem [thread:$0]  (!%p7890_p6), %s8706_s6, 12288, %s529_s24, [#allocation18], %s8758_s27, %s8758_s27, %s8757_s28  }
 0x134   : > { %s7427_s0 = scalar_lea.hbm %s8708_s8, 32 }
 0x135   : > { %p7428_p7 = scmp.ne.s32.totalorder %s8708_s8, %s7427_s0  ;;  %p7434_p1 = scmp.lt.u32.totalorder %s7427_s0, %s8708_s8 }
 0x137   : > { %p7430_p9 = pnand %p7428_p7, %p7904_p8 }
 0x139   : > { %p7431_p4 = pneg %p7430_p9 }
 0x13b   : > { %p7436_p3 = pnand %p7434_p1, %p7431_p4 }
 0x13d   : > { %7439 = shalt.err (!%p7436_p3)
}
 0x13e   : > { %s7440_s24 = scalar_lea.vmem %s8101_s18, 32  ;;  %p7448_p13 = scmp.lt.s32.totalorder %s8101_s18, %s8101_s18 }
 0x13f   : > { %p7441_p10 = scmp.ne.s32.totalorder %s8101_s18, %s7440_s24  ;;  %p7449_p0 = scmp.lt.s32.totalorder %s7440_s24, %s7440_s24 }
 0x141   : > { %p7443_p11 = pnand %p7441_p10, %p7904_p8  ;;  %p7450_p2 = por %p7449_p0, %p7448_p13 }
 0x143   : > { %p7444_p12 = pneg %p7443_p11 }
 0x145   : > { %p7451_p5 = pnand %p7450_p2, %p7444_p12 }
 0x147   : > { %7454 = shalt.err (!%p7451_p5)
}
 0x148   : > { %6370 = dma.hbm_to_vmem [thread:$0]  (!%p7890_p6), %s8708_s8, 32, %s8101_s18, [#allocation21]  }
 0x149   : > { %s7745_s20 = smov [#allocation25]   ;;  %s7746_s9 = smov [#allocation28]  }
 0x14a   : > { %s577_s7 = sshll.u32 %s7745_s20, 4  ;;  %s599_s26 = sshll.u32 %s7746_s9, 4  ;;  %s578_s7 = int_to_ptr.vmem [resolvable:$true] %s577_s7  ;;  %s8147_s26 = int_to_ptr.vmem [resolvable:$true] %s599_s26 }
 0x14b   : > { %s7455_s29 = scalar_lea.hbm %s8710_s10, 128 }
 0x14c   : > { %p7456_p7 = scmp.ne.s32.totalorder %s8710_s10, %s7455_s29  ;;  %p7462_p1 = scmp.lt.u32.totalorder %s7455_s29, %s8710_s10 }
 0x14e   : > { %p7458_p9 = pnand %p7456_p7, %p7904_p8 }
 0x150   : > { %p7459_p4 = pneg %p7458_p9 }
 0x152   : > { %p7464_p3 = pnand %p7462_p1, %p7459_p4 }
 0x154   : > { %7467 = shalt.err (!%p7464_p3)
}
 0x155   : > { %s7468_s24 = scalar_lea.vmem %s578_s7, 128  ;;  %p7476_p13 = scmp.lt.s32.totalorder %s578_s7, %s578_s7 }
 0x156   : > { %p7469_p10 = scmp.ne.s32.totalorder %s578_s7, %s7468_s24  ;;  %p7477_p0 = scmp.lt.s32.totalorder %s7468_s24, %s7468_s24 }
 0x158   : > { %p7471_p11 = pnand %p7469_p10, %p7904_p8  ;;  %p7478_p2 = por %p7477_p0, %p7476_p13 }
 0x15a   : > { %p7472_p12 = pneg %p7471_p11 }
 0x15c   : > { %p7479_p5 = pnand %p7478_p2, %p7472_p12 }
 0x15e   : > { %7482 = shalt.err (!%p7479_p5)
}
 0x15f   : > { %6376 = dma.hbm_to_vmem [thread:$0]  (!%p7890_p6), %s8710_s10, 128, %s578_s7, [#allocation24]  }
 0x160   : > { %s7483_s25 = scalar_lea.hbm %s8712_s12, 32 }
 0x161   : > { %p7484_p7 = scmp.ne.s32.totalorder %s8712_s12, %s7483_s25  ;;  %p7490_p1 = scmp.lt.u32.totalorder %s7483_s25, %s8712_s12 }
 0x163   : > { %p7486_p9 = pnand %p7484_p7, %p7904_p8 }
 0x165   : > { %p7487_p4 = pneg %p7486_p9 }
 0x167   : > { %p7492_p3 = pnand %p7490_p1, %p7487_p4 }
 0x169   : > { %7495 = shalt.err (!%p7492_p3)
}
 0x16a   : > { %s7496_s7 = scalar_lea.vmem %s8147_s26, 32  ;;  %p7504_p13 = scmp.lt.s32.totalorder %s8147_s26, %s8147_s26 }
 0x16b   : > { %p7497_p10 = scmp.ne.s32.totalorder %s8147_s26, %s7496_s7  ;;  %p7505_p0 = scmp.lt.s32.totalorder %s7496_s7, %s7496_s7 }
 0x16d   : > { %p7499_p11 = pnand %p7497_p10, %p7904_p8  ;;  %p7506_p2 = por %p7505_p0, %p7504_p13 }
 0x16f   : > { %p7500_p12 = pneg %p7499_p11 }
 0x171   : > { %p7507_p5 = pnand %p7506_p2, %p7500_p12 }
 0x173   : > { %7510 = shalt.err (!%p7507_p5)
}
 0x174   : > { %6382 = dma.hbm_to_vmem [thread:$0]  (!%p7890_p6), %s8712_s12, 32, %s8147_s26, [#allocation27]  }
 0x175   : > { %s7747_s24 = smov [#allocation31]   ;;  %s7748_s5 = smov [#allocation34]  }
 0x176   : > { %s621_s3 = sshll.u32 %s7747_s24, 4  ;;  %s644_s20 = sshll.u32 %s7748_s5, 4  ;;  %s622_s3 = int_to_ptr.vmem [resolvable:$true] %s621_s3  ;;  %s8190_s20 = int_to_ptr.vmem [resolvable:$true] %s644_s20 }
 0x177   : > { %s7511_s0 = scalar_lea.hbm %s8714_s14, 32 }
 0x178   : > { %p7512_p7 = scmp.ne.s32.totalorder %s8714_s14, %s7511_s0  ;;  %p7518_p1 = scmp.lt.u32.totalorder %s7511_s0, %s8714_s14 }
 0x17a   : > { %p7514_p9 = pnand %p7512_p7, %p7904_p8 }
 0x17c   : > { %p7515_p4 = pneg %p7514_p9 }
 0x17e   : > { %p7520_p3 = pnand %p7518_p1, %p7515_p4 }
 0x180   : > { %7523 = shalt.err (!%p7520_p3)
}
 0x181   : > { %s7524_s7 = scalar_lea.vmem %s622_s3, 32  ;;  %p7532_p13 = scmp.lt.s32.totalorder %s622_s3, %s622_s3 }
 0x182   : > { %p7525_p10 = scmp.ne.s32.totalorder %s622_s3, %s7524_s7  ;;  %p7533_p0 = scmp.lt.s32.totalorder %s7524_s7, %s7524_s7 }
 0x184   : > { %p7527_p11 = pnand %p7525_p10, %p7904_p8  ;;  %p7534_p2 = por %p7533_p0, %p7532_p13 }
 0x186   : > { %p7528_p12 = pneg %p7527_p11 }
 0x188   : > { %p7535_p5 = pnand %p7534_p2, %p7528_p12 }
 0x18a   : > { %7538 = shalt.err (!%p7535_p5)
}
 0x18b   : > { %6388 = dma.hbm_to_vmem [thread:$0]  (!%p7890_p6), %s8714_s14, 32, %s622_s3, [#allocation30]  }
 0x18c   : > { %s7539_s9 = scalar_lea.hbm %s8716_s16, 16384 }
 0x18d   : > { %p7540_p7 = scmp.ne.s32.totalorder %s8716_s16, %s7539_s9  ;;  %p7546_p1 = scmp.lt.u32.totalorder %s7539_s9, %s8716_s16 }
 0x18f   : > { %p7542_p9 = pnand %p7540_p7, %p7904_p8 }
 0x191   : > { %p7543_p4 = pneg %p7542_p9 }
 0x193   : > { %p7548_p3 = pnand %p7546_p1, %p7543_p4 }
 0x195   : > { %7551 = shalt.err (!%p7548_p3)
}
 0x196   : > { %s7552_s3 = scalar_lea.vmem %s8190_s20, 16384  ;;  %p7560_p13 = scmp.lt.s32.totalorder %s8190_s20, %s8190_s20 }
 0x197   : > { %p7553_p10 = scmp.ne.s32.totalorder %s8190_s20, %s7552_s3  ;;  %p7561_p0 = scmp.lt.s32.totalorder %s7552_s3, %s7552_s3 }
 0x199   : > { %p7555_p11 = pnand %p7553_p10, %p7904_p8  ;;  %p7562_p2 = por %p7561_p0, %p7560_p13 }
 0x19b   : > { %p7556_p12 = pneg %p7555_p11 }
 0x19d   : > { %p7563_p5 = pnand %p7562_p2, %p7556_p12 }
 0x19f   : > { %7566 = shalt.err (!%p7563_p5)
}
 0x1a0   : > { %s7749_s19 = smov 512   ;;  %s7750_s26 = smov 32  }
 0x1a1   : > { %6394 = dma.hbm_to_vmem [thread:$0]  (!%p7890_p6), %s8716_s16, 16384, %s8190_s20, [#allocation33], %s7749_s19, %s7749_s19, %s7750_s26  }
 0x1a2   : > { %s7751_s18 = smov [#allocation35]   ;;  %s7567_s25 = scalar_lea.hbm %s8717_s17, 16384 }
 0x1a3   : > { %s657_s24 = sshll.u32 %s7751_s18, 4  ;;  %p7568_p7 = scmp.ne.s32.totalorder %s8717_s17, %s7567_s25  ;;  %s658_s24 = int_to_ptr.vmem [resolvable:$true] %s657_s24 }
 0x1a4   : > { %p7574_p1 = scmp.lt.u32.totalorder %s7567_s25, %s8717_s17 }
 0x1a5   : > { %p7570_p9 = pnand %p7568_p7, %p7904_p8 }
 0x1a7   : > { %p7571_p4 = pneg %p7570_p9 }
 0x1a9   : > { %p7576_p3 = pnand %p7574_p1, %p7571_p4 }
 0x1ab   : > { %7579 = shalt.err (!%p7576_p3)
}
 0x1ac   : > { %s7580_s20 = scalar_lea.vmem %s658_s24, 16384  ;;  %p7588_p13 = scmp.lt.s32.totalorder %s658_s24, %s658_s24 }
 0x1ad   : > { %p7581_p10 = scmp.ne.s32.totalorder %s658_s24, %s7580_s20  ;;  %p7589_p0 = scmp.lt.s32.totalorder %s7580_s20, %s7580_s20 }
 0x1af   : > { %p7583_p11 = pnand %p7581_p10, %p7904_p8  ;;  %p7590_p2 = por %p7589_p0, %p7588_p13 }
 0x1b1   : > { %p7584_p12 = pneg %p7583_p11 }
 0x1b3   : > { %p7591_p5 = pnand %p7590_p2, %p7584_p12 }
 0x1b5   : > { %7594 = shalt.err (!%p7591_p5)
}
 0x1b6   : > { %s8761_s7 = sld [smem:[#allocation51_spill]]  ;;  %s8762_s21 = sld [smem:[#allocation50_spill]] }
 0x1b7   : > { %s8763_s1 = sld [smem:[#allocation49_spill]]  ;;  %s8764_s18 = sld [smem:[#allocation52_spill]] }
 0x1b8   : > { %6397 = dma.hbm_to_vmem [thread:$0]  (!%p7890_p6), %s8717_s17, 16384, %s658_s24, [#allocation36], %s8758_s27, %s8758_s27, %s8757_s28  }
 0x1b9   : > { %s5611_s2 = sadd.s32 4294967294, %s7727_s30   ;;  %s8256_s5 = sadd.s32 1, %s7727_s30  }
 0x1ba   : > { %s47_s25 = ssub.s32 %s7727_s30, %s8256_s5  ;;  %p58_p9 = scmp.eq.s32.totalorder %s7727_s30, 0 }
 0x1bb   : > { %p48_p7 = scmp.eq.s32.totalorder %s47_s25, 0  ;;  %p450_p12 = scmp.eq.s32.totalorder %s5611_s2, 1 }
 0x1bc   : > { %s50_s9 = sadd.s32 1, %s8761_s7  ;;  %p57_p8 = scmp.ne.s32.totalorder %s8761_s7, %s8762_s21 }
 0x1bd   : > { %p63_p4 = scmp.ne.s32.totalorder %s8762_s21, %s8763_s1  ;;  %p444_p1 = scmp.eq.s32.totalorder %s8764_s18, 1 }
 0x1be   : > { %s8268_s0 = scalar_select %p48_p7, %s8761_s7, %s50_s9  }
 0x1bf   : > { %p59_p3 = por %p58_p9, %p57_p8  ;;  %p8765_p10 = scmp.eq.s32.totalorder %s8764_s18, 0 }
 0x1c0   : > { %p8276_p6 = por %p444_p1, %p57_p8  ;;  %p6423_p13 = scmp.lt.s32.totalorder %s7727_s30, 2 }
 0x1c1   : > { %p8272_p11 = por %p8765_p10, %p63_p4  ;;  %s671_s27 = sand.u32 1, %s8761_s7  }
 0x1c2   : > { %s8767_s28 = scalar_select %p8276_p6, 1, 0 }
 0x1c3   : > { %p8282_p0 = por %p450_p12, %p63_p4  ;;  %s5631_s23 = sshll.u32 %s671_s27, 4 }
 0x1c4   : > { %s6186_s3 = sshll.u32 %s7727_s30, 8  ;;  %s8769_s26 = sld [smem:[#allocation54_spill]] }
 0x1c5   : > { %s8768_s24 = scalar_select %p8282_p0, 1, 0 }
 0x1c6   : > { %s675_s1 = scalar_lea.vmem [#allocation8], %s5631_s23  ;;  %p8292_p2 = pnand %p6423_p13, %p59_p3 }
 0x1c7   : > { %s683_s18 = sshll.u32 %s675_s1, 4  ;;  %s672_s7 = scalar_lea.sflag [#allocation9], %s671_s27  ;;  %s8296_s18 = int_to_ptr.vmem [resolvable:$true] %s683_s18 }
 0x1c8   : > { %p7597_p8 = pneg %p8292_p2 }
 0x1ca   : > { %s8290_s21 = scalar_lea.hbm %s8769_s26, %s6186_s3  ;;  %s7600_s3 = scalar_lea.hbm %s8769_s26, 512 }
 0x1cb   : > { %s7595_s9 = scalar_lea.hbm %s8290_s21, 256  ;;  %p7601_p4 = scmp.lt.u32.totalorder %s8290_s21, %s8769_s26 }
 0x1cc   : > { %p7596_p5 = scmp.ne.s32.totalorder %s8290_s21, %s7595_s9  ;;  %p7602_p1 = scmp.lt.u32.totalorder %s7600_s3, %s7595_s9 }
 0x1cd   : > { %p7604_p10 = scmp.lt.u32.totalorder %s7595_s9, %s8290_s21 }
 0x1ce   : > { %p7598_p7 = pnand %p7597_p8, %p7596_p5  ;;  %p7603_p3 = por %p7602_p1, %p7601_p4 }
 0x1d0   : > { %p7599_p9 = pneg %p7598_p7  ;;  %p7605_p12 = por %p7604_p10, %p7603_p3 }
 0x1d2   : > { %p7606_p13 = pnand %p7605_p12, %p7599_p9 }
 0x1d4   : > { %7609 = shalt.err (!%p7606_p13)
}
 0x1d5   : > { %s7610_s27 = scalar_lea.vmem %s8296_s18, 256  ;;  %s7752_s1 = smov [#allocation8]  }
 0x1d6   : > { %p7611_p5 = scmp.ne.s32.totalorder %s8296_s18, %s7610_s27  ;;  %s7615_s25 = sshll.u32 %s7752_s1, 4  ;;  %s7616_s25 = int_to_ptr.vmem [resolvable:$false] %s7615_s25 }
 0x1d7   : > { %s7617_s23 = scalar_lea.vmem %s7616_s25, 512  ;;  %p7618_p6 = scmp.lt.s32.totalorder %s8296_s18, %s7616_s25 }
 0x1d8   : > { %p7613_p7 = pnand %p7611_p5, %p7597_p8  ;;  %p7619_p4 = scmp.lt.s32.totalorder %s7617_s23, %s7610_s27 }
 0x1da   : > { %p7614_p0 = pneg %p7613_p7  ;;  %p7620_p1 = por %p7619_p4, %p7618_p6 }
 0x1dc   : > { %p7621_p3 = pnand %p7620_p1, %p7614_p0 }
 0x1de   : > { %7624 = shalt.err (!%p7621_p3)
}
 0x1df   : > { %6401 = dma.hbm_to_vmem [thread:$0]  (!%p8292_p2), %s8290_s21, 256, %s8296_s18, %s672_s7  }
 0x1e0   : > { %s8771_s9 = sld [smem:[#allocation53_spill]] }
 0x1e6   : > { %p8772_p9 = scmp.ne.s32.totalorder %s8771_s9, 0 }
 0x1e7   : > { %s8773_s3 = sld [smem:[#allocation50_spill]] (!%p8772_p9) }
 0x1e8   : > { %692 = sbr.rel (%p8772_p9) target bundleno = 4094 (0xffe), region = 92 }
 0x1ed   : > { %s8326_s20 = sand.u32 (!%p8772_p9), 1, %s8773_s3  }
 0x1ee   : > { %s5635_s19 = sshll.u32 (!%p8772_p9), %s8326_s20, 4  ;;  %s695_s27 = scalar_lea.sflag (!%p8772_p9), [#allocation9], %s8326_s20 }
 0x1ef   : > { %s8332_s1 = scalar_lea.vmem [#allocation8], %s5635_s19 }
 0x1f0   : > { %7670 = dma.done.wait (%p8272_p11), %s695_s27, 256  }
 0x1f1   : > { %7672 = vsyncadd (%p8272_p11), %s695_s27, 4294967040  ;;  %s8774_s21 = sld [smem:[#allocation52_spill]] }
 0x1f7   : > { %p8775_p6 = scmp.eq.s32.totalorder %s8774_s21, 0 }
 0x1f9   : > { %7674 = dma.done.wait (%p8775_p6), [#allocation12], 64   ;;  %p8776_p0 = pmov %p8775_p6 }
 0x1fb   : > { %7676 = vsyncadd (%p8776_p0), [#allocation12], 4294967232  ;;  %p8777_p2 = pmov %p8776_p0 }
 0x1fc   : > { %p8778_p8 = pmov %p8776_p0 }
 0x1fd   : > { %7678 = dma.done.wait (%p8777_p2), [#allocation15], 13312  }
 0x1fe   : > { %7680 = vsyncadd (%p8778_p8), [#allocation15], 4294953984  ;;  %p8779_p10 = pmov %p8776_p0 }
 0x1ff   : > { %p8780_p12 = pmov %p8776_p0 }
 0x200   : > { %7682 = dma.done.wait (%p8779_p10), [#allocation18], 12384  }
 0x201   : > { %7684 = vsyncadd (%p8780_p12), [#allocation18], 4294954912  ;;  %p8781_p11 = pmov %p8776_p0 }
 0x202   : > { %p8782_p13 = pmov %p8776_p0 }
 0x203   : > { %7686 = dma.done.wait (%p8781_p11), [#allocation21], 4128  }
 0x204   : > { %7688 = vsyncadd (%p8782_p13), [#allocation21], 4294963168  ;;  %p8783_p5 = pmov %p8776_p0 }
 0x205   : > { %p8784_p7 = pmov %p8776_p0 }
 0x206   : > { %7690 = dma.done.wait (%p8783_p5), [#allocation24], 256  }
 0x207   : > { %7692 = vsyncadd (%p8784_p7), [#allocation24], 4294967040  ;;  %p8785_p4 = pmov %p8776_p0 }
 0x208   : > { %p8786_p1 = pmov %p8776_p0 }
 0x209   : > { %7694 = dma.done.wait (%p8785_p4), [#allocation27], 64  }
 0x20a   : > { %7696 = vsyncadd (%p8786_p1), [#allocation27], 4294967232  ;;  %p8787_p3 = pmov %p8776_p0 }
 0x20b   : > { %p8788_p9 = pmov %p8776_p0 }
 0x20c   : > { %7698 = dma.done.wait (%p8787_p3), [#allocation30], 64  }
 0x20d   : > { %7700 = vsyncadd (%p8788_p9), [#allocation30], 4294967232  ;;  %p8789_p6 = pmov %p8776_p0 }
 0x20f   : > { %7702 = dma.done.wait (%p8789_p6), [#allocation33], 20480  }
 0x210   : > { %7704 = vsyncadd (%p8776_p0), [#allocation33], 4294946816  ;;  %p8790_p2 = pmov %p8776_p0 }
 0x211   : > { %p8791_p8 = pmov %p8776_p0 }
 0x212   : > { %7706 = dma.done.wait (%p8790_p2), [#allocation36], 16384  }
 0x213   : > { %7708 = vsyncadd (%p8791_p8), [#allocation36], 4294950912  ;;  %v842_v0 = vld [vmem:[%s8332_s1] sm:$0xff]  ;;  %v843_v1 = vld [vmem:[%s8332_s1 + $0x8] sm:$0xff]  ;;  %v820_v36 = vlaneseq  ;;  %v7753_v41 = vmov 0.0   ;;  %vm1600_vm1 = vcmask 523264  }
 0x214   : > { %v844_v2 = vadd.f32 %v843_v1, %v842_v0  ;;  %v6501_v3 = vld [vmem:[#allocation14 + $0x4] ss:$8 sps:$4 sm:$0xff]   ;;  %v6503_v4 = vld [vmem:[#allocation14] ss:$8 sps:$4 sm:$0xff]   ;;  %v6504_v5 = vld [vmem:[#allocation14 + $0x14] ss:$8 sps:$4 sm:$0xff]  }
 0x215   : > { %1122 = vmatprep.subr.bf16.mxu0 %v6501_v3  ;;  %v6506_v6 = vld [vmem:[#allocation14 + $0x10] ss:$8 sps:$4 sm:$0xff]   ;;  %v6507_v7 = vld [vmem:[#allocation14 + $0x24] ss:$8 sps:$4 sm:$0xff]   ;;  %v6509_v8 = vld [vmem:[#allocation14 + $0x20] ss:$8 sps:$4 sm:$0xff]  }
 0x216   : > { %845 = vadd.xlane.f32.xlu0 %v844_v2  ;;  %1123 = vmatpush1.bf16.msra.mxu0 %v6503_v4  ;;  %v6510_v9 = vld [vmem:[#allocation14 + $0x34] ss:$8 sps:$4 sm:$0xff]   ;;  %v6512_v10 = vld [vmem:[#allocation14 + $0x30] ss:$8 sps:$4 sm:$0xff]   ;;  %v6513_v11 = vld [vmem:[#allocation14 + $0x44] ss:$8 sps:$4 sm:$0xff]  }
 0x217   : > { %1124 = vmatprep.subr.bf16.mxu0 %v6504_v5  ;;  %v6515_v12 = vld [vmem:[#allocation14 + $0x40] ss:$8 sps:$4 sm:$0xff]   ;;  %v6516_v13 = vld [vmem:[#allocation14 + $0x54] ss:$8 sps:$4 sm:$0xff]   ;;  %v6518_v14 = vld [vmem:[#allocation14 + $0x50] ss:$8 sps:$4 sm:$0xff]  }
 0x218   : > { %v6519_v15 = vld [vmem:[#allocation14 + $0x64] ss:$8 sps:$4 sm:$0xff]   ;;  %v6521_v16 = vld [vmem:[#allocation14 + $0x60] ss:$8 sps:$4 sm:$0xff]   ;;  %v6522_v17 = vld [vmem:[#allocation14 + $0x74] ss:$8 sps:$4 sm:$0xff]  }
 0x219   : > { %v6524_v18 = vld [vmem:[#allocation14 + $0x70] ss:$8 sps:$4 sm:$0xff]   ;;  %v6525_v19 = vld [vmem:[#allocation14 + $0x84] ss:$8 sps:$4 sm:$0xff]   ;;  %v6527_v20 = vld [vmem:[#allocation14 + $0x80] ss:$8 sps:$4 sm:$0xff]  }
 0x21a   : > { %1125 = vmatpush1.bf16.msra.mxu0 %v6506_v6  ;;  %v6528_v21 = vld [vmem:[#allocation14 + $0x94] ss:$8 sps:$4 sm:$0xff]   ;;  %v6530_v22 = vld [vmem:[#allocation14 + $0x90] ss:$8 sps:$4 sm:$0xff]   ;;  %v6531_v30 = vld [vmem:[#allocation14 + $0xa4] ss:$8 sps:$4 sm:$0xff]  }
 0x21b   : > { %1126 = vmatprep.subr.bf16.mxu0 %v6507_v7  ;;  %v6533_v31 = vld [vmem:[#allocation14 + $0xa0] ss:$8 sps:$4 sm:$0xff]   ;;  %v6534_v32 = vld [vmem:[#allocation14 + $0xb4] ss:$8 sps:$4 sm:$0xff]   ;;  %v6536_v33 = vld [vmem:[#allocation14 + $0xb0] ss:$8 sps:$4 sm:$0xff]  }
 0x21c   : > { %v6537_v34 = vld [vmem:[#allocation14 + $0xc4] ss:$8 sps:$4 sm:$0xff]   ;;  %v6539_v35 = vld [vmem:[#allocation14 + $0xc0] ss:$8 sps:$4 sm:$0xff]   ;;  %v6540_v37 = vld [vmem:[#allocation14 + $0xd4] ss:$8 sps:$4 sm:$0xff]  }
 0x21d   : > { %v6542_v38 = vld [vmem:[#allocation14 + $0xd0] ss:$8 sps:$4 sm:$0xff]   ;;  %vm8385_vm0 = vcmp.lt.s32.totalorder %v820_v36, 256  ;;  %v6543_v40 = vld [vmem:[#allocation14 + $0xe4] ss:$8 sps:$4 sm:$0xff]   ;;  %s7755_s29 = smov 64  }
 0x21e   : > { %1127 = vmatpush1.bf16.msra.mxu0 %v6509_v8  ;;  %837 = vst.msk [vmem:[#allocation6] sm:$0x3] %vm8385_vm0, %v7753_v41  ;;  %838 = vst.msk [vmem:[#allocation7] sm:$0x3] %vm8385_vm0, %v7753_v41  ;;  %v6545_v42 = vld [vmem:[#allocation14 + $0xe0] ss:$8 sps:$4 sm:$0xff]  }
 0x21f   : > { %1128 = vmatprep.subr.bf16.mxu0 %v6510_v9  ;;  %v6546_v43 = vld [vmem:[#allocation14 + $0xf4] ss:$8 sps:$4 sm:$0xff]   ;;  %v6548_v44 = vld [vmem:[#allocation14 + $0xf0] ss:$8 sps:$4 sm:$0xff]   ;;  %v6552_v46 = vld [vmem:[#allocation16 + $0xc] ss:$24 sps:$4 sm:$0xff]  }
 0x220   : > { %v6551_v45 = vld [vmem:[#allocation16 + $0x4] ss:$24 sps:$4 sm:$0xff]   ;;  %v6554_v47 = vld [vmem:[#allocation16 + $0x8] ss:$24 sps:$4 sm:$0xff]   ;;  %1645 = vmatprep.subr.bf16.mxu1 %v6552_v46  ;;  %v6560_v49 = vld [vmem:[#allocation16 + $0x38] ss:$24 sps:$4 sm:$0xff]  }
 0x221   : > { %1646 = vmatpush1.bf16.msra.mxu1 %v6554_v47  ;;  %v6558_v48 = vld [vmem:[#allocation16 + $0x3c] ss:$24 sps:$4 sm:$0xff]   ;;  %v6564_v50 = vld [vmem:[#allocation16 + $0x6c] ss:$24 sps:$4 sm:$0xff]   ;;  %v6566_v51 = vld [vmem:[#allocation16 + $0x68] ss:$24 sps:$4 sm:$0xff]  }
 0x222   : > { %1129 = vmatpush1.bf16.msra.mxu0 %v6512_v10  ;;  %1647 = vmatprep.subr.bf16.mxu1 %v6558_v48  ;;  %v6570_v52 = vld [vmem:[#allocation16 + $0x9c] ss:$24 sps:$4 sm:$0xff]   ;;  %v6572_v53 = vld [vmem:[#allocation16 + $0x98] ss:$24 sps:$4 sm:$0xff]   ;;  %v6576_v54 = vld [vmem:[#allocation16 + $0xcc] ss:$24 sps:$4 sm:$0xff]  }
 0x223   : > { %1130 = vmatprep.subr.bf16.mxu0 %v6513_v11  ;;  %v6578_v55 = vld [vmem:[#allocation16 + $0xc8] ss:$24 sps:$4 sm:$0xff]   ;;  %v6582_v56 = vld [vmem:[#allocation16 + $0xfc] ss:$24 sps:$4 sm:$0xff]   ;;  %v6584_v57 = vld [vmem:[#allocation16 + $0xf8] ss:$24 sps:$4 sm:$0xff]  }
 0x224   : > { %v6588_v58 = vld [vmem:[#allocation16 + $0x12c] ss:$24 sps:$4 sm:$0xff]   ;;  %v6590_v59 = vld [vmem:[#allocation16 + $0x128] ss:$24 sps:$4 sm:$0xff]   ;;  %v6594_v60 = vld [vmem:[#allocation16 + $0x15c] ss:$24 sps:$4 sm:$0xff]  }
 0x225   : > { %1648 = vmatpush1.bf16.msra.mxu1 %v6560_v49  ;;  %v6596_v61 = vld [vmem:[#allocation16 + $0x158] ss:$24 sps:$4 sm:$0xff]   ;;  %v826_v4 = vld [vmem:[#allocation11] sm:$0x3]  ;;  %v827_v5 = vld [vmem:[#allocation13] sm:$0x3] }
 0x226   : > { %1131 = vmatpush1.bf16.msra.mxu0 %v6515_v12  ;;  %1649 = vmatprep.subr.bf16.mxu1 %v6564_v50  ;;  %v7754_v6 = vmov 1966171168   ;;  %v6591_v46 = vld [vmem:[#allocation16 + $0x150] ss:$24 sps:$4 sm:$0xff]   ;;  %v6599_v47 = vld [vmem:[#allocation16 + $0x184] ss:$24 sps:$4 sm:$0xff]  }
 0x227   : > { %1132 = vmatprep.subr.bf16.mxu0 %v6516_v13  ;;  %v909_v7 = vunpack.c.l.s4 %v7754_v6  ;;  %v6597_v48 = vld [vmem:[#allocation16 + $0x180] ss:$24 sps:$4 sm:$0xff]   ;;  %v6600_v49 = vld [vmem:[#allocation16 + $0x18c] ss:$24 sps:$4 sm:$0xff]   ;;  %vm7756_vm3 = vmmov 0   ;;  %vm2539_vm4 = vcmask 64512  }
 0x228   : > { %v6602_v50 = vld [vmem:[#allocation16 + $0x188] ss:$24 sps:$4 sm:$0xff]   ;;  %vm2685_vm5 = vcmask 1043456   ;;  %s6187_s18 = sshll.u32 %s8774_s21, 8  ;;  %s818_s2 = scalar_lea.vmem [#allocation37], %s5635_s19 }
 0x229   : > { %1650 = vmatpush1.bf16.msra.mxu1 %v6566_v51  ;;  %v6605_v51 = vld [vmem:[#allocation16 + $0x1b4] ss:$24 sps:$4 sm:$0xff]   ;;  %s5379_s7 = sshll.u32 %s818_s2, 4  ;;  %s8794_s9 = sld [smem:[#allocation61_spill]]  ;;  %s8658_s7 = int_to_ptr.vmem [resolvable:$true] %s5379_s7 }
 0x22a   : > { %1133 = vmatpush1.bf16.msra.mxu0 %v6518_v14  ;;  %1651 = vmatprep.subr.bf16.mxu1 %v6570_v52  ;;  %v6603_v52 = vld [vmem:[#allocation16 + $0x1b0] ss:$24 sps:$4 sm:$0xff]   ;;  %s5365_s19 = scalar_lea.sflag [#allocation10], %s8326_s20  ;;  %s7625_s27 = scalar_lea.vmem %s8658_s7, 256 }
 0x22b   : > { %1134 = vmatprep.subr.bf16.mxu0 %v6519_v15  ;;  %v910_v15 = vunpack.c.0.s8 %v909_v7  ;;  %p7626_p10 = scmp.ne.s32.totalorder %s8658_s7, %s7625_s27  ;;  %p8795_p12 = scmp.ne.s32.totalorder %s8767_s28, 0 }
 0x22d   : > { %1652 = vmatpush1.bf16.msra.mxu1 %v6572_v53  ;;  %v6606_v53 = vld [vmem:[#allocation16 + $0x1bc] ss:$24 sps:$4 sm:$0xff]   ;;  %p7627_p11 = pnand %p7626_p10, %p8795_p12 }
 0x22e   : > { %1135 = vmatpush1.bf16.msra.mxu0 %v6521_v16  ;;  %1653 = vmatprep.subr.bf16.mxu1 %v6576_v54  ;;  %v6608_v54 = vld [vmem:[#allocation16 + $0x1b8] ss:$24 sps:$4 sm:$0xff]  }
 0x22f   : > { %1136 = vmatprep.subr.bf16.mxu0 %v6522_v17  ;;  %s8656_s3 = scalar_lea.hbm %s8794_s9, %s6187_s18  ;;  %p7628_p13 = pneg %p7627_p11 }
 0x231   : > { %1654 = vmatpush1.bf16.msra.mxu1 %v6578_v55  ;;  %v6611_v55 = vld [vmem:[#allocation16 + $0x1e4] ss:$24 sps:$4 sm:$0xff]  }
 0x232   : > { %1137 = vmatpush1.bf16.msra.mxu0 %v6524_v18  ;;  %1655 = vmatprep.subr.bf16.mxu1 %v6582_v56  ;;  %v6609_v56 = vld [vmem:[#allocation16 + $0x1e0] ss:$24 sps:$4 sm:$0xff]  }
 0x233   : > { %1138 = vmatprep.subr.bf16.mxu0 %v6525_v19 }
 0x235   : > { %1656 = vmatpush1.bf16.msra.mxu1 %v6584_v57  ;;  %v6612_v57 = vld [vmem:[#allocation16 + $0x1ec] ss:$24 sps:$4 sm:$0xff]  }
 0x236   : > { %1139 = vmatpush1.bf16.msra.mxu0 %v6527_v20  ;;  %1657 = vmatprep.subr.bf16.mxu1 %v6588_v58  ;;  %v6614_v58 = vld [vmem:[#allocation16 + $0x1e8] ss:$24 sps:$4 sm:$0xff]  }
 0x237   : > { %1140 = vmatprep.subr.bf16.mxu0 %v6528_v21 }
 0x239   : > { %1658 = vmatpush1.bf16.msra.mxu1 %v6590_v59  ;;  %v6617_v59 = vld [vmem:[#allocation16 + $0x214] ss:$24 sps:$4 sm:$0xff]  }
 0x23a   : > { %1141 = vmatpush1.bf16.msra.mxu0 %v6530_v22  ;;  %1659 = vmatprep.subr.bf16.mxu1 %v6594_v60  ;;  %v6615_v60 = vld [vmem:[#allocation16 + $0x210] ss:$24 sps:$4 sm:$0xff]  }
 0x23b   : > { %1142 = vmatprep.subr.bf16.mxu0 %v6531_v30 }
 0x23d   : > { %1660 = vmatpush1.bf16.msra.mxu1 %v6596_v61  ;;  %v6618_v61 = vld [vmem:[#allocation16 + $0x21c] ss:$24 sps:$4 sm:$0xff]  }
 0x23e   : > { %1143 = vmatpush1.bf16.msra.mxu0 %v6533_v31  ;;  %v6561_v31 = vld [vmem:[#allocation16 + $0x60] ss:$24 sps:$4 sm:$0xff]   ;;  %1661 = vmatprep.subr.bf16.mxu1 %v6600_v49  ;;  %v6665_v49 = vld [vmem:[#allocation19 + $0x24] ss:$8 sps:$4 sm:$0xff]  }
 0x23f   : > { %1144 = vmatprep.subr.bf16.mxu0 %v6534_v32 }
 0x241   : > { %1662 = vmatpush1.bf16.msra.mxu1 %v6602_v50  ;;  %v6663_v50 = vld [vmem:[#allocation19 + $0x20] ss:$8 sps:$4 sm:$0xff]  }
 0x242   : > { %1145 = vmatpush1.bf16.msra.mxu0 %v6536_v33  ;;  %v6569_v33 = vld [vmem:[#allocation16 + $0x94] ss:$24 sps:$4 sm:$0xff]   ;;  %1663 = vmatprep.subr.bf16.mxu1 %v6606_v53 }
 0x243   : > { %1146 = vmatprep.subr.bf16.mxu0 %v6537_v34  ;;  %v8425_v34 = vld [vmem:[#allocation6] sm:$0x3]  ;;  %v6671_v53 = vld [vmem:[#allocation19 + $0x44] ss:$8 sps:$4 sm:$0xff]  }
 0x245   : > { %1664 = vmatpush1.bf16.msra.mxu1 %v6608_v54  ;;  %v6669_v54 = vld [vmem:[#allocation19 + $0x40] ss:$8 sps:$4 sm:$0xff]  }
 0x246   : > { %1147 = vmatpush1.bf16.msra.mxu0 %v6539_v35  ;;  %v6567_v35 = vld [vmem:[#allocation16 + $0x90] ss:$24 sps:$4 sm:$0xff]   ;;  %1665 = vmatprep.subr.bf16.mxu1 %v6612_v57 }
 0x247   : > { %1148 = vmatprep.subr.bf16.mxu0 %v6540_v37  ;;  %v6575_v37 = vld [vmem:[#allocation16 + $0xc4] ss:$24 sps:$4 sm:$0xff]   ;;  %v6677_v57 = vld [vmem:[#allocation19 + $0x64] ss:$8 sps:$4 sm:$0xff]  }
 0x249   : > { %1666 = vmatpush1.bf16.msra.mxu1 %v6614_v58  ;;  %v6675_v58 = vld [vmem:[#allocation19 + $0x60] ss:$8 sps:$4 sm:$0xff]  }
 0x24a   : > { %1149 = vmatpush1.bf16.msra.mxu0 %v6542_v38  ;;  %v6573_v38 = vld [vmem:[#allocation16 + $0xc0] ss:$24 sps:$4 sm:$0xff]   ;;  %1667 = vmatprep.subr.bf16.mxu1 %v6618_v61  ;;  %v6683_v61 = vld [vmem:[#allocation19 + $0x84] ss:$8 sps:$4 sm:$0xff]  }
 0x24b   : > { %1150 = vmatprep.subr.bf16.mxu0 %v6543_v40  ;;  %v6581_v40 = vld [vmem:[#allocation16 + $0xf4] ss:$24 sps:$4 sm:$0xff]  }
 0x24e   : > { %1151 = vmatpush1.bf16.msra.mxu0 %v6545_v42  ;;  %v6579_v42 = vld [vmem:[#allocation16 + $0xf0] ss:$24 sps:$4 sm:$0xff]  }
 0x24f   : > { %1152 = vmatprep.subr.bf16.mxu0 %v6546_v43  ;;  %v6587_v43 = vld [vmem:[#allocation16 + $0x124] ss:$24 sps:$4 sm:$0xff]  }
 0x252   : > { %1153 = vmatpush1.bf16.msra.mxu0 %v6548_v44  ;;  %v6585_v44 = vld [vmem:[#allocation16 + $0x120] ss:$24 sps:$4 sm:$0xff]  }
 0x253   : > { %1604 = vmatprep.subr.bf16.mxu0 %v6551_v45  ;;  %v6593_v45 = vld [vmem:[#allocation16 + $0x154] ss:$24 sps:$4 sm:$0xff]  }
 0x2a3   : > { %v846_v23 = vpop.xlane.xlu0 %845 }
 0x2a4   : > { %v848_v24 = vmul.f32 0.00390625, %v846_v23  ;;  %v6549_v23 = vld [vmem:[#allocation16] ss:$24 sps:$4 sm:$0xff]  }
 0x2a6   : > { %v8376_v25 = vsub.f32 %v842_v0, %v848_v24  ;;  %v8378_v26 = vsub.f32 %v843_v1, %v848_v24  ;;  %v8396_v1 = vshrl.u32 %v820_v36, 7 }
 0x2a8   : > { %v851_v27 = vmul.f32 %v8376_v25, %v8376_v25  ;;  %v852_v28 = vmul.f32 %v8378_v26, %v8378_v26  ;;  %v8399_v2 = vsub.s32 0, %v8396_v1  ;;  %v8402_v3 = vsub.s32 1, %v8396_v1 }
 0x2a9   : > { %v8415_v20 = vsub.s32 %v910_v15, %v8396_v1  ;;  %v6704_v15 = vld [vmem:[#allocation19 + $0x214] ss:$8 sps:$4 sm:$0xff]   ;;  %vm822_vm2 = vcmp.eq.s32.totalorder %v8396_v1, 0 }
 0x2aa   : > { %v853_v29 = vadd.f32 %v852_v28, %v851_v27  ;;  %v865_v8 = vrot.slane %v826_v4, %v8399_v2  ;;  %v869_v9 = vrot.slane %v826_v4, %v8402_v3  ;;  %v878_v11 = vrot.slane %v827_v5, %v8399_v2  ;;  %v6555_v27 = vld [vmem:[#allocation16 + $0x30] ss:$24 sps:$4 sm:$0xff]  }
 0x2ab   : > { %v882_v14 = vrot.slane %v827_v5, %v8402_v3 }
 0x2ac   : > { %854 = vadd.xlane.f32.xlu0 %v853_v29  ;;  %v6563_v29 = vld [vmem:[#allocation16 + $0x64] ss:$24 sps:$4 sm:$0xff]  }
 0x339   : > { %v855_v62 = vpop.xlane.xlu0 %854 }
 0x33a   : > { %v856_v63 = vmul.f32 0.00390625, %v855_v62  ;;  %v6620_v62 = vld [vmem:[#allocation16 + $0x218] ss:$24 sps:$4 sm:$0xff]  }
 0x33b   : > { %1668 = vmatpush1.bf16.msra.mxu1 %v6620_v62  ;;  %v6681_v62 = vld [vmem:[#allocation19 + $0x80] ss:$8 sps:$4 sm:$0xff]  }
 0x33c   : > { %v857_v0 = vadd.f32 1e-05, %v856_v63  ;;  %v6623_v63 = vld [vmem:[#allocation16 + $0x14] ss:$24 sps:$4 sm:$0xff]  }
 0x33e   : > { %7091 = vrsqrt.f32 %v857_v0  ;;  %v6698_v0 = vld [vmem:[#allocation19 + $0x204] ss:$8 sps:$4 sm:$0xff]  }
 0x33f   : > { %2444 = vmatprep.subr.bf16.mxu1 %v6698_v0  ;;  %v6684_v0 = vld [vmem:[#allocation19 + $0x90] ss:$8 sps:$4 sm:$0xff]  }
 0x348   : > { %v7092_v10 = vpop.eup %7091 }
 0x349   : > { %v859_v12 = vmul.f32 %v7092_v10, %v8376_v25  ;;  %v860_v13 = vmul.f32 %v7092_v10, %v8378_v26  ;;  %v6557_v25 = vld [vmem:[#allocation16 + $0x34] ss:$24 sps:$4 sm:$0xff]  }
 0x34b   : > { %v872_v16 = vmul.f32 %v865_v8, %v859_v12  ;;  %v873_v17 = vmul.f32 %v869_v9, %v860_v13  ;;  %v6626_v13 = vld [vmem:[#allocation16 + $0x44] ss:$24 sps:$4 sm:$0xff]  }
 0x34d   : > { %v8410_v18 = vadd.f32 %v878_v11, %v872_v16  ;;  %v8412_v19 = vadd.f32 %v882_v14, %v873_v17  ;;  %v6621_v11 = vld [vmem:[#allocation16 + $0x10] ss:$24 sps:$4 sm:$0xff]   ;;  %v6624_v16 = vld [vmem:[#allocation16 + $0x40] ss:$24 sps:$4 sm:$0xff]   ;;  %v6629_v17 = vld [vmem:[#allocation16 + $0x74] ss:$24 sps:$4 sm:$0xff]  }
 0x34e   : > { %v6696_v14 = vld [vmem:[#allocation19 + $0x200] ss:$8 sps:$4 sm:$0xff]  }
 0x34f   : > { %v929_v21 = vpack.c.bf16 %v8412_v19, %v8412_v19  ;;  %v928_v22 = vpack.c.bf16 %v8410_v18, %v8410_v18  ;;  %v907_v24 = vcombine.high %v8410_v18, %v8412_v19 }
 0x351   : > { %1154 = vmatprep.mubr.bf16.mxu0 %v929_v21  ;;  %v914_v26 = vrot.slane %v907_v24, %v8415_v20  ;;  %v6702_v21 = vld [vmem:[#allocation19 + $0x210] ss:$8 sps:$4 sm:$0xff]  }
 0x352   : > { %1155 = vmatmul.mubr.bf16.vlgmr.msra.gmra.mrb[0].mxu0 %v928_v22  ;;  %v6627_v22 = vld [vmem:[#allocation16 + $0x70] ss:$24 sps:$4 sm:$0xff]   ;;  %v6630_v24 = vld [vmem:[#allocation16 + $0xa0] ss:$24 sps:$4 sm:$0xff]  }
 0x353   : > { %1605 = vmatpush1.bf16.msra.mxu0 %v6549_v23  ;;  %v915_v28 = vcombine.high %v914_v26, %v914_v26  ;;  %v6632_v23 = vld [vmem:[#allocation16 + $0xa4] ss:$24 sps:$4 sm:$0xff]   ;;  %v6633_v26 = vld [vmem:[#allocation16 + $0xd0] ss:$24 sps:$4 sm:$0xff]  }
 0x354   : > { %1606 = vmatprep.subr.bf16.mxu0 %v6557_v25  ;;  %v6635_v25 = vld [vmem:[#allocation16 + $0xd4] ss:$24 sps:$4 sm:$0xff]  }
 0x355   : > { %v922_v30 = vrot.slane %v915_v28, %v8415_v20  ;;  %v6636_v28 = vld [vmem:[#allocation16 + $0x100] ss:$24 sps:$4 sm:$0xff]  }
 0x357   : > { %1607 = vmatpush1.bf16.msra.mxu0 %v6555_v27  ;;  %v923_v32 = vcombine.high %v922_v30, %v922_v30  ;;  %v6638_v27 = vld [vmem:[#allocation16 + $0x104] ss:$24 sps:$4 sm:$0xff]   ;;  %v6639_v30 = vld [vmem:[#allocation16 + $0x130] ss:$24 sps:$4 sm:$0xff]  }
 0x358   : > { %1608 = vmatprep.subr.bf16.mxu0 %v6563_v29  ;;  %v6641_v29 = vld [vmem:[#allocation16 + $0x134] ss:$24 sps:$4 sm:$0xff]  }
 0x359   : > { %925 = vst.msk [vmem:[#allocation6] sm:$0x3] %vm8385_vm0, %v923_v32  ;;  %v6642_v32 = vld [vmem:[#allocation16 + $0x160] ss:$24 sps:$4 sm:$0xff]  }
 0x35b   : > { %1609 = vmatpush1.bf16.msra.mxu0 %v6561_v31  ;;  %v6644_v31 = vld [vmem:[#allocation16 + $0x164] ss:$24 sps:$4 sm:$0xff]  }
 0x35c   : > { %1610 = vmatprep.subr.bf16.mxu0 %v6569_v33  ;;  %v6647_v33 = vld [vmem:[#allocation16 + $0x194] ss:$24 sps:$4 sm:$0xff]  }
 0x35f   : > { %1611 = vmatpush1.bf16.msra.mxu0 %v6567_v35  ;;  %v6645_v35 = vld [vmem:[#allocation16 + $0x190] ss:$24 sps:$4 sm:$0xff]  }
 0x360   : > { %1612 = vmatprep.subr.bf16.mxu0 %v6575_v37  ;;  %v6650_v37 = vld [vmem:[#allocation16 + $0x1c4] ss:$24 sps:$4 sm:$0xff]  }
 0x363   : > { %1613 = vmatpush1.bf16.msra.mxu0 %v6573_v38  ;;  %v6648_v38 = vld [vmem:[#allocation16 + $0x1c0] ss:$24 sps:$4 sm:$0xff]  }
 0x364   : > { %1614 = vmatprep.subr.bf16.mxu0 %v6581_v40  ;;  %v6653_v40 = vld [vmem:[#allocation16 + $0x1f4] ss:$24 sps:$4 sm:$0xff]  }
 0x367   : > { %1615 = vmatpush1.bf16.msra.mxu0 %v6579_v42  ;;  %v6651_v42 = vld [vmem:[#allocation16 + $0x1f0] ss:$24 sps:$4 sm:$0xff]  }
 0x368   : > { %1616 = vmatprep.subr.bf16.mxu0 %v6587_v43  ;;  %v6656_v43 = vld [vmem:[#allocation16 + $0x224] ss:$24 sps:$4 sm:$0xff]  }
 0x36b   : > { %1617 = vmatpush1.bf16.msra.mxu0 %v6585_v44  ;;  %v6654_v44 = vld [vmem:[#allocation16 + $0x220] ss:$24 sps:$4 sm:$0xff]  }
 0x36c   : > { %1618 = vmatprep.subr.bf16.mxu0 %v6593_v45  ;;  %v6659_v45 = vld [vmem:[#allocation19 + $0x4] ss:$8 sps:$4 sm:$0xff]  }
 0x36f   : > { %1619 = vmatpush1.bf16.msra.mxu0 %v6591_v46  ;;  %v6657_v46 = vld [vmem:[#allocation19] ss:$8 sps:$4 sm:$0xff]  }
 0x370   : > { %1620 = vmatprep.subr.bf16.mxu0 %v6599_v47  ;;  %v6662_v47 = vld [vmem:[#allocation19 + $0x14] ss:$8 sps:$4 sm:$0xff]  }
 0x373   : > { %1621 = vmatpush1.bf16.msra.mxu0 %v6597_v48  ;;  %v6660_v48 = vld [vmem:[#allocation19 + $0x10] ss:$8 sps:$4 sm:$0xff]  }
 0x374   : > { %1622 = vmatprep.subr.bf16.mxu0 %v6605_v51  ;;  %v6668_v51 = vld [vmem:[#allocation19 + $0x34] ss:$8 sps:$4 sm:$0xff]  }
 0x377   : > { %1623 = vmatpush1.bf16.msra.mxu0 %v6603_v52  ;;  %v6666_v52 = vld [vmem:[#allocation19 + $0x30] ss:$8 sps:$4 sm:$0xff]  }
 0x378   : > { %1624 = vmatprep.subr.bf16.mxu0 %v6611_v55  ;;  %v6674_v55 = vld [vmem:[#allocation19 + $0x54] ss:$8 sps:$4 sm:$0xff]  }
 0x37b   : > { %1625 = vmatpush1.bf16.msra.mxu0 %v6609_v56  ;;  %v6672_v56 = vld [vmem:[#allocation19 + $0x50] ss:$8 sps:$4 sm:$0xff]  }
 0x37c   : > { %1626 = vmatprep.subr.bf16.mxu0 %v6617_v59  ;;  %v6680_v59 = vld [vmem:[#allocation19 + $0x74] ss:$8 sps:$4 sm:$0xff]  }
 0x37f   : > { %1627 = vmatpush1.bf16.msra.mxu0 %v6615_v60  ;;  %v6678_v60 = vld [vmem:[#allocation19 + $0x70] ss:$8 sps:$4 sm:$0xff]  }
 0x380   : > { %1686 = vmatprep.subr.bf16.mxu0 %v6623_v63  ;;  %v6686_v63 = vld [vmem:[#allocation19 + $0x94] ss:$8 sps:$4 sm:$0xff]  }
 0x425   : > { %v1156_v4 = vpop.f32.mrb[0].mxu0 }
 0x426   : > { %7093 = vtanh.f32 %v1156_v4  ;;  %v1158_v5 = vpop.f32.mrb[1].mxu0  ;;  %v6689_v4 = vld [vmem:[#allocation19 + $0xa4] ss:$8 sps:$4 sm:$0xff]  }
 0x427   : > { %7095 = vtanh.f32 %v1158_v5  ;;  %v1160_v6 = vpop.f32.mrb[2].mxu0  ;;  %v6710_v5 = vld [vmem:[#allocation19 + $0x224] ss:$8 sps:$4 sm:$0xff]  }
 0x428   : > { %v1161_v7 = vpop.f32.mrb[3].mxu0  ;;  %v6687_v6 = vld [vmem:[#allocation19 + $0xa0] ss:$8 sps:$4 sm:$0xff]  }
 0x429   : > { %v6708_v7 = vld [vmem:[#allocation19 + $0x220] ss:$8 sps:$4 sm:$0xff]  }
 0x430   : > { %v7094_v8 = vpop.eup %7093 }
 0x431   : > { %v7096_v9 = vpop.eup %7095  ;;  %v1166_v12 = vpack.c.bf16 %v7094_v8, %v7094_v8  ;;  %v6692_v8 = vld [vmem:[#allocation19 + $0xb4] ss:$8 sps:$4 sm:$0xff]  }
 0x432   : > { %v1167_v10 = vpack.c.bf16 %v7096_v9, %v7096_v9  ;;  %v6716_v9 = vld [vmem:[#allocation19 + $0x234] ss:$8 sps:$4 sm:$0xff]  }
 0x434   : > { %5758 = vmatprep.mubr.msk.bf16.mxu0 %vm1600_vm1, %v1167_v10  ;;  %5759 = vmatprep.mubr.msk.bf16.mxu1 %vm1600_vm1, %v1167_v10 }
 0x435   : > { %1637 = vmatmul.mubr.bf16.vlgmr.msra.gmra.mrb[4].mxu0 %v1166_v12  ;;  %1678 = vmatmul.mubr.bf16.vlgmr.msra.gmra.mrb[0].mxu1 %v1166_v12 }
 0x436   : > { %1687 = vmatpush1.bf16.msra.mxu0 %v6621_v11  ;;  %5760 = vmatprep.mubr.msk.bf16.mxu0 %vm1600_vm1, %v1167_v10  ;;  %v6690_v10 = vld [vmem:[#allocation19 + $0xb0] ss:$8 sps:$4 sm:$0xff]  }
 0x437   : > { %1688 = vmatprep.subr.bf16.mxu0 %v6626_v13  ;;  %2445 = vmatpush1.bf16.msra.mxu1 %v6696_v14  ;;  %v6714_v11 = vld [vmem:[#allocation19 + $0x230] ss:$8 sps:$4 sm:$0xff]   ;;  %v6722_v13 = vld [vmem:[#allocation19 + $0x244] ss:$8 sps:$4 sm:$0xff]   ;;  %v6693_v14 = vld [vmem:[#allocation19 + $0xc0] ss:$8 sps:$4 sm:$0xff]  }
 0x438   : > { %2446 = vmatprep.subr.bf16.mxu1 %v6704_v15  ;;  %v6720_v15 = vld [vmem:[#allocation19 + $0x240] ss:$8 sps:$4 sm:$0xff]  }
 0x43a   : > { %1689 = vmatpush1.bf16.msra.mxu0 %v6624_v16  ;;  %v6701_v16 = vld [vmem:[#allocation19 + $0xd4] ss:$8 sps:$4 sm:$0xff]  }
 0x43b   : > { %1690 = vmatprep.subr.bf16.mxu0 %v6629_v17  ;;  %2447 = vmatpush1.bf16.msra.mxu1 %v6702_v21  ;;  %v6726_v17 = vld [vmem:[#allocation19 + $0x250] ss:$8 sps:$4 sm:$0xff]   ;;  %v6728_v21 = vld [vmem:[#allocation19 + $0x254] ss:$8 sps:$4 sm:$0xff]  }
 0x43c   : > { %2448 = vmatprep.subr.bf16.mxu1 %v6710_v5 }
 0x43e   : > { %1691 = vmatpush1.bf16.msra.mxu0 %v6627_v22  ;;  %v6699_v22 = vld [vmem:[#allocation19 + $0xd0] ss:$8 sps:$4 sm:$0xff]  }
 0x43f   : > { %1692 = vmatprep.subr.bf16.mxu0 %v6632_v23  ;;  %2449 = vmatpush1.bf16.msra.mxu1 %v6708_v7  ;;  %v6707_v23 = vld [vmem:[#allocation19 + $0xe4] ss:$8 sps:$4 sm:$0xff]  }
 0x440   : > { %2450 = vmatprep.subr.bf16.mxu1 %v6716_v9 }
 0x442   : > { %1693 = vmatpush1.bf16.msra.mxu0 %v6630_v24  ;;  %v6732_v24 = vld [vmem:[#allocation19 + $0x260] ss:$8 sps:$4 sm:$0xff]  }
 0x443   : > { %1694 = vmatprep.subr.bf16.mxu0 %v6635_v25  ;;  %2451 = vmatpush1.bf16.msra.mxu1 %v6714_v11  ;;  %v6734_v25 = vld [vmem:[#allocation19 + $0x264] ss:$8 sps:$4 sm:$0xff]  }
 0x444   : > { %2452 = vmatprep.subr.bf16.mxu1 %v6722_v13 }
 0x446   : > { %1695 = vmatpush1.bf16.msra.mxu0 %v6633_v26  ;;  %v6705_v26 = vld [vmem:[#allocation19 + $0xe0] ss:$8 sps:$4 sm:$0xff]  }
 0x447   : > { %1696 = vmatprep.subr.bf16.mxu0 %v6638_v27  ;;  %2453 = vmatpush1.bf16.msra.mxu1 %v6720_v15  ;;  %v6713_v27 = vld [vmem:[#allocation19 + $0xf4] ss:$8 sps:$4 sm:$0xff]  }
 0x448   : > { %2454 = vmatprep.subr.bf16.mxu1 %v6728_v21 }
 0x44a   : > { %1697 = vmatpush1.bf16.msra.mxu0 %v6636_v28  ;;  %v6738_v28 = vld [vmem:[#allocation19 + $0x270] ss:$8 sps:$4 sm:$0xff]  }
 0x44b   : > { %1698 = vmatprep.subr.bf16.mxu0 %v6641_v29  ;;  %2455 = vmatpush1.bf16.msra.mxu1 %v6726_v17  ;;  %v6740_v29 = vld [vmem:[#allocation19 + $0x274] ss:$8 sps:$4 sm:$0xff]  }
 0x44c   : > { %2456 = vmatprep.subr.bf16.mxu1 %v6734_v25 }
 0x44e   : > { %1699 = vmatpush1.bf16.msra.mxu0 %v6639_v30  ;;  %v6711_v30 = vld [vmem:[#allocation19 + $0xf0] ss:$8 sps:$4 sm:$0xff]  }
 0x44f   : > { %1700 = vmatprep.subr.bf16.mxu0 %v6644_v31  ;;  %2457 = vmatpush1.bf16.msra.mxu1 %v6732_v24  ;;  %v6719_v31 = vld [vmem:[#allocation19 + $0x104] ss:$8 sps:$4 sm:$0xff]  }
 0x450   : > { %2458 = vmatprep.subr.bf16.mxu1 %v6740_v29 }
 0x452   : > { %1701 = vmatpush1.bf16.msra.mxu0 %v6642_v32  ;;  %v6744_v32 = vld [vmem:[#allocation19 + $0x280] ss:$8 sps:$4 sm:$0xff]  }
 0x453   : > { %1702 = vmatprep.subr.bf16.mxu0 %v6647_v33  ;;  %2459 = vmatpush1.bf16.msra.mxu1 %v6738_v28  ;;  %v6746_v33 = vld [vmem:[#allocation19 + $0x284] ss:$8 sps:$4 sm:$0xff]   ;;  %v6717_v28 = vld [vmem:[#allocation19 + $0x100] ss:$8 sps:$4 sm:$0xff]  }
 0x454   : > { %2460 = vmatprep.subr.bf16.mxu1 %v6746_v33  ;;  %v6731_v33 = vld [vmem:[#allocation19 + $0x124] ss:$8 sps:$4 sm:$0xff]  }
 0x456   : > { %1703 = vmatpush1.bf16.msra.mxu0 %v6645_v35  ;;  %v6750_v35 = vld [vmem:[#allocation19 + $0x290] ss:$8 sps:$4 sm:$0xff]  }
 0x457   : > { %1704 = vmatprep.subr.bf16.mxu0 %v6650_v37  ;;  %2461 = vmatpush1.bf16.msra.mxu1 %v6744_v32  ;;  %v6752_v37 = vld [vmem:[#allocation19 + $0x294] ss:$8 sps:$4 sm:$0xff]   ;;  %v6723_v32 = vld [vmem:[#allocation19 + $0x110] ss:$8 sps:$4 sm:$0xff]  }
 0x458   : > { %2462 = vmatprep.subr.bf16.mxu1 %v6752_v37  ;;  %v6737_v37 = vld [vmem:[#allocation19 + $0x134] ss:$8 sps:$4 sm:$0xff]  }
 0x45a   : > { %1705 = vmatpush1.bf16.msra.mxu0 %v6648_v38  ;;  %v6756_v38 = vld [vmem:[#allocation19 + $0x2a0] ss:$8 sps:$4 sm:$0xff]  }
 0x45b   : > { %1706 = vmatprep.subr.bf16.mxu0 %v6653_v40  ;;  %2463 = vmatpush1.bf16.msra.mxu1 %v6750_v35  ;;  %v6758_v40 = vld [vmem:[#allocation19 + $0x2a4] ss:$8 sps:$4 sm:$0xff]   ;;  %v6729_v35 = vld [vmem:[#allocation19 + $0x120] ss:$8 sps:$4 sm:$0xff]  }
 0x45c   : > { %2464 = vmatprep.subr.bf16.mxu1 %v6758_v40  ;;  %v6743_v40 = vld [vmem:[#allocation19 + $0x144] ss:$8 sps:$4 sm:$0xff]  }
 0x45e   : > { %1707 = vmatpush1.bf16.msra.mxu0 %v6651_v42  ;;  %v6762_v42 = vld [vmem:[#allocation19 + $0x2b0] ss:$8 sps:$4 sm:$0xff]  }
 0x45f   : > { %1708 = vmatprep.subr.bf16.mxu0 %v6656_v43  ;;  %2465 = vmatpush1.bf16.msra.mxu1 %v6756_v38  ;;  %v6764_v43 = vld [vmem:[#allocation19 + $0x2b4] ss:$8 sps:$4 sm:$0xff]   ;;  %v6735_v38 = vld [vmem:[#allocation19 + $0x130] ss:$8 sps:$4 sm:$0xff]  }
 0x460   : > { %2466 = vmatprep.subr.bf16.mxu1 %v6764_v43  ;;  %v6749_v43 = vld [vmem:[#allocation19 + $0x154] ss:$8 sps:$4 sm:$0xff]  }
 0x462   : > { %1709 = vmatpush1.bf16.msra.mxu0 %v6654_v44  ;;  %v6768_v44 = vld [vmem:[#allocation19 + $0x2c0] ss:$8 sps:$4 sm:$0xff]  }
 0x463   : > { %1974 = vmatprep.subr.bf16.mxu0 %v6659_v45  ;;  %2467 = vmatpush1.bf16.msra.mxu1 %v6762_v42  ;;  %v6770_v45 = vld [vmem:[#allocation19 + $0x2c4] ss:$8 sps:$4 sm:$0xff]   ;;  %v6741_v42 = vld [vmem:[#allocation19 + $0x140] ss:$8 sps:$4 sm:$0xff]  }
 0x464   : > { %2468 = vmatprep.subr.bf16.mxu1 %v6770_v45  ;;  %v6755_v45 = vld [vmem:[#allocation19 + $0x164] ss:$8 sps:$4 sm:$0xff]  }
 0x465   : > { %1719 = vmatmul.mubr.bf16.vlgmr.msra.gmra.mrb[8].mxu0 %v1166_v12  ;;  %v6695_v12 = vld [vmem:[#allocation19 + $0xc4] ss:$8 sps:$4 sm:$0xff]  }
 0x466   : > { %1975 = vmatpush1.bf16.msra.mxu0 %v6657_v46  ;;  %v6774_v46 = vld [vmem:[#allocation19 + $0x2d0] ss:$8 sps:$4 sm:$0xff]  }
 0x467   : > { %1976 = vmatprep.subr.bf16.mxu0 %v6662_v47  ;;  %2469 = vmatpush1.bf16.msra.mxu1 %v6768_v44  ;;  %v6776_v47 = vld [vmem:[#allocation19 + $0x2d4] ss:$8 sps:$4 sm:$0xff]   ;;  %v6747_v44 = vld [vmem:[#allocation19 + $0x150] ss:$8 sps:$4 sm:$0xff]  }
 0x468   : > { %2470 = vmatprep.subr.bf16.mxu1 %v6776_v47  ;;  %v6761_v47 = vld [vmem:[#allocation19 + $0x174] ss:$8 sps:$4 sm:$0xff]  }
 0x46a   : > { %1977 = vmatpush1.bf16.msra.mxu0 %v6660_v48  ;;  %v6782_v48 = vld [vmem:[#allocation19 + $0x2e4] ss:$8 sps:$4 sm:$0xff]  }
 0x46b   : > { %1978 = vmatprep.subr.bf16.mxu0 %v6665_v49  ;;  %2471 = vmatpush1.bf16.msra.mxu1 %v6774_v46  ;;  %v6780_v49 = vld [vmem:[#allocation19 + $0x2e0] ss:$8 sps:$4 sm:$0xff]  }
 0x46c   : > { %2472 = vmatprep.subr.bf16.mxu1 %v6782_v48  ;;  %v6753_v46 = vld [vmem:[#allocation19 + $0x160] ss:$8 sps:$4 sm:$0xff]   ;;  %v6759_v48 = vld [vmem:[#allocation19 + $0x170] ss:$8 sps:$4 sm:$0xff]  }
 0x46e   : > { %1979 = vmatpush1.bf16.msra.mxu0 %v6663_v50  ;;  %v6788_v50 = vld [vmem:[#allocation19 + $0x2f4] ss:$8 sps:$4 sm:$0xff]  }
 0x46f   : > { %1980 = vmatprep.subr.bf16.mxu0 %v6668_v51  ;;  %2473 = vmatpush1.bf16.msra.mxu1 %v6780_v49  ;;  %v6786_v51 = vld [vmem:[#allocation19 + $0x2f0] ss:$8 sps:$4 sm:$0xff]   ;;  %v6767_v49 = vld [vmem:[#allocation19 + $0x184] ss:$8 sps:$4 sm:$0xff]  }
 0x470   : > { %2474 = vmatprep.subr.bf16.mxu1 %v6788_v50  ;;  %v6765_v50 = vld [vmem:[#allocation19 + $0x180] ss:$8 sps:$4 sm:$0xff]  }
 0x472   : > { %1981 = vmatpush1.bf16.msra.mxu0 %v6666_v52  ;;  %v1738_v52 = vsub.s32 2, %v8396_v1 }
 0x473   : > { %1982 = vmatprep.subr.bf16.mxu0 %v6671_v53  ;;  %2475 = vmatpush1.bf16.msra.mxu1 %v6786_v51  ;;  %v888_v53 = vrot.slane %v8410_v18, 7  ;;  %v6773_v51 = vld [vmem:[#allocation19 + $0x194] ss:$8 sps:$4 sm:$0xff]  }
 0x476   : > { %1983 = vmatpush1.bf16.msra.mxu0 %v6669_v54  ;;  %v896_v54 = vrot.slane %v8425_v34, %v8399_v2 }
 0x477   : > { %1984 = vmatprep.subr.bf16.mxu0 %v6674_v55  ;;  %v8433_v55 = vld [vmem:[#allocation17] sm:$0x3f] }
 0x47a   : > { %1985 = vmatpush1.bf16.msra.mxu0 %v6672_v56  ;;  %v1742_v56 = vsub.s32 3, %v8396_v1 }
 0x47b   : > { %1986 = vmatprep.subr.bf16.mxu0 %v6677_v57  ;;  %v889_v57 = vrot.slane %v8412_v19, 7 }
 0x47e   : > { %1987 = vmatpush1.bf16.msra.mxu0 %v6675_v58  ;;  %v900_v58 = vrot.slane %v8425_v34, %v8402_v3 }
 0x47f   : > { %1988 = vmatprep.subr.bf16.mxu0 %v6680_v59  ;;  %v1731_v59 = vrot.slane %v8433_v55, %v8399_v2 }
 0x482   : > { %1989 = vmatpush1.bf16.msra.mxu0 %v6678_v60  ;;  %v1739_v60 = vrot.slane %v8433_v55, %v1738_v52  ;;  %v1746_v52 = vsub.s32 4, %v8396_v1 }
 0x483   : > { %1990 = vmatprep.subr.bf16.mxu0 %v6683_v61  ;;  %v903_v61 = vsel %vm822_vm2, %v896_v54, %v888_v53  ;;  %v1750_v53 = vsub.s32 5, %v8396_v1  ;;  %v6771_v54 = vld [vmem:[#allocation19 + $0x190] ss:$8 sps:$4 sm:$0xff]  }
 0x484   : > { %v8451_v34 = vsub.f32 %v903_v61, %v8410_v18 }
 0x486   : > { %1991 = vmatpush1.bf16.msra.mxu0 %v6681_v62  ;;  %v1735_v62 = vrot.slane %v8433_v55, %v8402_v3 }
 0x487   : > { %1992 = vmatprep.subr.bf16.mxu0 %v6686_v63  ;;  %v1743_v63 = vrot.slane %v8433_v55, %v1742_v56  ;;  %v1747_v56 = vrot.slane %v8433_v55, %v1746_v52 }
 0x48a   : > { %1993 = vmatpush1.bf16.msra.mxu0 %v6684_v0  ;;  %v904_v0 = vsel %vm822_vm2, %v900_v58, %v889_v57  ;;  %v6779_v57 = vld [vmem:[#allocation19 + $0x1a4] ss:$8 sps:$4 sm:$0xff]   ;;  %v1751_v58 = vrot.slane %v8433_v55, %v1750_v53 }
 0x48b   : > { %1994 = vmatprep.subr.bf16.mxu0 %v6689_v4  ;;  %v6791_v55 = vld [vmem:[#allocation19 + $0x1c4] ss:$8 sps:$4 sm:$0xff]  }
 0x48e   : > { %1995 = vmatpush1.bf16.msra.mxu0 %v6687_v6 }
 0x48f   : > { %1996 = vmatprep.subr.bf16.mxu0 %v6692_v8 }
 0x492   : > { %1997 = vmatpush1.bf16.msra.mxu0 %v6690_v10  ;;  %v8454_v10 = vsub.f32 %v904_v0, %v8412_v19 }
 0x493   : > { %1998 = vmatprep.subr.bf16.mxu0 %v6695_v12 }
 0x496   : > { %1999 = vmatpush1.bf16.msra.mxu0 %v6693_v14 }
 0x497   : > { %2000 = vmatprep.subr.bf16.mxu0 %v6701_v16 }
 0x49a   : > { %2001 = vmatpush1.bf16.msra.mxu0 %v6699_v22 }
 0x49b   : > { %2002 = vmatprep.subr.bf16.mxu0 %v6707_v23 }
 0x49e   : > { %2003 = vmatpush1.bf16.msra.mxu0 %v6705_v26 }
 0x49f   : > { %2004 = vmatprep.subr.bf16.mxu0 %v6713_v27 }
 0x4a2   : > { %2005 = vmatpush1.bf16.msra.mxu0 %v6711_v30  ;;  %v6725_v30 = vld [vmem:[#allocation19 + $0x114] ss:$8 sps:$4 sm:$0xff]  }
 0x4a3   : > { %2210 = vmatprep.subr.bf16.mxu0 %v6719_v31 }
 0x508   : > { %v1638_v4 = vpop.f32.mrb[4].mxu0  ;;  %v1679_v5 = vpop.f32.mrb[0].mxu1 }
 0x509   : > { %v1758_v6 = vadd.f32 %v1731_v59, %v1638_v4  ;;  %v1760_v7 = vadd.f32 %v1739_v60, %v1679_v5  ;;  %v1640_v8 = vpop.f32.mrb[5].mxu0  ;;  %v1681_v9 = vpop.f32.mrb[1].mxu1  ;;  %v6777_v60 = vld [vmem:[#allocation19 + $0x1a0] ss:$8 sps:$4 sm:$0xff]  }
 0x50a   : > { %v1759_v11 = vadd.f32 %v1735_v62, %v1640_v8  ;;  %v1761_v12 = vadd.f32 %v1743_v63, %v1681_v9  ;;  %v1642_v13 = vpop.f32.mrb[6].mxu0  ;;  %v1683_v14 = vpop.f32.mrb[2].mxu1  ;;  %v6785_v63 = vld [vmem:[#allocation19 + $0x1b4] ss:$8 sps:$4 sm:$0xff]   ;;  %v6783_v8 = vld [vmem:[#allocation19 + $0x1b0] ss:$8 sps:$4 sm:$0xff]  }
 0x50b   : > { %v1764_v15 = vmul.f32 %v1758_v6, %v8451_v34  ;;  %v8458_v16 = vmul.f32 %v1760_v7, %v8451_v34  ;;  %v1643_v17 = vpop.f32.mrb[7].mxu0  ;;  %v1684_v21 = vpop.f32.mrb[3].mxu1  ;;  %v6789_v13 = vld [vmem:[#allocation19 + $0x1c0] ss:$8 sps:$4 sm:$0xff]  }
 0x50c   : > { %v1765_v22 = vmul.f32 %v1759_v11, %v8454_v10  ;;  %v1771_v23 = vmul.f32 %v1761_v12, %v8454_v10  ;;  %v6795_v17 = vld [vmem:[#allocation19 + $0x1e0] ss:$8 sps:$4 sm:$0xff]   ;;  %v6800_v21 = vld [vmem:[#allocation19 + $0x1f4] ss:$8 sps:$4 sm:$0xff]  }
 0x50d   : > { %v1766_v24 = vadd.f32 %v1764_v15, %v8410_v18  ;;  %v6794_v15 = vld [vmem:[#allocation19 + $0x1d4] ss:$8 sps:$4 sm:$0xff]  }
 0x50e   : > { %v1767_v25 = vadd.f32 %v1765_v22, %v8412_v19  ;;  %v1773_v26 = vadd.f32 %v1771_v23, %v8412_v19  ;;  %v6798_v22 = vld [vmem:[#allocation19 + $0x1f0] ss:$8 sps:$4 sm:$0xff]  }
 0x50f   : > { %v1768_v29 = vpack.c.bf16 %v1766_v24, %v1766_v24 }
 0x510   : > { %v1769_v27 = vpack.c.bf16 %v1767_v25, %v1767_v25  ;;  %v1775_v31 = vpack.c.bf16 %v1773_v26, %v1773_v26 }
 0x512   : > { %2006 = vmatprep.mubr.bf16.mxu0 %v1769_v27 }
 0x513   : > { %2007 = vmatmul.mubr.bf16.vlgmr.msra.gmra.mrb[12].mxu0 %v1768_v29 }
 0x514   : > { %2211 = vmatpush1.bf16.msra.mxu0 %v6717_v28  ;;  %2242 = vmatprep.mubr.bf16.mxu0 %v1775_v31 }
 0x515   : > { %2212 = vmatprep.subr.bf16.mxu0 %v6725_v30 }
 0x518   : > { %2213 = vmatpush1.bf16.msra.mxu0 %v6723_v32 }
 0x519   : > { %2214 = vmatprep.subr.bf16.mxu0 %v6731_v33 }
 0x51c   : > { %2215 = vmatpush1.bf16.msra.mxu0 %v6729_v35  ;;  %v8479_v35 = vld [vmem:[#allocation23] sm:$0xff] }
 0x51d   : > { %2216 = vmatprep.subr.bf16.mxu0 %v6737_v37 }
 0x520   : > { %2217 = vmatpush1.bf16.msra.mxu0 %v6735_v38 }
 0x521   : > { %2218 = vmatprep.subr.bf16.mxu0 %v6743_v40 }
 0x524   : > { %2219 = vmatpush1.bf16.msra.mxu0 %v6741_v42 }
 0x525   : > { %2220 = vmatprep.subr.bf16.mxu0 %v6749_v43  ;;  %v8484_v43 = vld [vmem:[#allocation25] sm:$0xff] }
 0x528   : > { %2221 = vmatpush1.bf16.msra.mxu0 %v6747_v44 }
 0x529   : > { %2222 = vmatprep.subr.bf16.mxu0 %v6755_v45 }
 0x52c   : > { %2223 = vmatpush1.bf16.msra.mxu0 %v6753_v46 }
 0x52d   : > { %2224 = vmatprep.subr.bf16.mxu0 %v6761_v47 }
 0x530   : > { %2225 = vmatpush1.bf16.msra.mxu0 %v6759_v48 }
 0x531   : > { %2226 = vmatprep.subr.bf16.mxu0 %v6767_v49 }
 0x534   : > { %2227 = vmatpush1.bf16.msra.mxu0 %v6765_v50 }
 0x535   : > { %2228 = vmatprep.subr.bf16.mxu0 %v6773_v51 }
 0x538   : > { %v1720_v59 = vpop.f32.mrb[8].mxu0  ;;  %2229 = vmatpush1.bf16.msra.mxu0 %v6771_v54 }
 0x539   : > { %v1762_v61 = vadd.f32 %v1747_v56, %v1720_v59  ;;  %v1722_v62 = vpop.f32.mrb[9].mxu0  ;;  %2230 = vmatprep.subr.bf16.mxu0 %v6779_v57 }
 0x53a   : > { %v1763_v0 = vadd.f32 %v1751_v58, %v1722_v62  ;;  %v1724_v4 = vpop.f32.mrb[10].mxu0 }
 0x53b   : > { %v1776_v5 = vmul.f32 %v1762_v61, %v8451_v34  ;;  %v1725_v6 = vpop.f32.mrb[11].mxu0  ;;  %v6792_v34 = vld [vmem:[#allocation19 + $0x1d0] ss:$8 sps:$4 sm:$0xff]  }
 0x53c   : > { %v1777_v7 = vmul.f32 %v1763_v0, %v8454_v10  ;;  %2231 = vmatpush1.bf16.msra.mxu0 %v6777_v60  ;;  %v6797_v10 = vld [vmem:[#allocation19 + $0x1e4] ss:$8 sps:$4 sm:$0xff]  }
 0x53d   : > { %v1778_v9 = vadd.f32 %v1776_v5, %v8410_v18  ;;  %2232 = vmatprep.subr.bf16.mxu0 %v6785_v63 }
 0x53e   : > { %v1779_v11 = vadd.f32 %v1777_v7, %v8412_v19  ;;  %v1772_v19 = vadd.f32 %v8458_v16, %v8410_v18 }
 0x53f   : > { %v1780_v14 = vpack.c.bf16 %v1778_v9, %v1778_v9 }
 0x540   : > { %2233 = vmatpush1.bf16.msra.mxu0 %v6783_v8  ;;  %v1781_v12 = vpack.c.bf16 %v1779_v11, %v1779_v11  ;;  %v1774_v23 = vpack.c.bf16 %v1772_v19, %v1772_v19 }
 0x541   : > { %2234 = vmatprep.subr.bf16.mxu0 %v6791_v55 }
 0x542   : > { %2476 = vmatprep.mubr.bf16.mxu1 %v1781_v12 }
 0x543   : > { %2477 = vmatmul.mubr.bf16.vlgmr.msra.gmra.mrb[4].mxu1 %v1780_v14 }
 0x544   : > { %2235 = vmatpush1.bf16.msra.mxu0 %v6789_v13 }
 0x545   : > { %2236 = vmatprep.subr.bf16.mxu0 %v6794_v15 }
 0x548   : > { %2237 = vmatpush1.bf16.msra.mxu0 %v6792_v34 }
 0x549   : > { %2238 = vmatprep.subr.bf16.mxu0 %v6797_v10 }
 0x54c   : > { %2239 = vmatpush1.bf16.msra.mxu0 %v6795_v17 }
 0x54d   : > { %2240 = vmatprep.subr.bf16.mxu0 %v6800_v21 }
 0x550   : > { %2241 = vmatpush1.bf16.msra.mxu0 %v6798_v22 }
 0x551   : > { %6210 = vmatprep.subr.bf16.mxu0 %v7753_v41 }
 0x553   : > { %2243 = vmatmul.mubr.bf16.vlgmr.msra.gmra.mrb[16].mxu0 %v1774_v23 }
 0x554   : > { %6226 = vmatprep.mubr.msk.bf16.mxu0 %vm7756_vm3, %v7753_v41 }
 0x5e6   : > { %v2008_v24 = vpop.f32.mrb[12].mxu0 }
 0x5e7   : > { %v2015_v25 = vmul.f32 0.088388346, %v2008_v24  ;;  %v8476_v26 = vpop.f32.mrb[13].mxu0 }
 0x5e8   : > { %v2012_v27 = vpop.f32.mrb[14].mxu0 }
 0x5e9   : > { %2488 = vrot.lane.b32.xlu0 %v2015_v25, %s7755_s29  ;;  %v2013_v28 = vpop.f32.mrb[15].mxu0  ;;  %v2487_v45 = vmul.f32 %v8479_v35, %v2015_v25 }
 0x616   : > { %v2478_v29 = vpop.f32.mrb[4].mxu1 }
 0x617   : > { %v2548_v30 = vpack.c.bf16 %v2478_v29, %v2478_v29  ;;  %v2480_v31 = vpop.f32.mrb[5].mxu1 }
 0x618   : > { %v2612_v32 = vpack.c.bf16 %v2480_v31, %v2480_v31  ;;  %v2482_v18 = vpop.f32.mrb[6].mxu1 }
 0x619   : > { %2549 = vst [vmem:[#allocation4] sm:$0xf] %v2548_v30  ;;  %v2483_v16 = vpop.f32.mrb[7].mxu1 }
 0x61a   : > { %2614 = vst [vmem:[#allocation4 + $0x4] sm:$0xf] %v2612_v32 }
 0x620   : > { %v2681_v30 = vld [vmem:[#allocation4] sm:$0xf] }
 0x621   : > { %v2687_v32 = vsel %vm2685_vm5, %v2681_v30, 0 }
 0x626   : > { %v2244_v33 = vpop.f32.mrb[16].mxu0 }
 0x627   : > { %2493 = vrot.lane.b32.xlu1 %v2244_v33, %s7755_s29  ;;  %v2246_v37 = vpop.f32.mrb[17].mxu0  ;;  %v2492_v50 = vmul.f32 %v8479_v35, %v2244_v33 }
 0x628   : > { %v2555_v38 = vmul.f32 %v8479_v35, %v2246_v37  ;;  %2556 = vrot.lane.b32.xlu0 %v2246_v37, %s7755_s29  ;;  %v2248_v40 = vpop.f32.mrb[18].mxu0 }
 0x629   : > { %v2249_v42 = vpop.f32.mrb[19].mxu0 }
 0x65b   : > { %v2489_v44 = vpop.permute.xlu0 %2488 }
 0x65c   : > { %v2490_v46 = vmul.f32 %v2489_v44, %v8484_v43 }
 0x65e   : > { %v2491_v47 = vadd.f32 %v2490_v46, %v2487_v45  ;;  %v8517_v46 = vand.u32 127, %v820_v36 }
 0x660   : > { %v2497_v48 = vpack.c.bf16 %v2491_v47, %v2491_v47  ;;  %vm825_vm6 = vcmp.le.s32.totalorder %v8517_v46, %v8396_v1 }
 0x662   : > { %2498 = vst [vmem:[#allocation2] sm:$0xf] %v2497_v48 }
 0x669   : > { %v2615_v31 = vld [vmem:[#allocation2] sm:$0xf] }
 0x699   : > { %v2494_v49 = vpop.permute.xlu1 %2493 }
 0x69a   : > { %v2495_v51 = vmul.f32 %v2494_v49, %v8484_v43  ;;  %v2557_v53 = vpop.permute.xlu0 %2556 }
 0x69b   : > { %v2558_v54 = vmul.f32 %v2557_v53, %v8484_v43 }
 0x69c   : > { %v2496_v52 = vadd.f32 %v2495_v51, %v2492_v50 }
 0x69d   : > { %v2559_v56 = vadd.f32 %v2558_v54, %v2555_v38 }
 0x69e   : > { %2499 = vxpose.xlu1.b32.start.end [1/1] (short) %v2496_v52, 128 }
 0x6db   : > { %2563 = vxpose.xlu1.b32.start.end [1/1] (short) %v2559_v56, 128 }
 0x71e   : > { %v2515_v57 = vpop.trf.xlu1 }
 0x722   : > { %v2516_v58 = vpop.trf.xlu1 }
 0x723   : > { %v2531_v59 = vpack.c.bf16 %v2516_v58, %v2515_v57  ;;  %v2016_v57 = vmul.f32 0.088388346, %v8476_v26 }
 0x725   : > { %2540 = vst.msk [vmem:[#allocation3] sm:$0xff] %vm2539_vm4, %v2531_v59 }
 0x726   : > { %v2517_v60 = vpop.trf.xlu1 }
 0x72a   : > { %v2518_v61 = vpop.trf.xlu1 }
 0x72b   : > { %v2532_v62 = vpack.c.bf16 %v2518_v61, %v2517_v60 }
 0x72c   : > { %v2616_v63 = vld [vmem:[#allocation3] sm:$0xff] }
 0x72d   : > { %2541 = vst.msk [vmem:[#allocation3 + $0x8] sm:$0xff] %vm2539_vm4, %v2532_v62  ;;  %6211 = vmatpush3.bf16.msra.mxu0 %v2616_v63 }
 0x72e   : > { %v2519_v0 = vpop.trf.xlu1  ;;  %6212 = vmatprep.subr.bf16.mxu0 %v7753_v41 }
 0x732   : > { %v2520_v4 = vpop.trf.xlu1 }
 0x733   : > { %v2533_v5 = vpack.c.bf16 %v2520_v4, %v2519_v0 }
 0x734   : > { %v2617_v6 = vld [vmem:[#allocation3 + $0x8] sm:$0xff] }
 0x735   : > { %2542 = vst.msk [vmem:[#allocation3 + $0x10] sm:$0xff] %vm2539_vm4, %v2533_v5  ;;  %6213 = vmatpush3.bf16.msra.mxu0 %v2617_v6 }
 0x736   : > { %v2521_v7 = vpop.trf.xlu1  ;;  %6214 = vmatprep.subr.bf16.mxu0 %v7753_v41 }
 0x73a   : > { %v2522_v8 = vpop.trf.xlu1 }
 0x73b   : > { %v2534_v9 = vpack.c.bf16 %v2522_v8, %v2521_v7 }
 0x73c   : > { %v2618_v55 = vld [vmem:[#allocation3 + $0x10] sm:$0xff] }
 0x73d   : > { %2543 = vst.msk [vmem:[#allocation3 + $0x18] sm:$0xff] %vm2539_vm4, %v2534_v9  ;;  %6215 = vmatpush3.bf16.msra.mxu0 %v2618_v55 }
 0x73e   : > { %v2523_v11 = vpop.trf.xlu1  ;;  %6216 = vmatprep.subr.bf16.mxu0 %v7753_v41 }
 0x742   : > { %v2524_v12 = vpop.trf.xlu1 }
 0x743   : > { %v2535_v13 = vpack.c.bf16 %v2524_v12, %v2523_v11  ;;  %v2550_v11 = vmul.f32 %v8479_v35, %v2016_v57 }
 0x744   : > { %v2619_v14 = vld [vmem:[#allocation3 + $0x18] sm:$0xff] }
 0x745   : > { %2544 = vst.msk [vmem:[#allocation3 + $0x20] sm:$0xff] %vm2539_vm4, %v2535_v13  ;;  %6217 = vmatpush3.bf16.msra.mxu0 %v2619_v14 }
 0x746   : > { %v2525_v15 = vpop.trf.xlu1  ;;  %6218 = vmatprep.subr.bf16.mxu0 %v7753_v41 }
 0x74a   : > { %v2526_v34 = vpop.trf.xlu1 }
 0x74b   : > { %v2536_v10 = vpack.c.bf16 %v2526_v34, %v2525_v15 }
 0x74c   : > { %v2620_v17 = vld [vmem:[#allocation3 + $0x20] sm:$0xff] }
 0x74d   : > { %2545 = vst.msk [vmem:[#allocation3 + $0x28] sm:$0xff] %vm2539_vm4, %v2536_v10  ;;  %6219 = vmatpush3.bf16.msra.mxu0 %v2620_v17 }
 0x74e   : > { %v2527_v21 = vpop.trf.xlu1  ;;  %6220 = vmatprep.subr.bf16.mxu0 %v7753_v41 }
 0x752   : > { %v2528_v22 = vpop.trf.xlu1 }
 0x753   : > { %v2537_v19 = vpack.c.bf16 %v2528_v22, %v2527_v21 }
 0x754   : > { %v2621_v23 = vld [vmem:[#allocation3 + $0x28] sm:$0xff] }
 0x755   : > { %2546 = vst.msk [vmem:[#allocation3 + $0x30] sm:$0xff] %vm2539_vm4, %v2537_v19  ;;  %6221 = vmatpush3.bf16.msra.mxu0 %v2621_v23 }
 0x756   : > { %v2529_v24 = vpop.trf.xlu1  ;;  %6222 = vmatprep.subr.bf16.mxu0 %v7753_v41 }
 0x75a   : > { %v2530_v25 = vpop.trf.xlu1 }
 0x75b   : > { %v2538_v27 = vpack.c.bf16 %v2530_v25, %v2529_v24 }
 0x75c   : > { %v2622_v28 = vld [vmem:[#allocation3 + $0x30] sm:$0xff] }
 0x75d   : > { %2547 = vst.msk [vmem:[#allocation3 + $0x38] sm:$0xff] %vm2539_vm4, %v2538_v27  ;;  %6223 = vmatpush3.bf16.msra.mxu0 %v2622_v28  ;;  %v2800_v27 = vld [vmem:[#allocation4 + $0x4] sm:$0xf] }
 0x75e   : > { %6224 = vmatprep.subr.bf16.mxu0 %v7753_v41  ;;  %v2579_v18 = vpop.trf.xlu1 }
 0x762   : > { %v2580_v16 = vpop.trf.xlu1 }
 0x763   : > { %v2595_v33 = vpack.c.bf16 %v2580_v16, %v2579_v18 }
 0x764   : > { %v2623_v29 = vld [vmem:[#allocation3 + $0x38] sm:$0xff] }
 0x765   : > { %6225 = vmatpush3.bf16.msra.mxu0 %v2623_v29  ;;  %2604 = vst.msk [vmem:[#allocation3 + $0x40] sm:$0xff] %vm2539_vm4, %v2595_v33  ;;  %v2805_v29 = vsel %vm2685_vm5, %v2800_v27, 0  ;;  %v6845_v27 = vld [vmem:[#allocation20 + $0xe4] ss:$8 sps:$4 sm:$0xff]  }
 0x766   : > { %6230 = vmatprep.subr.bf16.mxu0 %v7753_v41  ;;  %v2581_v37 = vpop.trf.xlu1 }
 0x768   : > { %6227 = vmatmul.mubr.bf16.vlgmr.msra.gmra.mrb[20].mxu0 %v2615_v31 }
 0x769   : > { %6231 = vmatpush3.bf16.msra.mxu0 %v2687_v32  ;;  %6232 = vmatprep.mubr.msk.bf16.mxu0 %vm7756_vm3, %v7753_v41 }
 0x76a   : > { %6236 = vmatprep.subr.bf16.mxu0 %v7753_v41  ;;  %v2582_v38 = vpop.trf.xlu1 }
 0x76b   : > { %v2596_v40 = vpack.c.bf16 %v2582_v38, %v2581_v37 }
 0x76c   : > { %v2735_v21 = vld [vmem:[#allocation3 + $0x40] sm:$0xff] }
 0x76d   : > { %2605 = vst.msk [vmem:[#allocation3 + $0x48] sm:$0xff] %vm2539_vm4, %v2596_v40 }
 0x76e   : > { %v2583_v42 = vpop.trf.xlu1 }
 0x772   : > { %v2584_v44 = vpop.trf.xlu1 }
 0x773   : > { %v2597_v45 = vpack.c.bf16 %v2584_v44, %v2583_v42 }
 0x774   : > { %v2736_v35 = vld [vmem:[#allocation3 + $0x48] sm:$0xff] }
 0x775   : > { %2606 = vst.msk [vmem:[#allocation3 + $0x50] sm:$0xff] %vm2539_vm4, %v2597_v45 }
 0x776   : > { %v2585_v53 = vpop.trf.xlu1 }
 0x77a   : > { %v2586_v54 = vpop.trf.xlu1 }
 0x77b   : > { %v2598_v56 = vpack.c.bf16 %v2586_v54, %v2585_v53 }
 0x77d   : > { %2607 = vst.msk [vmem:[#allocation3 + $0x58] sm:$0xff] %vm2539_vm4, %v2598_v56 }
 0x77e   : > { %v2587_v36 = vpop.trf.xlu1 }
 0x782   : > { %v2588_v58 = vpop.trf.xlu1 }
 0x783   : > { %v2599_v59 = vpack.c.bf16 %v2588_v58, %v2587_v36 }
 0x784   : > { %v2738_v22 = vld [vmem:[#allocation3 + $0x58] sm:$0xff] }
 0x785   : > { %2608 = vst.msk [vmem:[#allocation3 + $0x60] sm:$0xff] %vm2539_vm4, %v2599_v59 }
 0x786   : > { %v2589_v60 = vpop.trf.xlu1 }
 0x78a   : > { %v2590_v61 = vpop.trf.xlu1 }
 0x78b   : > { %v2600_v62 = vpack.c.bf16 %v2590_v61, %v2589_v60  ;;  %v6801_v60 = vld [vmem:[#allocation20] ss:$8 sps:$4 sm:$0xff]   ;;  %v6803_v61 = vld [vmem:[#allocation20 + $0x4] ss:$8 sps:$4 sm:$0xff]  }
 0x78c   : > { %v2739_v19 = vld [vmem:[#allocation3 + $0x60] sm:$0xff]  ;;  %3063 = vmatprep.subr.bf16.mxu1 %v6803_v61 }
 0x78d   : > { %2609 = vst.msk [vmem:[#allocation3 + $0x68] sm:$0xff] %vm2539_vm4, %v2600_v62  ;;  %v6806_v62 = vld [vmem:[#allocation20 + $0x14] ss:$8 sps:$4 sm:$0xff]   ;;  %3064 = vmatpush1.bf16.msra.mxu1 %v6801_v60 }
 0x78e   : > { %v2591_v63 = vpop.trf.xlu1  ;;  %3065 = vmatprep.subr.bf16.mxu1 %v6806_v62 }
 0x792   : > { %v2592_v0 = vpop.trf.xlu1 }
 0x793   : > { %v2601_v4 = vpack.c.bf16 %v2592_v0, %v2591_v63  ;;  %v6804_v63 = vld [vmem:[#allocation20 + $0x10] ss:$8 sps:$4 sm:$0xff]   ;;  %v6809_v0 = vld [vmem:[#allocation20 + $0x24] ss:$8 sps:$4 sm:$0xff]  }
 0x794   : > { %v2740_v23 = vld [vmem:[#allocation3 + $0x68] sm:$0xff]  ;;  %3066 = vmatpush1.bf16.msra.mxu1 %v6804_v63 }
 0x795   : > { %2610 = vst.msk [vmem:[#allocation3 + $0x70] sm:$0xff] %vm2539_vm4, %v2601_v4  ;;  %v6807_v4 = vld [vmem:[#allocation20 + $0x20] ss:$8 sps:$4 sm:$0xff]   ;;  %3067 = vmatprep.subr.bf16.mxu1 %v6809_v0 }
 0x796   : > { %v2593_v5 = vpop.trf.xlu1  ;;  %v6851_v0 = vld [vmem:[#allocation32] ss:$8 sps:$4 sm:$0xff]  }
 0x798   : > { %3068 = vmatpush1.bf16.msra.mxu1 %v6807_v4  ;;  %v6853_v4 = vld [vmem:[#allocation32 + $0x4] ss:$8 sps:$4 sm:$0xff]  }
 0x79a   : > { %v2594_v6 = vpop.trf.xlu1 }
 0x79b   : > { %v2602_v7 = vpack.c.bf16 %v2594_v6, %v2593_v5  ;;  %v6812_v5 = vld [vmem:[#allocation20 + $0x34] ss:$8 sps:$4 sm:$0xff]   ;;  %v6810_v6 = vld [vmem:[#allocation20 + $0x30] ss:$8 sps:$4 sm:$0xff]  }
 0x79c   : > { %v2741_v24 = vld [vmem:[#allocation3 + $0x70] sm:$0xff]  ;;  %3069 = vmatprep.subr.bf16.mxu1 %v6812_v5  ;;  %v3456_v5 = vld [vmem:[#allocation34] sm:$0xff] }
 0x79d   : > { %2611 = vst.msk [vmem:[#allocation3 + $0x78] sm:$0xff] %vm2539_vm4, %v2602_v7  ;;  %v6815_v7 = vld [vmem:[#allocation20 + $0x44] ss:$8 sps:$4 sm:$0xff]   ;;  %3070 = vmatpush1.bf16.msra.mxu1 %v6810_v6  ;;  %v3460_v6 = vld [vmem:[#allocation34 + $0x20] sm:$0xff] }
 0x79e   : > { %3071 = vmatprep.subr.bf16.mxu1 %v6815_v7  ;;  %v6856_v7 = vld [vmem:[#allocation32 + $0x14] ss:$8 sps:$4 sm:$0xff]  }
 0x7a4   : > { %v2742_v25 = vld [vmem:[#allocation3 + $0x78] sm:$0xff] }
 0x83b   : > { %v2658_v47 = vpop.f32.mrb[20].mxu0 }
 0x83c   : > { %v2664_v48 = vsel %vm825_vm6, %v2658_v47, -1e+30  ;;  %v6228_v49 = vpop.f32.mrb[21].mxu0 }
 0x83d   : > { %v2661_v50 = vpop.f32.mrb[22].mxu0  ;;  %v2665_v51 = vsel %vm2539_vm4, %v2664_v48, -inf }
 0x83e   : > { %2666 = vmax.xlane.f32.xlu0 %v2665_v51  ;;  %v6229_v52 = vpop.f32.mrb[23].mxu0 }
 0x854   : > { %2551 = vrot.lane.b32.xlu0 %v2016_v57, %s7755_s29 }
 0x8cb   : > { %v2667_v26 = vpop.xlane.xlu0 %2666 }
 0x8cc   : > { %v2668_v8 = vmax.f32 %v2667_v26, -1e+30  ;;  %v6813_v26 = vld [vmem:[#allocation20 + $0x40] ss:$8 sps:$4 sm:$0xff]  }
 0x8cd   : > { %3072 = vmatpush1.bf16.msra.mxu1 %v6813_v26  ;;  %v5925_v26 = vcombine.low %v3456_v5, %v3460_v6 }
 0x8ce   : > { %v2672_v9 = vsub.f32 %v2664_v48, %v2668_v8  ;;  %v2669_v30 = vsub.f32 -1e+30, %v2668_v8  ;;  %v6818_v8 = vld [vmem:[#allocation20 + $0x54] ss:$8 sps:$4 sm:$0xff]  }
 0x8cf   : > { %v2552_v55 = vpop.permute.xlu0 %2551  ;;  %3073 = vmatprep.subr.bf16.mxu1 %v6818_v8  ;;  %v5926_v8 = vcombine.high %v3456_v5, %v3460_v6  ;;  %v6875_v5 = vld [vmem:[#allocation32 + $0x80] ss:$8 sps:$4 sm:$0xff]  }
 0x8d0   : > { %v2673_v12 = vmul.f32 1.442695, %v2672_v9  ;;  %v2553_v13 = vmul.f32 %v2552_v55, %v8484_v43  ;;  %v2737_v43 = vld [vmem:[#allocation3 + $0x50] sm:$0xff]  ;;  %v2670_v31 = vmul.f32 1.442695, %v2669_v30 }
 0x8d1   : > { %v6816_v9 = vld [vmem:[#allocation20 + $0x50] ss:$8 sps:$4 sm:$0xff]   ;;  %v6821_v55 = vld [vmem:[#allocation20 + $0x64] ss:$8 sps:$4 sm:$0xff]  }
 0x8d2   : > { %v2554_v14 = vadd.f32 %v2553_v13, %v2550_v11  ;;  %7097 = vpow2.f32 %v2673_v12  ;;  %3074 = vmatpush1.bf16.msra.mxu1 %v6816_v9  ;;  %v6819_v11 = vld [vmem:[#allocation20 + $0x60] ss:$8 sps:$4 sm:$0xff]   ;;  %v6824_v12 = vld [vmem:[#allocation20 + $0x74] ss:$8 sps:$4 sm:$0xff]   ;;  %v6822_v13 = vld [vmem:[#allocation20 + $0x70] ss:$8 sps:$4 sm:$0xff]  }
 0x8d3   : > { %7099 = vpow2.f32 %v2670_v31  ;;  %3075 = vmatprep.subr.bf16.mxu1 %v6821_v55  ;;  %v3464_v9 = vld [vmem:[#allocation34 + $0x40] sm:$0xff] }
 0x8d4   : > { %v2560_v15 = vpack.c.bf16 %v2554_v14, %v2554_v14  ;;  %v6827_v14 = vld [vmem:[#allocation20 + $0x84] ss:$8 sps:$4 sm:$0xff]   ;;  %v3468_v55 = vld [vmem:[#allocation34 + $0x60] sm:$0xff] }
 0x8d6   : > { %2562 = vst [vmem:[#allocation2 + $0x4] sm:$0xf] %v2560_v15  ;;  %3076 = vmatpush1.bf16.msra.mxu1 %v6819_v11  ;;  %v6825_v15 = vld [vmem:[#allocation20 + $0x80] ss:$8 sps:$4 sm:$0xff]  }
 0x8d7   : > { %3077 = vmatprep.subr.bf16.mxu1 %v6824_v12  ;;  %v6854_v11 = vld [vmem:[#allocation32 + $0x10] ss:$8 sps:$4 sm:$0xff]   ;;  %v5934_v12 = vcombine.high %v3464_v9, %v3468_v55 }
 0x8da   : > { %3078 = vmatpush1.bf16.msra.mxu1 %v6822_v13  ;;  %v3472_v13 = vld [vmem:[#allocation34 + $0x80] sm:$0xff] }
 0x8db   : > { %3079 = vmatprep.subr.bf16.mxu1 %v6827_v14  ;;  %v3476_v14 = vld [vmem:[#allocation34 + $0xa0] sm:$0xff] }
 0x8dc   : > { %v7098_v34 = vpop.eup %7097 }
 0x8dd   : > { %v2676_v10 = vsel %vm2539_vm4, %v7098_v34, 0.0  ;;  %v2680_v17 = vpack.c.bf16 %v7098_v34, %v7098_v34  ;;  %v2734_v28 = vld [vmem:[#allocation2 + $0x4] sm:$0xf]  ;;  %v7100_v32 = vpop.eup %7099 }
 0x8de   : > { %2677 = vadd.xlane.f32.xlu1 %v2676_v10  ;;  %v2675_v16 = vmul.f32 0.0, %v7100_v32  ;;  %v6830_v34 = vld [vmem:[#allocation20 + $0x94] ss:$8 sps:$4 sm:$0xff]   ;;  %3080 = vmatpush1.bf16.msra.mxu1 %v6825_v15  ;;  %v6828_v10 = vld [vmem:[#allocation20 + $0x90] ss:$8 sps:$4 sm:$0xff]  }
 0x8df   : > { %6233 = vmatmul.mubr.msk.bf16.vlgmr.msra.gmra.mrb[24].mxu0 %vm2539_vm4, %v2680_v17  ;;  %3081 = vmatprep.subr.bf16.mxu1 %v6830_v34  ;;  %v6833_v17 = vld [vmem:[#allocation20 + $0xa4] ss:$8 sps:$4 sm:$0xff]   ;;  %v5933_v34 = vcombine.low %v3464_v9, %v3468_v55 }
 0x8e0   : > { %6237 = vmatpush3.bf16.msra.mxu0 %v2735_v21  ;;  %6252 = vmatprep.mubr.msk.bf16.mxu0 %vm7756_vm3, %v7753_v41  ;;  %v6831_v21 = vld [vmem:[#allocation20 + $0xa0] ss:$8 sps:$4 sm:$0xff]  }
 0x8e1   : > { %6238 = vmatprep.subr.bf16.mxu0 %v7753_v41  ;;  %v6859_v15 = vld [vmem:[#allocation32 + $0x24] ss:$8 sps:$4 sm:$0xff]   ;;  %v6878_v55 = vld [vmem:[#allocation32 + $0x90] ss:$8 sps:$4 sm:$0xff]  }
 0x8e2   : > { %3082 = vmatpush1.bf16.msra.mxu1 %v6828_v10  ;;  %v5942_v10 = vcombine.high %v3472_v13, %v3476_v14 }
 0x8e3   : > { %3083 = vmatprep.subr.bf16.mxu1 %v6833_v17  ;;  %v6857_v17 = vld [vmem:[#allocation32 + $0x20] ss:$8 sps:$4 sm:$0xff]  }
 0x8e4   : > { %6239 = vmatpush3.bf16.msra.mxu0 %v2736_v35  ;;  %v6836_v35 = vld [vmem:[#allocation20 + $0xb4] ss:$8 sps:$4 sm:$0xff]  }
 0x8e5   : > { %6240 = vmatprep.subr.bf16.mxu0 %v7753_v41 }
 0x8e6   : > { %3084 = vmatpush1.bf16.msra.mxu1 %v6831_v21  ;;  %v3480_v21 = vld [vmem:[#allocation34 + $0xc0] sm:$0xff] }
 0x8e7   : > { %3085 = vmatprep.subr.bf16.mxu1 %v6836_v35  ;;  %v3484_v35 = vld [vmem:[#allocation34 + $0xe0] sm:$0xff] }
 0x8e8   : > { %6241 = vmatpush3.bf16.msra.mxu0 %v2737_v43  ;;  %v6834_v43 = vld [vmem:[#allocation20 + $0xb0] ss:$8 sps:$4 sm:$0xff]  }
 0x8e9   : > { %6242 = vmatprep.subr.bf16.mxu0 %v7753_v41 }
 0x8ea   : > { %3086 = vmatpush1.bf16.msra.mxu1 %v6834_v43  ;;  %v6862_v43 = vld [vmem:[#allocation32 + $0x34] ss:$8 sps:$4 sm:$0xff]  }
 0x8ec   : > { %6243 = vmatpush3.bf16.msra.mxu0 %v2738_v22  ;;  %v6839_v22 = vld [vmem:[#allocation20 + $0xc4] ss:$8 sps:$4 sm:$0xff]  }
 0x8ed   : > { %6244 = vmatprep.subr.bf16.mxu0 %v7753_v41  ;;  %3087 = vmatprep.subr.bf16.mxu1 %v6839_v22  ;;  %v5941_v22 = vcombine.low %v3472_v13, %v3476_v14  ;;  %v3540_v13 = vld [vmem:[#allocation34 + $0x2a0] sm:$0xff] }
 0x8ee   : > { %v6883_v14 = vld [vmem:[#allocation32 + $0xa4] ss:$8 sps:$4 sm:$0xff]  }
 0x8f0   : > { %6245 = vmatpush3.bf16.msra.mxu0 %v2739_v19  ;;  %v6837_v19 = vld [vmem:[#allocation20 + $0xc0] ss:$8 sps:$4 sm:$0xff]  }
 0x8f1   : > { %6246 = vmatprep.subr.bf16.mxu0 %v7753_v41  ;;  %3088 = vmatpush1.bf16.msra.mxu1 %v6837_v19  ;;  %v5950_v19 = vcombine.high %v3480_v21, %v3484_v35 }
 0x8f4   : > { %6247 = vmatpush3.bf16.msra.mxu0 %v2740_v23  ;;  %v6842_v23 = vld [vmem:[#allocation20 + $0xd4] ss:$8 sps:$4 sm:$0xff]  }
 0x8f5   : > { %6248 = vmatprep.subr.bf16.mxu0 %v7753_v41  ;;  %3089 = vmatprep.subr.bf16.mxu1 %v6842_v23  ;;  %v6860_v23 = vld [vmem:[#allocation32 + $0x30] ss:$8 sps:$4 sm:$0xff]  }
 0x8f8   : > { %6249 = vmatpush3.bf16.msra.mxu0 %v2741_v24  ;;  %v6840_v24 = vld [vmem:[#allocation20 + $0xd0] ss:$8 sps:$4 sm:$0xff]  }
 0x8f9   : > { %6250 = vmatprep.subr.bf16.mxu0 %v7753_v41  ;;  %3090 = vmatpush1.bf16.msra.mxu1 %v6840_v24  ;;  %v3488_v24 = vld [vmem:[#allocation34 + $0x100] sm:$0xff] }
 0x8fa   : > { %3091 = vmatprep.subr.bf16.mxu1 %v6845_v27  ;;  %v6865_v27 = vld [vmem:[#allocation32 + $0x44] ss:$8 sps:$4 sm:$0xff]  }
 0x8fc   : > { %6251 = vmatpush3.bf16.msra.mxu0 %v2742_v25  ;;  %v6843_v25 = vld [vmem:[#allocation20 + $0xe0] ss:$8 sps:$4 sm:$0xff]  }
 0x8fd   : > { %6256 = vmatprep.subr.bf16.mxu0 %v7753_v41  ;;  %3092 = vmatpush1.bf16.msra.mxu1 %v6843_v25  ;;  %v3492_v25 = vld [vmem:[#allocation34 + $0x120] sm:$0xff] }
 0x8ff   : > { %6253 = vmatmul.mubr.bf16.vlgmr.msra.gmra.mrb[28].mxu0 %v2734_v28  ;;  %v6848_v28 = vld [vmem:[#allocation20 + $0xf4] ss:$8 sps:$4 sm:$0xff]  }
 0x900   : > { %6257 = vmatpush3.bf16.msra.mxu0 %v2805_v29  ;;  %6258 = vmatprep.mubr.msk.bf16.mxu0 %vm7756_vm3, %v7753_v41  ;;  %v6846_v29 = vld [vmem:[#allocation20 + $0xf0] ss:$8 sps:$4 sm:$0xff]  }
 0x901   : > { %3093 = vmatprep.subr.bf16.mxu1 %v6848_v28  ;;  %3415 = vmatprep.subr.bf16.mxu0 %v6853_v4  ;;  %v5949_v28 = vcombine.low %v3480_v21, %v3484_v35  ;;  %v3548_v21 = vld [vmem:[#allocation34 + $0x2e0] sm:$0xff]  ;;  %v6886_v35 = vld [vmem:[#allocation32 + $0xb4] ss:$8 sps:$4 sm:$0xff]  }
 0x902   : > { %3094 = vmatpush1.bf16.msra.mxu1 %v6846_v29  ;;  %v5958_v29 = vcombine.high %v3488_v24, %v3492_v25 }
 0x903   : > { %4224 = vmatprep.subr.bf16.mxu1 %v5926_v8  ;;  %v6880_v8 = vld [vmem:[#allocation32 + $0x94] ss:$8 sps:$4 sm:$0xff]  }
 0x96b   : > { %v2678_v18 = vpop.xlane.xlu1 %2677 }
 0x96c   : > { %v2679_v33 = vadd.f32 %v2678_v18, %v2675_v16 }
 0x96e   : > { %7101 = vrcp.f32 %v2679_v33 }
 0x978   : > { %v7102_v42 = vpop.eup %7101 }
 0x9b2   : > { %v2723_v37 = vpop.f32.mrb[24].mxu0 }
 0x9b3   : > { %v2729_v38 = vadd.f32 %v2723_v37, %v2675_v16  ;;  %v6234_v40 = vpop.f32.mrb[25].mxu0 }
 0x9b4   : > { %v2726_v44 = vpop.f32.mrb[26].mxu0 }
 0x9b5   : > { %v2731_v45 = vmul.f32 %v7102_v42, %v2729_v38  ;;  %v6235_v47 = vpop.f32.mrb[27].mxu0 }
 0x9b7   : > { %v2732_v48 = vpack.c.bf16 %v2731_v45, %v2731_v45 }
 0x9b9   : > { %2733 = vst [vmem:[#allocation5] sm:$0xf] %v2732_v48 }
 0x9d2   : > { %v2777_v49 = vpop.f32.mrb[28].mxu0 }
 0x9d3   : > { %v2783_v41 = vsel %vm825_vm6, %v2777_v49, -1e+30  ;;  %v6254_v50 = vpop.f32.mrb[29].mxu0 }
 0x9d4   : > { %v2780_v51 = vpop.f32.mrb[30].mxu0  ;;  %v2784_v52 = vsel %vm2539_vm4, %v2783_v41, -inf }
 0x9d5   : > { %2785 = vmax.xlane.f32.xlu0 %v2784_v52  ;;  %v6255_v53 = vpop.f32.mrb[31].mxu0  ;;  %v832_v51 = vld [vmem:[#allocation22] sm:$0x3] }
 0x9d6   : > { %v2889_v52 = vrot.slane %v832_v51, %v8399_v2  ;;  %v2893_v53 = vrot.slane %v832_v51, %v8402_v3 }
 0xa62   : > { %v8553_v54 = vpop.xlane.xlu0 %2785 }
 0xa63   : > { %v2787_v56 = vmax.f32 %v8553_v54, -1e+30 }
 0xa65   : > { %v2791_v36 = vsub.f32 %v2783_v41, %v2787_v56  ;;  %v2788_v30 = vsub.f32 -1e+30, %v2787_v56  ;;  %v3104_v56 = vld [vmem:[%s8332_s1] sm:$0xff] }
 0xa67   : > { %v2792_v57 = vmul.f32 1.442695, %v2791_v36  ;;  %v2789_v31 = vmul.f32 1.442695, %v2788_v30  ;;  %v6863_v30 = vld [vmem:[#allocation32 + $0x40] ss:$8 sps:$4 sm:$0xff]  }
 0xa69   : > { %7103 = vpow2.f32 %v2792_v57 }
 0xa6a   : > { %7105 = vpow2.f32 %v2789_v31  ;;  %v3496_v31 = vld [vmem:[#allocation34 + $0x140] sm:$0xff] }
 0xa73   : > { %v7104_v58 = vpop.eup %7103 }
 0xa74   : > { %v2795_v59 = vsel %vm2539_vm4, %v7104_v58, 0.0  ;;  %v2799_v46 = vpack.c.bf16 %v7104_v58, %v7104_v58  ;;  %v7106_v32 = vpop.eup %7105  ;;  %v3105_v58 = vld [vmem:[%s8332_s1 + $0x8] sm:$0xff]  ;;  %s7757_s1 = smov [#allocation37]  }
 0xa75   : > { %2796 = vadd.xlane.f32.xlu0 %v2795_v59  ;;  %v2794_v16 = vmul.f32 0.0, %v7106_v32  ;;  %v3500_v32 = vld [vmem:[#allocation34 + $0x160] sm:$0xff]  ;;  %s7629_s21 = sshll.u32 %s7757_s1, 4  ;;  %s7630_s21 = int_to_ptr.vmem [resolvable:$false] %s7629_s21 }
 0xa76   : > { %6259 = vmatmul.mubr.msk.bf16.vlgmr.msra.gmra.mrb[32].mxu0 %vm2539_vm4, %v2799_v46  ;;  %s7631_s29 = scalar_lea.vmem %s7630_s21, 512  ;;  %p7632_p5 = scmp.lt.s32.totalorder %s8658_s7, %s7630_s21 }
 0xa77   : > { %3416 = vmatpush1.bf16.msra.mxu0 %v6851_v0  ;;  %v6877_v0 = vld [vmem:[#allocation32 + $0x84] ss:$8 sps:$4 sm:$0xff]   ;;  %p7633_p7 = scmp.lt.s32.totalorder %s7631_s29, %s7625_s27 }
 0xa78   : > { %3417 = vmatprep.subr.bf16.mxu0 %v6856_v7  ;;  %v3528_v7 = vld [vmem:[#allocation34 + $0x240] sm:$0xff] }
 0xa79   : > { %p7634_p4 = por %p7633_p7, %p7632_p5 }
 0xa7b   : > { %3418 = vmatpush1.bf16.msra.mxu0 %v6854_v11  ;;  %p7635_p1 = pnand %p7634_p4, %p7628_p13 }
 0xa7c   : > { %3419 = vmatprep.subr.bf16.mxu0 %v6859_v15 }
 0xa7f   : > { %3420 = vmatpush1.bf16.msra.mxu0 %v6857_v17  ;;  %v3544_v17 = vld [vmem:[#allocation34 + $0x2c0] sm:$0xff] }
 0xa80   : > { %3421 = vmatprep.subr.bf16.mxu0 %v6862_v43  ;;  %v6014_v43 = vcombine.high %v3544_v17, %v3548_v21 }
 0xa83   : > { %3422 = vmatpush1.bf16.msra.mxu0 %v6860_v23  ;;  %v3552_v23 = vld [vmem:[#allocation34 + $0x300] sm:$0xff] }
 0xa84   : > { %3423 = vmatprep.subr.bf16.mxu0 %v6865_v27 }
 0xa87   : > { %3424 = vmatpush1.bf16.msra.mxu0 %v6863_v30  ;;  %v3560_v30 = vld [vmem:[#allocation34 + $0x340] sm:$0xff] }
 0xb02   : > { %v2797_v18 = vpop.xlane.xlu0 %2796 }
 0xb03   : > { %v2798_v33 = vadd.f32 %v2797_v18, %v2794_v16  ;;  %v6868_v18 = vld [vmem:[#allocation32 + $0x54] ss:$8 sps:$4 sm:$0xff]  }
 0xb04   : > { %3425 = vmatprep.subr.bf16.mxu0 %v6868_v18 }
 0xb05   : > { %7107 = vrcp.f32 %v2798_v33  ;;  %v5966_v33 = vcombine.high %v3496_v31, %v3500_v32 }
 0xb0f   : > { %v7108_v42 = vpop.eup %7107 }
 0xb49   : > { %v2841_v37 = vpop.f32.mrb[32].mxu0 }
 0xb4a   : > { %v2847_v38 = vadd.f32 %v2841_v37, %v2794_v16  ;;  %v6260_v40 = vpop.f32.mrb[33].mxu0  ;;  %v5957_v16 = vcombine.low %v3488_v24, %v3492_v25  ;;  %v6866_v37 = vld [vmem:[#allocation32 + $0x50] ss:$8 sps:$4 sm:$0xff]   ;;  %v3556_v24 = vld [vmem:[#allocation34 + $0x320] sm:$0xff] }
 0xb4b   : > { %v2844_v44 = vpop.f32.mrb[34].mxu0  ;;  %v3508_v40 = vld [vmem:[#allocation34 + $0x1a0] sm:$0xff]  ;;  %3426 = vmatpush1.bf16.msra.mxu0 %v6866_v37  ;;  %v6022_v27 = vcombine.high %v3552_v23, %v3556_v24 }
 0xb4c   : > { %v2849_v45 = vmul.f32 %v7108_v42, %v2847_v38  ;;  %v6261_v47 = vpop.f32.mrb[35].mxu0  ;;  %v3504_v38 = vld [vmem:[#allocation34 + $0x180] sm:$0xff]  ;;  %v5965_v44 = vcombine.low %v3496_v31, %v3500_v32  ;;  %v6892_v32 = vld [vmem:[#allocation32 + $0xd4] ss:$8 sps:$4 sm:$0xff]  }
 0xb4d   : > { %v6871_v42 = vld [vmem:[#allocation32 + $0x64] ss:$8 sps:$4 sm:$0xff]   ;;  %v6869_v47 = vld [vmem:[#allocation32 + $0x60] ss:$8 sps:$4 sm:$0xff]  }
 0xb4e   : > { %v2850_v48 = vpack.c.bf16 %v2849_v45, %v2849_v45  ;;  %v5974_v45 = vcombine.high %v3504_v38, %v3508_v40  ;;  %3427 = vmatprep.subr.bf16.mxu0 %v6871_v42  ;;  %v6889_v25 = vld [vmem:[#allocation32 + $0xc4] ss:$8 sps:$4 sm:$0xff]  }
 0xb4f   : > { %3428 = vmatpush1.bf16.msra.mxu0 %v6869_v47  ;;  %v3564_v31 = vld [vmem:[#allocation34 + $0x360] sm:$0xff] }
 0xb50   : > { %2851 = vst [vmem:[#allocation5 + $0x4] sm:$0xf] %v2850_v48  ;;  %v3512_v48 = vld [vmem:[#allocation34 + $0x1c0] sm:$0xff]  ;;  %v6030_v18 = vcombine.high %v3560_v30, %v3564_v31 }
 0xb51   : > { %v3568_v37 = vld [vmem:[#allocation34 + $0x380] sm:$0xff] }
 0xb52   : > { %v3576_v47 = vld [vmem:[#allocation34 + $0x3c0] sm:$0xff] }
 0xb57   : > { %v2852_v49 = vld [vmem:[#allocation5] sm:$0xff] }
 0xb58   : > { %v5859_v41 = vcombine.low %v2852_v49, %v2852_v49  ;;  %v5860_v50 = vcombine.high %v2852_v49, %v2852_v49  ;;  %v3516_v49 = vld [vmem:[#allocation34 + $0x1e0] sm:$0xff] }
 0xb59   : > { %v5982_v51 = vcombine.high %v3512_v48, %v3516_v49 }
 0xb5a   : > { %3095 = vmatprep.mubr.bf16.mxu1 %v5860_v50  ;;  %v5973_v50 = vcombine.low %v3504_v38, %v3508_v40  ;;  %v3572_v38 = vld [vmem:[#allocation34 + $0x3a0] sm:$0xff] }
 0xb5b   : > { %3096 = vmatmul.mubr.bf16.vlgmr.msra.gmra.mrb[8].mxu1 %v5859_v41  ;;  %v6874_v41 = vld [vmem:[#allocation32 + $0x74] ss:$8 sps:$4 sm:$0xff]   ;;  %v6895_v40 = vld [vmem:[#allocation32 + $0xe4] ss:$8 sps:$4 sm:$0xff]   ;;  %v6038_v42 = vcombine.high %v3568_v37, %v3572_v38 }
 0xb5c   : > { %4225 = vmatpush1.bf16.msra.mxu1 %v5925_v26  ;;  %3429 = vmatprep.subr.bf16.mxu0 %v6874_v41  ;;  %v3532_v26 = vld [vmem:[#allocation34 + $0x260] sm:$0xff] }
 0xb5d   : > { %4226 = vmatprep.subr.bf16.mxu1 %v5934_v12  ;;  %v5998_v9 = vcombine.high %v3528_v7, %v3532_v26  ;;  %v5997_v11 = vcombine.low %v3528_v7, %v3532_v26  ;;  %v3536_v12 = vld [vmem:[#allocation34 + $0x280] sm:$0xff] }
 0xb5e   : > { %v6006_v15 = vcombine.high %v3536_v12, %v3540_v13 }
 0xb60   : > { %4227 = vmatpush1.bf16.msra.mxu1 %v5933_v34  ;;  %v6881_v34 = vld [vmem:[#allocation32 + $0xa0] ss:$8 sps:$4 sm:$0xff]  }
 0xb61   : > { %4228 = vmatprep.subr.bf16.mxu1 %v5942_v10  ;;  %v6005_v10 = vcombine.low %v3536_v12, %v3540_v13  ;;  %v3150_v13 = vld [vmem:[#allocation7] sm:$0x3] }
 0xb64   : > { %4229 = vmatpush1.bf16.msra.mxu1 %v5941_v22  ;;  %v6884_v22 = vld [vmem:[#allocation32 + $0xb0] ss:$8 sps:$4 sm:$0xff]  }
 0xb65   : > { %4230 = vmatprep.subr.bf16.mxu1 %v5950_v19  ;;  %v6013_v19 = vcombine.low %v3544_v17, %v3548_v21  ;;  %v830_v17 = vld [vmem:[#allocation29] sm:$0x3]  ;;  %v3161_v21 = vrot.slane %v3150_v13, %v8402_v3 }
 0xb68   : > { %4231 = vmatpush1.bf16.msra.mxu1 %v5949_v28  ;;  %v6887_v28 = vld [vmem:[#allocation32 + $0xc0] ss:$8 sps:$4 sm:$0xff]  }
 0xb69   : > { %4232 = vmatprep.subr.bf16.mxu1 %v5958_v29  ;;  %v6021_v29 = vcombine.low %v3552_v23, %v3556_v24  ;;  %v3193_v24 = vrot.slane %v830_v17, %v8399_v2 }
 0xb6c   : > { %4233 = vmatpush1.bf16.msra.mxu1 %v5957_v16  ;;  %v6890_v16 = vld [vmem:[#allocation32 + $0xd0] ss:$8 sps:$4 sm:$0xff]  }
 0xb6d   : > { %4234 = vmatprep.subr.bf16.mxu1 %v5966_v33  ;;  %v6029_v33 = vcombine.low %v3560_v30, %v3564_v31 }
 0xb70   : > { %4235 = vmatpush1.bf16.msra.mxu1 %v5965_v44  ;;  %v6893_v44 = vld [vmem:[#allocation32 + $0xe0] ss:$8 sps:$4 sm:$0xff]  }
 0xb71   : > { %4236 = vmatprep.subr.bf16.mxu1 %v5974_v45  ;;  %v6037_v45 = vcombine.low %v3568_v37, %v3572_v38 }
 0xb74   : > { %4237 = vmatpush1.bf16.msra.mxu1 %v5973_v50  ;;  %v6896_v50 = vld [vmem:[#allocation32 + $0xf0] ss:$8 sps:$4 sm:$0xff]  }
 0xb75   : > { %4238 = vmatprep.subr.bf16.mxu1 %v5982_v51 }
 0xc2e   : > { %v3097_v54 = vpop.f32.mrb[8].mxu1 }
 0xc2f   : > { %v3098_v36 = vadd.f32 %v3097_v54, %v2889_v52  ;;  %v3099_v57 = vpop.f32.mrb[9].mxu1  ;;  %v6872_v52 = vld [vmem:[#allocation32 + $0x70] ss:$8 sps:$4 sm:$0xff]  }
 0xc30   : > { %v3100_v59 = vadd.f32 %v3099_v57, %v2893_v53  ;;  %v3101_v46 = vpop.f32.mrb[10].mxu1  ;;  %v5981_v53 = vcombine.low %v3512_v48, %v3516_v49  ;;  %3430 = vmatpush1.bf16.msra.mxu0 %v6872_v52  ;;  %v3580_v48 = vld [vmem:[#allocation34 + $0x3e0] sm:$0xff]  ;;  %v6898_v49 = vld [vmem:[#allocation32 + $0xf4] ss:$8 sps:$4 sm:$0xff]   ;;  %v8582_v52 = vld [vmem:[#allocation34 + $0x8] sm:$0xff] }
 0xc31   : > { %v8566_v60 = vadd.f32 %v3104_v56, %v3098_v36  ;;  %v3102_v61 = vpop.f32.mrb[11].mxu1  ;;  %3431 = vmatprep.subr.bf16.mxu0 %v6877_v0  ;;  %v6046_v41 = vcombine.high %v3576_v47, %v3580_v48  ;;  %v6045_v51 = vcombine.low %v3576_v47, %v3580_v48  ;;  %v3469_v47 = vld [vmem:[#allocation34 + $0x68] sm:$0xff]  ;;  %v3466_v48 = vld [vmem:[#allocation34 + $0x50] sm:$0xff] }
 0xc32   : > { %v8568_v62 = vadd.f32 %v3105_v58, %v3100_v59  ;;  %4239 = vmatpush1.bf16.msra.mxu1 %v5981_v53  ;;  %v3520_v61 = vld [vmem:[#allocation34 + $0x200] sm:$0xff]  ;;  %v8584_v53 = vld [vmem:[#allocation34 + $0x28] sm:$0xff] }
 0xc34   : > { %v3108_v63 = vadd.f32 %v8568_v62, %v8566_v60  ;;  %3432 = vmatpush1.bf16.msra.mxu0 %v6875_v5  ;;  %v828_v5 = vld [vmem:[#allocation26] sm:$0x3] }
 0xc35   : > { %3433 = vmatprep.subr.bf16.mxu0 %v6880_v8  ;;  %v3128_v7 = vrot.slane %v828_v5, %v8399_v2  ;;  %v3132_v26 = vrot.slane %v828_v5, %v8402_v3 }
 0xc36   : > { %3109 = vadd.xlane.f32.xlu0 %v3108_v63  ;;  %v3524_v63 = vld [vmem:[#allocation34 + $0x220] sm:$0xff] }
 0xc37   : > { %v5990_v4 = vcombine.high %v3520_v61, %v3524_v63  ;;  %v5989_v6 = vcombine.low %v3520_v61, %v3524_v63 }
 0xc38   : > { %3434 = vmatpush1.bf16.msra.mxu0 %v6878_v55 }
 0xc39   : > { %4240 = vmatprep.subr.bf16.mxu1 %v5990_v4  ;;  %3435 = vmatprep.subr.bf16.mxu0 %v6883_v14 }
 0xc3a   : > { %4241 = vmatpush1.bf16.msra.mxu1 %v5989_v6  ;;  %v829_v6 = vld [vmem:[#allocation28] sm:$0x3] }
 0xc3b   : > { %4242 = vmatprep.subr.bf16.mxu1 %v5998_v9  ;;  %v3141_v9 = vrot.slane %v829_v6, %v8399_v2  ;;  %v3145_v55 = vrot.slane %v829_v6, %v8402_v3 }
 0xc3c   : > { %3436 = vmatpush1.bf16.msra.mxu0 %v6881_v34 }
 0xc3d   : > { %3437 = vmatprep.subr.bf16.mxu0 %v6886_v35  ;;  %v831_v35 = vld [vmem:[#allocation31] sm:$0x3] }
 0xc3e   : > { %4243 = vmatpush1.bf16.msra.mxu1 %v5997_v11 }
 0xc3f   : > { %4244 = vmatprep.subr.bf16.mxu1 %v6006_v15 }
 0xc40   : > { %3438 = vmatpush1.bf16.msra.mxu0 %v6884_v22 }
 0xc41   : > { %3439 = vmatprep.subr.bf16.mxu0 %v6889_v25  ;;  %v3210_v25 = vrot.slane %v831_v35, %v8399_v2 }
 0xc42   : > { %4245 = vmatpush1.bf16.msra.mxu1 %v6005_v10 }
 0xc43   : > { %4246 = vmatprep.subr.bf16.mxu1 %v6014_v43  ;;  %v3157_v43 = vrot.slane %v3150_v13, %v8399_v2 }
 0xc44   : > { %3440 = vmatpush1.bf16.msra.mxu0 %v6887_v28 }
 0xc45   : > { %3441 = vmatprep.subr.bf16.mxu0 %v6892_v32 }
 0xc46   : > { %4247 = vmatpush1.bf16.msra.mxu1 %v6013_v19 }
 0xc47   : > { %4248 = vmatprep.subr.bf16.mxu1 %v6022_v27 }
 0xc48   : > { %3442 = vmatpush1.bf16.msra.mxu0 %v6890_v16 }
 0xc49   : > { %3443 = vmatprep.subr.bf16.mxu0 %v6895_v40 }
 0xc4a   : > { %4249 = vmatpush1.bf16.msra.mxu1 %v6021_v29 }
 0xc4b   : > { %4250 = vmatprep.subr.bf16.mxu1 %v6030_v18 }
 0xc4c   : > { %3444 = vmatpush1.bf16.msra.mxu0 %v6893_v44  ;;  %v3465_v44 = vld [vmem:[#allocation34 + $0x48] sm:$0xff] }
 0xc4d   : > { %3445 = vmatprep.subr.bf16.mxu0 %v6898_v49  ;;  %v3470_v49 = vld [vmem:[#allocation34 + $0x70] sm:$0xff]  ;;  %v5935_v39 = vcombine.low %v3465_v44, %v3469_v47 }
 0xc4e   : > { %4251 = vmatpush1.bf16.msra.mxu1 %v6029_v33  ;;  %v5937_v5 = vcombine.low %v3466_v48, %v3470_v49 }
 0xc4f   : > { %4252 = vmatprep.subr.bf16.mxu1 %v6038_v42 }
 0xc50   : > { %3446 = vmatpush1.bf16.msra.mxu0 %v6896_v50 }
 0xc52   : > { %4253 = vmatpush1.bf16.msra.mxu1 %v6037_v45 }
 0xc53   : > { %4254 = vmatprep.subr.bf16.mxu1 %v6046_v41 }
 0xc56   : > { %4255 = vmatpush1.bf16.msra.mxu1 %v6045_v51 }
 0xcc3   : > { %v3110_v54 = vpop.xlane.xlu0 %3109 }
 0xcc4   : > { %v3111_v56 = vmul.f32 0.00390625, %v3110_v54  ;;  %v8586_v54 = vld [vmem:[#allocation34 + $0x10] sm:$0xff] }
 0xcc6   : > { %v8573_v36 = vsub.f32 %v8566_v60, %v3111_v56  ;;  %v8576_v57 = vsub.f32 %v8568_v62, %v3111_v56  ;;  %v5928_v56 = vcombine.high %v8582_v52, %v8584_v53 }
 0xcc8   : > { %v3114_v58 = vmul.f32 %v8573_v36, %v8573_v36  ;;  %v3115_v59 = vmul.f32 %v8576_v57, %v8576_v57  ;;  %4265 = vmatprep.subr.bf16.mxu0 %v5928_v56  ;;  %v3473_v56 = vld [vmem:[#allocation34 + $0x88] sm:$0xff] }
 0xcca   : > { %v3116_v46 = vadd.f32 %v3115_v59, %v3114_v58  ;;  %v8590_v58 = vld [vmem:[#allocation34 + $0x30] sm:$0xff]  ;;  %v5927_v59 = vcombine.low %v8582_v52, %v8584_v53 }
 0xccb   : > { %v5930_v61 = vcombine.high %v8586_v54, %v8590_v58 }
 0xccc   : > { %3117 = vadd.xlane.f32.xlu0 %v3116_v46  ;;  %v5929_v46 = vcombine.low %v8586_v54, %v8590_v58 }
 0xccd   : > { %4306 = vmatprep.subr.bf16.mxu1 %v5930_v61  ;;  %v5938_v61 = vcombine.high %v3466_v48, %v3470_v49 }
 0xd59   : > { %v3118_v63 = vpop.xlane.xlu0 %3117 }
 0xd5a   : > { %v3119_v0 = vmul.f32 0.00390625, %v3118_v63  ;;  %v3477_v63 = vld [vmem:[#allocation34 + $0xa8] sm:$0xff] }
 0xd5b   : > { %v5944_v6 = vcombine.high %v3473_v56, %v3477_v63  ;;  %v5943_v52 = vcombine.low %v3473_v56, %v3477_v63  ;;  %v3530_v56 = vld [vmem:[#allocation34 + $0x250] sm:$0xff] }
 0xd5c   : > { %v3120_v4 = vadd.f32 1e-05, %v3119_v0  ;;  %v3474_v0 = vld [vmem:[#allocation34 + $0x90] sm:$0xff] }
 0xd5e   : > { %7109 = vrsqrt.f32 %v3120_v4  ;;  %v3478_v4 = vld [vmem:[#allocation34 + $0xb0] sm:$0xff] }
 0xd5f   : > { %v5945_v53 = vcombine.low %v3474_v0, %v3478_v4 }
 0xd68   : > { %v7110_v8 = vpop.eup %7109 }
 0xd69   : > { %v3122_v11 = vmul.f32 %v7110_v8, %v8573_v36  ;;  %v3123_v12 = vmul.f32 %v7110_v8, %v8576_v57  ;;  %v3197_v36 = vrot.slane %v830_v17, %v8402_v3  ;;  %v3214_v57 = vrot.slane %v831_v35, %v8402_v3  ;;  %v3485_v8 = vld [vmem:[#allocation34 + $0xe8] sm:$0xff]  ;;  %v3502_v35 = vld [vmem:[#allocation34 + $0x170] sm:$0xff] }
 0xd6a   : > { %v3501_v17 = vld [vmem:[#allocation34 + $0x168] sm:$0xff] }
 0xd6b   : > { %v3135_v14 = vmul.f32 %v3128_v7, %v3122_v11  ;;  %v3136_v15 = vmul.f32 %v3132_v26, %v3123_v12  ;;  %v5946_v7 = vcombine.high %v3474_v0, %v3478_v4  ;;  %v3481_v26 = vld [vmem:[#allocation34 + $0xc8] sm:$0xff]  ;;  %v3490_v11 = vld [vmem:[#allocation34 + $0x110] sm:$0xff] }
 0xd6c   : > { %v5952_v54 = vcombine.high %v3481_v26, %v3485_v8  ;;  %v3494_v12 = vld [vmem:[#allocation34 + $0x130] sm:$0xff]  ;;  %v5951_v13 = vcombine.low %v3481_v26, %v3485_v8 }
 0xd6d   : > { %v3148_v34 = vadd.f32 %v3141_v9, %v3135_v14  ;;  %v3149_v10 = vadd.f32 %v3145_v55, %v3136_v15  ;;  %v3482_v9 = vld [vmem:[#allocation34 + $0xd0] sm:$0xff] }
 0xd6e   : > { %v3486_v55 = vld [vmem:[#allocation34 + $0xf0] sm:$0xff] }
 0xd6f   : > { %v3168_v22 = vcombine.high %v3148_v34, %v3149_v10  ;;  %v3152_v19 = vrot.slane %v3149_v10, 7  ;;  %v3151_v23 = vrot.slane %v3148_v34, 7  ;;  %v5954_v58 = vcombine.high %v3482_v9, %v3486_v55 }
 0xd70   : > { %v5953_v14 = vcombine.low %v3482_v9, %v3486_v55 }
 0xd71   : > { %v3175_v27 = vrot.slane %v3168_v22, %v8415_v20  ;;  %v3165_v28 = vsel %vm822_vm2, %v3161_v21, %v3152_v19  ;;  %v3164_v29 = vsel %vm822_vm2, %v3157_v43, %v3151_v23  ;;  %v3498_v21 = vld [vmem:[#allocation34 + $0x150] sm:$0xff]  ;;  %v5961_v22 = vcombine.low %v3490_v11, %v3494_v12 }
 0xd72   : > { %v3188_v30 = vsub.f32 %v3165_v28, %v3149_v10  ;;  %v3187_v31 = vsub.f32 %v3164_v29, %v3148_v34  ;;  %v5970_v23 = vcombine.high %v3498_v21, %v3502_v35  ;;  %v5969_v28 = vcombine.low %v3498_v21, %v3502_v35 }
 0xd73   : > { %v3176_v32 = vcombine.high %v3175_v27, %v3175_v27 }
 0xd74   : > { %v3201_v18 = vmul.f32 %v3197_v36, %v3188_v30  ;;  %v3218_v16 = vmul.f32 %v3214_v57, %v3188_v30  ;;  %v3200_v33 = vmul.f32 %v3193_v24, %v3187_v31  ;;  %v3217_v37 = vmul.f32 %v3210_v25, %v3187_v31  ;;  %v3505_v24 = vld [vmem:[#allocation34 + $0x188] sm:$0xff]  ;;  %v3506_v57 = vld [vmem:[#allocation34 + $0x190] sm:$0xff] }
 0xd75   : > { %v3183_v38 = vrot.slane %v3176_v32, %v8415_v20  ;;  %v5936_v20 = vcombine.high %v3465_v44, %v3469_v47  ;;  %v3509_v36 = vld [vmem:[#allocation34 + $0x1a8] sm:$0xff]  ;;  %v3510_v25 = vld [vmem:[#allocation34 + $0x1b0] sm:$0xff] }
 0xd76   : > { %v3203_v3 = vadd.f32 %v3201_v18, %v3149_v10  ;;  %v3220_v40 = vadd.f32 %v3218_v16, %v3149_v10  ;;  %v3202_v2 = vadd.f32 %v3200_v33, %v3148_v34  ;;  %v3219_v42 = vadd.f32 %v3217_v37, %v3148_v34  ;;  %v3497_v10 = vld [vmem:[#allocation34 + $0x148] sm:$0xff]  ;;  %v3514_v18 = vld [vmem:[#allocation34 + $0x1d0] sm:$0xff] }
 0xd77   : > { %v3184_v45 = vcombine.high %v3183_v38, %v3183_v38  ;;  %v5962_v34 = vcombine.high %v3490_v11, %v3494_v12  ;;  %v5968_v19 = vcombine.high %v3497_v10, %v3501_v17  ;;  %v5967_v27 = vcombine.low %v3497_v10, %v3501_v17  ;;  %v3513_v31 = vld [vmem:[#allocation34 + $0x1c8] sm:$0xff]  ;;  %v3518_v16 = vld [vmem:[#allocation34 + $0x1f0] sm:$0xff] }
 0xd78   : > { %v3205_v1 = vpack.c.bf16 %v3203_v3, %v3203_v3  ;;  %v8616_v41 = vpack.c.bf16 %v3220_v40, %v3220_v40  ;;  %v3204_v50 = vpack.c.bf16 %v3202_v2, %v3202_v2  ;;  %v8618_v51 = vpack.c.bf16 %v3219_v42, %v3219_v42  ;;  %v3517_v32 = vld [vmem:[#allocation34 + $0x1e8] sm:$0xff]  ;;  %v3522_v42 = vld [vmem:[#allocation34 + $0x210] sm:$0xff] }
 0xd79   : > { %3186 = vst.msk [vmem:[#allocation7] sm:$0x3] %vm8385_vm0, %v3184_v45  ;;  %v5976_v29 = vcombine.high %v3505_v24, %v3509_v36  ;;  %v5978_v30 = vcombine.high %v3506_v57, %v3510_v25  ;;  %v5975_v33 = vcombine.low %v3505_v24, %v3509_v36  ;;  %v5977_v37 = vcombine.low %v3506_v57, %v3510_v25  ;;  %v3521_v40 = vld [vmem:[#allocation34 + $0x208] sm:$0xff]  ;;  %v3526_v44 = vld [vmem:[#allocation34 + $0x230] sm:$0xff] }
 0xd7a   : > { %3447 = vmatprep.mubr.bf16.mxu0 %v3205_v1  ;;  %4256 = vmatprep.mubr.bf16.mxu1 %v8616_v41  ;;  %v5984_v38 = vcombine.high %v3513_v31, %v3517_v32  ;;  %v5986_v3 = vcombine.high %v3514_v18, %v3518_v16  ;;  %v3525_v2 = vld [vmem:[#allocation34 + $0x228] sm:$0xff]  ;;  %v5983_v45 = vcombine.low %v3513_v31, %v3517_v32 }
 0xd7b   : > { %3448 = vmatmul.mubr.bf16.vlgmr.msra.gmra.mrb[36].mxu0 %v3204_v50  ;;  %4257 = vmatmul.mubr.bf16.vlgmr.msra.gmra.mrb[12].mxu1 %v8618_v51  ;;  %v5985_v47 = vcombine.low %v3514_v18, %v3518_v16  ;;  %v5992_v48 = vcombine.high %v3521_v40, %v3525_v2  ;;  %v5994_v49 = vcombine.high %v3522_v42, %v3526_v44  ;;  %v3529_v1 = vld [vmem:[#allocation34 + $0x248] sm:$0xff] }
 0xd7c   : > { %4266 = vmatpush1.bf16.msra.mxu0 %v5927_v59  ;;  %4307 = vmatpush1.bf16.msra.mxu1 %v5929_v46  ;;  %v3489_v59 = vld [vmem:[#allocation34 + $0x108] sm:$0xff]  ;;  %v5993_v63 = vcombine.low %v3522_v42, %v3526_v44 }
 0xd7d   : > { %4297 = vmatprep.mubr.bf16.mxu0 %v8616_v41  ;;  %4338 = vmatprep.mubr.bf16.mxu1 %v8616_v41  ;;  %v3493_v46 = vld [vmem:[#allocation34 + $0x128] sm:$0xff] }
 0xd7e   : > { %4267 = vmatprep.subr.bf16.mxu0 %v5936_v20  ;;  %4308 = vmatprep.subr.bf16.mxu1 %v5938_v61  ;;  %v5960_v15 = vcombine.high %v3489_v59, %v3493_v46  ;;  %v5959_v43 = vcombine.low %v3489_v59, %v3493_v46  ;;  %v3533_v50 = vld [vmem:[#allocation34 + $0x268] sm:$0xff]  ;;  %v3534_v20 = vld [vmem:[#allocation34 + $0x270] sm:$0xff]  ;;  %v5991_v61 = vcombine.low %v3521_v40, %v3525_v2 }
 0xd7f   : > { %v6000_v0 = vcombine.high %v3529_v1, %v3533_v50  ;;  %v6002_v4 = vcombine.high %v3530_v56, %v3534_v20  ;;  %v5999_v26 = vcombine.low %v3529_v1, %v3533_v50  ;;  %v6001_v8 = vcombine.low %v3530_v56, %v3534_v20  ;;  %v6901_v50 = vld [vmem:[#allocation35 + $0x4] ss:$8 sps:$4 sm:$0xff]   ;;  %v3467_v56 = vld [vmem:[#allocation34 + $0x58] sm:$0xff] }
 0xd80   : > { %4268 = vmatpush1.bf16.msra.mxu0 %v5935_v39  ;;  %4309 = vmatpush1.bf16.msra.mxu1 %v5937_v5  ;;  %v3537_v39 = vld [vmem:[#allocation34 + $0x288] sm:$0xff]  ;;  %v3471_v20 = vld [vmem:[#allocation34 + $0x78] sm:$0xff] }
 0xd81   : > { %4269 = vmatprep.subr.bf16.mxu0 %v5944_v6  ;;  %4310 = vmatprep.subr.bf16.mxu1 %v5946_v7  ;;  %v3541_v5 = vld [vmem:[#allocation34 + $0x2a8] sm:$0xff]  ;;  %v3538_v6 = vld [vmem:[#allocation34 + $0x290] sm:$0xff] }
 0xd82   : > { %v3542_v7 = vld [vmem:[#allocation34 + $0x2b0] sm:$0xff]  ;;  %v6008_v9 = vcombine.high %v3537_v39, %v3541_v5  ;;  %v6007_v59 = vcombine.low %v3537_v39, %v3541_v5  ;;  %v3479_v39 = vld [vmem:[#allocation34 + $0xb8] sm:$0xff] }
 0xd83   : > { %v6010_v55 = vcombine.high %v3538_v6, %v3542_v7  ;;  %v6009_v46 = vcombine.low %v3538_v6, %v3542_v7  ;;  %v6904_v5 = vld [vmem:[#allocation35 + $0x14] ss:$8 sps:$4 sm:$0xff]   ;;  %v5939_v6 = vcombine.low %v3467_v56, %v3471_v20 }
 0xd84   : > { %4270 = vmatpush1.bf16.msra.mxu0 %v5943_v52  ;;  %4311 = vmatpush1.bf16.msra.mxu1 %v5945_v53  ;;  %v3545_v52 = vld [vmem:[#allocation34 + $0x2c8] sm:$0xff] }
 0xd85   : > { %4271 = vmatprep.subr.bf16.mxu0 %v5952_v54  ;;  %4312 = vmatprep.subr.bf16.mxu1 %v5954_v58  ;;  %v3549_v53 = vld [vmem:[#allocation34 + $0x2e8] sm:$0xff]  ;;  %v3546_v54 = vld [vmem:[#allocation34 + $0x2d0] sm:$0xff] }
 0xd86   : > { %v3550_v58 = vld [vmem:[#allocation34 + $0x2f0] sm:$0xff]  ;;  %v6016_v11 = vcombine.high %v3545_v52, %v3549_v53  ;;  %v6015_v10 = vcombine.low %v3545_v52, %v3549_v53 }
 0xd87   : > { %v6018_v12 = vcombine.high %v3546_v54, %v3550_v58  ;;  %v6017_v17 = vcombine.low %v3546_v54, %v3550_v58  ;;  %v6905_v54 = vld [vmem:[#allocation35 + $0x20] ss:$8 sps:$4 sm:$0xff]   ;;  %v3491_v58 = vld [vmem:[#allocation34 + $0x118] sm:$0xff] }
 0xd88   : > { %4272 = vmatpush1.bf16.msra.mxu0 %v5951_v13  ;;  %4313 = vmatpush1.bf16.msra.mxu1 %v5953_v14  ;;  %v3553_v13 = vld [vmem:[#allocation34 + $0x308] sm:$0xff] }
 0xd89   : > { %4273 = vmatprep.subr.bf16.mxu0 %v5960_v15  ;;  %4314 = vmatprep.subr.bf16.mxu1 %v5962_v34  ;;  %v3557_v14 = vld [vmem:[#allocation34 + $0x328] sm:$0xff]  ;;  %v3554_v15 = vld [vmem:[#allocation34 + $0x310] sm:$0xff] }
 0xd8a   : > { %v3558_v34 = vld [vmem:[#allocation34 + $0x330] sm:$0xff]  ;;  %v6024_v21 = vcombine.high %v3553_v13, %v3557_v14  ;;  %v6023_v24 = vcombine.low %v3553_v13, %v3557_v14  ;;  %v3499_v13 = vld [vmem:[#allocation34 + $0x158] sm:$0xff] }
 0xd8b   : > { %v6026_v35 = vcombine.high %v3554_v15, %v3558_v34  ;;  %v6025_v36 = vcombine.low %v3554_v15, %v3558_v34  ;;  %v3503_v14 = vld [vmem:[#allocation34 + $0x178] sm:$0xff]  ;;  %v6913_v15 = vld [vmem:[#allocation35 + $0x44] ss:$8 sps:$4 sm:$0xff]  }
 0xd8c   : > { %4274 = vmatpush1.bf16.msra.mxu0 %v5959_v43  ;;  %4315 = vmatpush1.bf16.msra.mxu1 %v5961_v22  ;;  %v3561_v43 = vld [vmem:[#allocation34 + $0x348] sm:$0xff] }
 0xd8d   : > { %4275 = vmatprep.subr.bf16.mxu0 %v5968_v19  ;;  %4316 = vmatprep.subr.bf16.mxu1 %v5970_v23  ;;  %v3565_v22 = vld [vmem:[#allocation34 + $0x368] sm:$0xff]  ;;  %v3562_v19 = vld [vmem:[#allocation34 + $0x350] sm:$0xff] }
 0xd8e   : > { %v3566_v23 = vld [vmem:[#allocation34 + $0x370] sm:$0xff]  ;;  %v6032_v57 = vcombine.high %v3561_v43, %v3565_v22  ;;  %v6031_v31 = vcombine.low %v3561_v43, %v3565_v22  ;;  %v5971_v22 = vcombine.low %v3499_v13, %v3503_v14 }
 0xd8f   : > { %v6034_v25 = vcombine.high %v3562_v19, %v3566_v23  ;;  %v6033_v32 = vcombine.low %v3562_v19, %v3566_v23  ;;  %v6916_v43 = vld [vmem:[#allocation35 + $0x54] ss:$8 sps:$4 sm:$0xff]   ;;  %v6914_v23 = vld [vmem:[#allocation35 + $0x50] ss:$8 sps:$4 sm:$0xff]  }
 0xd90   : > { %4276 = vmatpush1.bf16.msra.mxu0 %v5967_v27  ;;  %4317 = vmatpush1.bf16.msra.mxu1 %v5969_v28  ;;  %v3569_v27 = vld [vmem:[#allocation34 + $0x388] sm:$0xff] }
 0xd91   : > { %4277 = vmatprep.subr.bf16.mxu0 %v5976_v29  ;;  %4318 = vmatprep.subr.bf16.mxu1 %v5978_v30  ;;  %v3573_v28 = vld [vmem:[#allocation34 + $0x3a8] sm:$0xff]  ;;  %v3570_v29 = vld [vmem:[#allocation34 + $0x390] sm:$0xff] }
 0xd92   : > { %v3574_v30 = vld [vmem:[#allocation34 + $0x3b0] sm:$0xff]  ;;  %v6040_v18 = vcombine.high %v3569_v27, %v3573_v28  ;;  %v6039_v40 = vcombine.low %v3569_v27, %v3573_v28  ;;  %v6917_v28 = vld [vmem:[#allocation35 + $0x60] ss:$8 sps:$4 sm:$0xff]  }
 0xd93   : > { %v6042_v16 = vcombine.high %v3570_v29, %v3574_v30  ;;  %v6041_v2 = vcombine.low %v3570_v29, %v3574_v30  ;;  %v3523_v29 = vld [vmem:[#allocation34 + $0x218] sm:$0xff] }
 0xd94   : > { %4278 = vmatpush1.bf16.msra.mxu0 %v5975_v33  ;;  %4319 = vmatpush1.bf16.msra.mxu1 %v5977_v37  ;;  %v3577_v33 = vld [vmem:[#allocation34 + $0x3c8] sm:$0xff]  ;;  %v3527_v30 = vld [vmem:[#allocation34 + $0x238] sm:$0xff] }
 0xd95   : > { %4279 = vmatprep.subr.bf16.mxu0 %v5984_v38  ;;  %4320 = vmatprep.subr.bf16.mxu1 %v5986_v3  ;;  %v3581_v37 = vld [vmem:[#allocation34 + $0x3e8] sm:$0xff]  ;;  %v3578_v38 = vld [vmem:[#allocation34 + $0x3d0] sm:$0xff] }
 0xd96   : > { %v3582_v3 = vld [vmem:[#allocation34 + $0x3f0] sm:$0xff]  ;;  %v6048_v42 = vcombine.high %v3577_v33, %v3581_v37 }
 0xd97   : > { %v6050_v44 = vcombine.high %v3578_v38, %v3582_v3 }
 0xd98   : > { %4280 = vmatpush1.bf16.msra.mxu0 %v5983_v45  ;;  %4321 = vmatpush1.bf16.msra.mxu1 %v5985_v47  ;;  %v3459_v45 = vld [vmem:[#allocation34 + $0x18] sm:$0xff] }
 0xd99   : > { %4281 = vmatprep.subr.bf16.mxu0 %v5992_v48  ;;  %4322 = vmatprep.subr.bf16.mxu1 %v5994_v49  ;;  %v3463_v47 = vld [vmem:[#allocation34 + $0x38] sm:$0xff]  ;;  %v6047_v48 = vcombine.low %v3577_v33, %v3581_v37  ;;  %v6049_v49 = vcombine.low %v3578_v38, %v3582_v3  ;;  %v6925_v38 = vld [vmem:[#allocation35 + $0x84] ss:$8 sps:$4 sm:$0xff]   ;;  %v5995_v3 = vcombine.low %v3523_v29, %v3527_v30 }
 0xd9a   : > { %v5932_v1 = vcombine.high %v3459_v45, %v3463_v47  ;;  %v3531_v33 = vld [vmem:[#allocation34 + $0x258] sm:$0xff] }
 0xd9b   : > { %v3535_v37 = vld [vmem:[#allocation34 + $0x278] sm:$0xff] }
 0xd9c   : > { %4282 = vmatpush1.bf16.msra.mxu0 %v5991_v61  ;;  %4323 = vmatpush1.bf16.msra.mxu1 %v5993_v63  ;;  %v5931_v61 = vcombine.low %v3459_v45, %v3463_v47  ;;  %v5940_v63 = vcombine.high %v3467_v56, %v3471_v20  ;;  %v6928_v45 = vld [vmem:[#allocation35 + $0x94] ss:$8 sps:$4 sm:$0xff]   ;;  %v6003_v47 = vcombine.low %v3531_v33, %v3535_v37  ;;  %v6931_v56 = vld [vmem:[#allocation35 + $0xa4] ss:$8 sps:$4 sm:$0xff]  }
 0xd9d   : > { %4283 = vmatprep.subr.bf16.mxu0 %v6000_v0  ;;  %4324 = vmatprep.subr.bf16.mxu1 %v6002_v4  ;;  %v6899_v0 = vld [vmem:[#allocation35] ss:$8 sps:$4 sm:$0xff]   ;;  %v3475_v4 = vld [vmem:[#allocation34 + $0x98] sm:$0xff] }
 0xd9e   : > { %v5948_v7 = vcombine.high %v3475_v4, %v3479_v39  ;;  %v5947_v52 = vcombine.low %v3475_v4, %v3479_v39  ;;  %v3559_v4 = vld [vmem:[#allocation34 + $0x338] sm:$0xff] }
 0xd9f   : > { %v6934_v39 = vld [vmem:[#allocation35 + $0xb4] ss:$8 sps:$4 sm:$0xff]  }
 0xda0   : > { %4284 = vmatpush1.bf16.msra.mxu0 %v5999_v26  ;;  %4325 = vmatpush1.bf16.msra.mxu1 %v6001_v8  ;;  %v6902_v26 = vld [vmem:[#allocation35 + $0x10] ss:$8 sps:$4 sm:$0xff]  }
 0xda1   : > { %4285 = vmatprep.subr.bf16.mxu0 %v6008_v9  ;;  %4326 = vmatprep.subr.bf16.mxu1 %v6010_v55  ;;  %v3483_v8 = vld [vmem:[#allocation34 + $0xd8] sm:$0xff]  ;;  %v6907_v55 = vld [vmem:[#allocation35 + $0x24] ss:$8 sps:$4 sm:$0xff]  }
 0xda2   : > { %v3487_v9 = vld [vmem:[#allocation34 + $0xf8] sm:$0xff] }
 0xda3   : > { %v5956_v53 = vcombine.high %v3483_v8, %v3487_v9 }
 0xda4   : > { %4286 = vmatpush1.bf16.msra.mxu0 %v6007_v59  ;;  %4327 = vmatpush1.bf16.msra.mxu1 %v6009_v46  ;;  %v3495_v59 = vld [vmem:[#allocation34 + $0x138] sm:$0xff] }
 0xda5   : > { %4287 = vmatprep.subr.bf16.mxu0 %v6016_v11  ;;  %4328 = vmatprep.subr.bf16.mxu1 %v6018_v12  ;;  %v6910_v46 = vld [vmem:[#allocation35 + $0x34] ss:$8 sps:$4 sm:$0xff]   ;;  %v5964_v11 = vcombine.high %v3491_v58, %v3495_v59  ;;  %v6908_v12 = vld [vmem:[#allocation35 + $0x30] ss:$8 sps:$4 sm:$0xff]   ;;  %v5963_v34 = vcombine.low %v3491_v58, %v3495_v59 }
 0xda6   : > { %v3575_v58 = vld [vmem:[#allocation34 + $0x3b8] sm:$0xff] }
 0xda7   : > { %v6940_v59 = vld [vmem:[#allocation35 + $0xd4] ss:$8 sps:$4 sm:$0xff]  }
 0xda8   : > { %4288 = vmatpush1.bf16.msra.mxu0 %v6015_v10  ;;  %4329 = vmatpush1.bf16.msra.mxu1 %v6017_v17  ;;  %v5972_v10 = vcombine.high %v3499_v13, %v3503_v14  ;;  %v6911_v17 = vld [vmem:[#allocation35 + $0x40] ss:$8 sps:$4 sm:$0xff]   ;;  %v3583_v13 = vld [vmem:[#allocation34 + $0x3f8] sm:$0xff]  ;;  %v6943_v14 = vld [vmem:[#allocation35 + $0xe4] ss:$8 sps:$4 sm:$0xff]  }
 0xda9   : > { %4289 = vmatprep.subr.bf16.mxu0 %v6024_v21  ;;  %4330 = vmatprep.subr.bf16.mxu1 %v6026_v35  ;;  %v3507_v21 = vld [vmem:[#allocation34 + $0x198] sm:$0xff] }
 0xdaa   : > { %v3511_v35 = vld [vmem:[#allocation34 + $0x1b8] sm:$0xff] }
 0xdab   : > { %v5980_v19 = vcombine.high %v3507_v21, %v3511_v35 }
 0xdac   : > { %4290 = vmatpush1.bf16.msra.mxu0 %v6023_v24  ;;  %4331 = vmatpush1.bf16.msra.mxu1 %v6025_v36  ;;  %v3515_v24 = vld [vmem:[#allocation34 + $0x1d8] sm:$0xff] }
 0xdad   : > { %4291 = vmatprep.subr.bf16.mxu0 %v6032_v57  ;;  %4332 = vmatprep.subr.bf16.mxu1 %v6034_v25  ;;  %v3519_v36 = vld [vmem:[#allocation34 + $0x1f8] sm:$0xff]  ;;  %v6919_v57 = vld [vmem:[#allocation35 + $0x64] ss:$8 sps:$4 sm:$0xff]   ;;  %v5979_v25 = vcombine.low %v3507_v21, %v3511_v35 }
 0xdae   : > { %v5988_v27 = vcombine.high %v3515_v24, %v3519_v36  ;;  %v6944_v35 = vld [vmem:[#allocation35 + $0xf0] ss:$8 sps:$4 sm:$0xff]  }
 0xdb0   : > { %4292 = vmatpush1.bf16.msra.mxu0 %v6031_v31  ;;  %4333 = vmatpush1.bf16.msra.mxu1 %v6033_v32  ;;  %v6922_v31 = vld [vmem:[#allocation35 + $0x74] ss:$8 sps:$4 sm:$0xff]   ;;  %v5987_v32 = vcombine.low %v3515_v24, %v3519_v36 }
 0xdb1   : > { %4293 = vmatprep.subr.bf16.mxu0 %v6040_v18  ;;  %4334 = vmatprep.subr.bf16.mxu1 %v6042_v16  ;;  %v5996_v18 = vcombine.high %v3523_v29, %v3527_v30  ;;  %v6920_v16 = vld [vmem:[#allocation35 + $0x70] ss:$8 sps:$4 sm:$0xff]  }
 0xdb4   : > { %4294 = vmatpush1.bf16.msra.mxu0 %v6039_v40  ;;  %4335 = vmatpush1.bf16.msra.mxu1 %v6041_v2  ;;  %v6004_v40 = vcombine.high %v3531_v33, %v3535_v37  ;;  %v6923_v2 = vld [vmem:[#allocation35 + $0x80] ss:$8 sps:$4 sm:$0xff]   ;;  %v6952_v33 = vld [vmem:[#allocation35 + $0x114] ss:$8 sps:$4 sm:$0xff]   ;;  %v6955_v37 = vld [vmem:[#allocation35 + $0x124] ss:$8 sps:$4 sm:$0xff]  }
 0xdb5   : > { %4295 = vmatprep.subr.bf16.mxu0 %v6048_v42  ;;  %4336 = vmatprep.subr.bf16.mxu1 %v6050_v44  ;;  %v3539_v42 = vld [vmem:[#allocation34 + $0x298] sm:$0xff] }
 0xdb6   : > { %v3543_v44 = vld [vmem:[#allocation34 + $0x2b8] sm:$0xff] }
 0xdb7   : > { %v6011_v20 = vcombine.low %v3539_v42, %v3543_v44 }
 0xdb8   : > { %4296 = vmatpush1.bf16.msra.mxu0 %v6047_v48  ;;  %4337 = vmatpush1.bf16.msra.mxu1 %v6049_v49  ;;  %v6012_v48 = vcombine.high %v3539_v42, %v3543_v44  ;;  %v6926_v49 = vld [vmem:[#allocation35 + $0x90] ss:$8 sps:$4 sm:$0xff]   ;;  %v6959_v42 = vld [vmem:[#allocation35 + $0x140] ss:$8 sps:$4 sm:$0xff]   ;;  %v6964_v44 = vld [vmem:[#allocation35 + $0x154] ss:$8 sps:$4 sm:$0xff]  }
 0xdb9   : > { %4347 = vmatprep.subr.bf16.mxu0 %v5932_v1  ;;  %5180 = vmatprep.subr.bf16.mxu1 %v6901_v50  ;;  %v3547_v1 = vld [vmem:[#allocation34 + $0x2d8] sm:$0xff] }
 0xdba   : > { %v3551_v50 = vld [vmem:[#allocation34 + $0x2f8] sm:$0xff] }
 0xdbb   : > { %4298 = vmatmul.mubr.bf16.vlgmr.msra.gmra.mrb[40].mxu0 %v8618_v51  ;;  %4339 = vmatmul.mubr.bf16.vlgmr.msra.gmra.mrb[16].mxu1 %v8618_v51 }
 0xdbc   : > { %4348 = vmatpush1.bf16.msra.mxu0 %v5931_v61  ;;  %4379 = vmatprep.mubr.bf16.mxu0 %v8616_v41  ;;  %v5955_v41 = vcombine.low %v3483_v8, %v3487_v9  ;;  %v6020_v61 = vcombine.high %v3547_v1, %v3551_v50  ;;  %v3567_v8 = vld [vmem:[#allocation34 + $0x378] sm:$0xff]  ;;  %v6937_v9 = vld [vmem:[#allocation35 + $0xc4] ss:$8 sps:$4 sm:$0xff]  }
 0xdbd   : > { %4349 = vmatprep.subr.bf16.mxu0 %v5940_v63  ;;  %5181 = vmatpush1.bf16.msra.mxu1 %v6899_v0  ;;  %v6929_v63 = vld [vmem:[#allocation35 + $0xa0] ss:$8 sps:$4 sm:$0xff]   ;;  %v3555_v0 = vld [vmem:[#allocation34 + $0x318] sm:$0xff] }
 0xdbe   : > { %5182 = vmatprep.subr.bf16.mxu1 %v6904_v5  ;;  %v6019_v5 = vcombine.low %v3547_v1, %v3551_v50  ;;  %v6968_v1 = vld [vmem:[#allocation35 + $0x170] ss:$8 sps:$4 sm:$0xff]   ;;  %v6973_v50 = vld [vmem:[#allocation35 + $0x184] ss:$8 sps:$4 sm:$0xff]  }
 0xdc0   : > { %4350 = vmatpush1.bf16.msra.mxu0 %v5939_v6  ;;  %v6028_v6 = vcombine.high %v3555_v0, %v3559_v4 }
 0xdc1   : > { %4351 = vmatprep.subr.bf16.mxu0 %v5948_v7  ;;  %5183 = vmatpush1.bf16.msra.mxu1 %v6902_v26  ;;  %v6932_v7 = vld [vmem:[#allocation35 + $0xb0] ss:$8 sps:$4 sm:$0xff]  }
 0xdc2   : > { %5184 = vmatprep.subr.bf16.mxu1 %v6907_v55  ;;  %v3563_v26 = vld [vmem:[#allocation34 + $0x358] sm:$0xff]  ;;  %v6027_v55 = vcombine.low %v3555_v0, %v3559_v4  ;;  %v6977_v0 = vld [vmem:[#allocation35 + $0x1a0] ss:$8 sps:$4 sm:$0xff]  }
 0xdc3   : > { %v6982_v4 = vld [vmem:[#allocation35 + $0x1b4] ss:$8 sps:$4 sm:$0xff]  }
 0xdc4   : > { %4352 = vmatpush1.bf16.msra.mxu0 %v5947_v52  ;;  %v6036_v52 = vcombine.high %v3563_v26, %v3567_v8 }
 0xdc5   : > { %4353 = vmatprep.subr.bf16.mxu0 %v5956_v53  ;;  %5185 = vmatpush1.bf16.msra.mxu1 %v6905_v54  ;;  %v6935_v53 = vld [vmem:[#allocation35 + $0xc0] ss:$8 sps:$4 sm:$0xff]   ;;  %v3571_v54 = vld [vmem:[#allocation34 + $0x398] sm:$0xff] }
 0xdc6   : > { %5186 = vmatprep.subr.bf16.mxu1 %v6910_v46  ;;  %v6035_v46 = vcombine.low %v3563_v26, %v3567_v8  ;;  %v6986_v26 = vld [vmem:[#allocation35 + $0x1d0] ss:$8 sps:$4 sm:$0xff]   ;;  %v6991_v8 = vld [vmem:[#allocation35 + $0x1e4] ss:$8 sps:$4 sm:$0xff]  }
 0xdc8   : > { %4354 = vmatpush1.bf16.msra.mxu0 %v5955_v41  ;;  %v6044_v41 = vcombine.high %v3571_v54, %v3575_v58 }
 0xdc9   : > { %4355 = vmatprep.subr.bf16.mxu0 %v5964_v11  ;;  %5187 = vmatpush1.bf16.msra.mxu1 %v6908_v12  ;;  %v6938_v11 = vld [vmem:[#allocation35 + $0xd0] ss:$8 sps:$4 sm:$0xff]  }
 0xdca   : > { %5188 = vmatprep.subr.bf16.mxu1 %v6913_v15  ;;  %v3579_v12 = vld [vmem:[#allocation34 + $0x3d8] sm:$0xff]  ;;  %v6043_v15 = vcombine.low %v3571_v54, %v3575_v58 }
 0xdcb   : > { %v6051_v21 = vcombine.low %v3579_v12, %v3583_v13 }
 0xdcc   : > { %4356 = vmatpush1.bf16.msra.mxu0 %v5963_v34  ;;  %v6052_v34 = vcombine.high %v3579_v12, %v3583_v13  ;;  %v6992_v13 = vld [vmem:[#allocation35 + $0x1f0] ss:$8 sps:$4 sm:$0xff]  }
 0xdcd   : > { %4357 = vmatprep.subr.bf16.mxu0 %v5972_v10  ;;  %5189 = vmatpush1.bf16.msra.mxu1 %v6911_v17  ;;  %v6941_v10 = vld [vmem:[#allocation35 + $0xe0] ss:$8 sps:$4 sm:$0xff]   ;;  %v6946_v17 = vld [vmem:[#allocation35 + $0xf4] ss:$8 sps:$4 sm:$0xff]  }
 0xdce   : > { %5190 = vmatprep.subr.bf16.mxu1 %v6916_v43  ;;  %v6949_v43 = vld [vmem:[#allocation35 + $0x104] ss:$8 sps:$4 sm:$0xff]  }
 0xdd0   : > { %4358 = vmatpush1.bf16.msra.mxu0 %v5971_v22 }
 0xdd1   : > { %4359 = vmatprep.subr.bf16.mxu0 %v5980_v19  ;;  %5191 = vmatpush1.bf16.msra.mxu1 %v6914_v23 }
 0xdd2   : > { %5192 = vmatprep.subr.bf16.mxu1 %v6919_v57 }
 0xdd4   : > { %4360 = vmatpush1.bf16.msra.mxu0 %v5979_v25 }
 0xdd5   : > { %4361 = vmatprep.subr.bf16.mxu0 %v5988_v27  ;;  %5193 = vmatpush1.bf16.msra.mxu1 %v6917_v28 }
 0xdd6   : > { %5194 = vmatprep.subr.bf16.mxu1 %v6922_v31 }
 0xdd8   : > { %4362 = vmatpush1.bf16.msra.mxu0 %v5987_v32 }
 0xdd9   : > { %4363 = vmatprep.subr.bf16.mxu0 %v5996_v18  ;;  %5195 = vmatpush1.bf16.msra.mxu1 %v6920_v16  ;;  %v6947_v18 = vld [vmem:[#allocation35 + $0x100] ss:$8 sps:$4 sm:$0xff]  }
 0xdda   : > { %5196 = vmatprep.subr.bf16.mxu1 %v6925_v38  ;;  %v6953_v38 = vld [vmem:[#allocation35 + $0x120] ss:$8 sps:$4 sm:$0xff]  }
 0xddc   : > { %4364 = vmatpush1.bf16.msra.mxu0 %v5995_v3  ;;  %v6958_v3 = vld [vmem:[#allocation35 + $0x134] ss:$8 sps:$4 sm:$0xff]  }
 0xddd   : > { %4365 = vmatprep.subr.bf16.mxu0 %v6004_v40  ;;  %5197 = vmatpush1.bf16.msra.mxu1 %v6923_v2  ;;  %v6956_v40 = vld [vmem:[#allocation35 + $0x130] ss:$8 sps:$4 sm:$0xff]   ;;  %v6961_v2 = vld [vmem:[#allocation35 + $0x144] ss:$8 sps:$4 sm:$0xff]  }
 0xdde   : > { %5198 = vmatprep.subr.bf16.mxu1 %v6928_v45  ;;  %v6962_v45 = vld [vmem:[#allocation35 + $0x150] ss:$8 sps:$4 sm:$0xff]  }
 0xde0   : > { %4366 = vmatpush1.bf16.msra.mxu0 %v6003_v47  ;;  %v6967_v47 = vld [vmem:[#allocation35 + $0x164] ss:$8 sps:$4 sm:$0xff]  }
 0xde1   : > { %4367 = vmatprep.subr.bf16.mxu0 %v6012_v48  ;;  %5199 = vmatpush1.bf16.msra.mxu1 %v6926_v49  ;;  %v6965_v48 = vld [vmem:[#allocation35 + $0x160] ss:$8 sps:$4 sm:$0xff]   ;;  %v6970_v49 = vld [vmem:[#allocation35 + $0x174] ss:$8 sps:$4 sm:$0xff]  }
 0xde2   : > { %5200 = vmatprep.subr.bf16.mxu1 %v6931_v56  ;;  %v6971_v56 = vld [vmem:[#allocation35 + $0x180] ss:$8 sps:$4 sm:$0xff]  }
 0xde4   : > { %4368 = vmatpush1.bf16.msra.mxu0 %v6011_v20  ;;  %v6976_v20 = vld [vmem:[#allocation35 + $0x194] ss:$8 sps:$4 sm:$0xff]  }
 0xde5   : > { %4369 = vmatprep.subr.bf16.mxu0 %v6020_v61  ;;  %5201 = vmatpush1.bf16.msra.mxu1 %v6929_v63  ;;  %v6974_v61 = vld [vmem:[#allocation35 + $0x190] ss:$8 sps:$4 sm:$0xff]   ;;  %v6979_v63 = vld [vmem:[#allocation35 + $0x1a4] ss:$8 sps:$4 sm:$0xff]  }
 0xde6   : > { %5202 = vmatprep.subr.bf16.mxu1 %v6934_v39  ;;  %v6980_v39 = vld [vmem:[#allocation35 + $0x1b0] ss:$8 sps:$4 sm:$0xff]  }
 0xde8   : > { %4370 = vmatpush1.bf16.msra.mxu0 %v6019_v5  ;;  %v6985_v5 = vld [vmem:[#allocation35 + $0x1c4] ss:$8 sps:$4 sm:$0xff]  }
 0xde9   : > { %4371 = vmatprep.subr.bf16.mxu0 %v6028_v6  ;;  %5203 = vmatpush1.bf16.msra.mxu1 %v6932_v7  ;;  %v6983_v6 = vld [vmem:[#allocation35 + $0x1c0] ss:$8 sps:$4 sm:$0xff]   ;;  %v6988_v7 = vld [vmem:[#allocation35 + $0x1d4] ss:$8 sps:$4 sm:$0xff]  }
 0xdea   : > { %5204 = vmatprep.subr.bf16.mxu1 %v6937_v9  ;;  %v6989_v9 = vld [vmem:[#allocation35 + $0x1e0] ss:$8 sps:$4 sm:$0xff]  }
 0xdec   : > { %4372 = vmatpush1.bf16.msra.mxu0 %v6027_v55  ;;  %v6994_v55 = vld [vmem:[#allocation35 + $0x1f4] ss:$8 sps:$4 sm:$0xff]  }
 0xded   : > { %4373 = vmatprep.subr.bf16.mxu0 %v6036_v52  ;;  %5205 = vmatpush1.bf16.msra.mxu1 %v6935_v53 }
 0xdee   : > { %5206 = vmatprep.subr.bf16.mxu1 %v6940_v59 }
 0xdf0   : > { %4374 = vmatpush1.bf16.msra.mxu0 %v6035_v46 }
 0xdf1   : > { %4375 = vmatprep.subr.bf16.mxu0 %v6044_v41  ;;  %5207 = vmatpush1.bf16.msra.mxu1 %v6938_v11 }
 0xdf2   : > { %5208 = vmatprep.subr.bf16.mxu1 %v6943_v14 }
 0xdf4   : > { %4376 = vmatpush1.bf16.msra.mxu0 %v6043_v15 }
 0xdf5   : > { %4377 = vmatprep.subr.bf16.mxu0 %v6052_v34  ;;  %5209 = vmatpush1.bf16.msra.mxu1 %v6941_v10  ;;  %v6997_v10 = vld [vmem:[#allocation35 + $0x204] ss:$8 sps:$4 sm:$0xff]  }
 0xdf6   : > { %5210 = vmatprep.subr.bf16.mxu1 %v6946_v17 }
 0xdf8   : > { %4378 = vmatpush1.bf16.msra.mxu0 %v6051_v21 }
 0xdf9   : > { %5211 = vmatpush1.bf16.msra.mxu1 %v6944_v35 }
 0xdfa   : > { %5221 = vmatprep.subr.bf16.mxu1 %v6949_v43  ;;  %v6995_v43 = vld [vmem:[#allocation35 + $0x200] ss:$8 sps:$4 sm:$0xff]  }
 0xdfb   : > { %4380 = vmatmul.mubr.bf16.vlgmr.msra.gmra.mrb[44].mxu0 %v8618_v51  ;;  %v6950_v51 = vld [vmem:[#allocation35 + $0x110] ss:$8 sps:$4 sm:$0xff]  }
 0xe4e   : > { %v8636_v22 = vpop.f32.mrb[36].mxu0  ;;  %v4258_v19 = vpop.f32.mrb[12].mxu1 }
 0xe4f   : > { %v4388_v23 = vmax.f32 %v4258_v19, 0.0  ;;  %v8638_v24 = vpop.f32.mrb[37].mxu0  ;;  %v4260_v36 = vpop.f32.mrb[13].mxu1 }
 0xe50   : > { %v4389_v57 = vmax.f32 %v4260_v36, 0.0  ;;  %v3453_v25 = vpop.f32.mrb[38].mxu0  ;;  %v4262_v27 = vpop.f32.mrb[14].mxu1 }
 0xe51   : > { %v4396_v28 = vmul.f32 %v4388_v23, %v4388_v23  ;;  %v3454_v29 = vpop.f32.mrb[39].mxu0  ;;  %v4263_v30 = vpop.f32.mrb[15].mxu1  ;;  %v7000_v23 = vld [vmem:[#allocation35 + $0x214] ss:$8 sps:$4 sm:$0xff]   ;;  %v7003_v25 = vld [vmem:[#allocation35 + $0x224] ss:$8 sps:$4 sm:$0xff]  }
 0xe52   : > { %v4397_v31 = vmul.f32 %v4389_v57, %v4389_v57  ;;  %v6998_v57 = vld [vmem:[#allocation35 + $0x210] ss:$8 sps:$4 sm:$0xff]   ;;  %v7001_v27 = vld [vmem:[#allocation35 + $0x220] ss:$8 sps:$4 sm:$0xff]   ;;  %v7009_v30 = vld [vmem:[#allocation35 + $0x244] ss:$8 sps:$4 sm:$0xff]  }
 0xe53   : > { %v4404_v16 = vpack.c.bf16 %v4396_v28, %v4396_v28  ;;  %v7006_v28 = vld [vmem:[#allocation35 + $0x234] ss:$8 sps:$4 sm:$0xff]   ;;  %v7004_v29 = vld [vmem:[#allocation35 + $0x230] ss:$8 sps:$4 sm:$0xff]  }
 0xe54   : > { %v4405_v32 = vpack.c.bf16 %v4397_v31, %v4397_v31  ;;  %v7007_v31 = vld [vmem:[#allocation35 + $0x240] ss:$8 sps:$4 sm:$0xff]  }
 0xe56   : > { %5212 = vmatprep.mubr.bf16.mxu1 %v4405_v32  ;;  %v7012_v32 = vld [vmem:[#allocation35 + $0x254] ss:$8 sps:$4 sm:$0xff]  }
 0xe57   : > { %5213 = vmatmul.mubr.bf16.vlgmr.msra.gmra.mrb[20].mxu1 %v4404_v16  ;;  %v7015_v16 = vld [vmem:[#allocation35 + $0x264] ss:$8 sps:$4 sm:$0xff]  }
 0xe58   : > { %5222 = vmatpush1.bf16.msra.mxu1 %v6947_v18  ;;  %v7010_v18 = vld [vmem:[#allocation35 + $0x250] ss:$8 sps:$4 sm:$0xff]  }
 0xe59   : > { %5223 = vmatprep.subr.bf16.mxu1 %v6952_v33  ;;  %v7013_v33 = vld [vmem:[#allocation35 + $0x260] ss:$8 sps:$4 sm:$0xff]  }
 0xe5c   : > { %5224 = vmatpush1.bf16.msra.mxu1 %v6950_v51  ;;  %v7018_v51 = vld [vmem:[#allocation35 + $0x274] ss:$8 sps:$4 sm:$0xff]  }
 0xe5d   : > { %5225 = vmatprep.subr.bf16.mxu1 %v6955_v37  ;;  %v7016_v37 = vld [vmem:[#allocation35 + $0x270] ss:$8 sps:$4 sm:$0xff]  }
 0xe60   : > { %5226 = vmatpush1.bf16.msra.mxu1 %v6953_v38  ;;  %v7021_v38 = vld [vmem:[#allocation35 + $0x284] ss:$8 sps:$4 sm:$0xff]  }
 0xe61   : > { %5227 = vmatprep.subr.bf16.mxu1 %v6958_v3  ;;  %v7019_v3 = vld [vmem:[#allocation35 + $0x280] ss:$8 sps:$4 sm:$0xff]  }
 0xe64   : > { %5228 = vmatpush1.bf16.msra.mxu1 %v6956_v40  ;;  %v7024_v40 = vld [vmem:[#allocation35 + $0x294] ss:$8 sps:$4 sm:$0xff]  }
 0xe65   : > { %5229 = vmatprep.subr.bf16.mxu1 %v6961_v2  ;;  %v7022_v2 = vld [vmem:[#allocation35 + $0x290] ss:$8 sps:$4 sm:$0xff]  }
 0xe68   : > { %5230 = vmatpush1.bf16.msra.mxu1 %v6959_v42  ;;  %v7027_v42 = vld [vmem:[#allocation35 + $0x2a4] ss:$8 sps:$4 sm:$0xff]  }
 0xe69   : > { %5231 = vmatprep.subr.bf16.mxu1 %v6964_v44  ;;  %v7025_v44 = vld [vmem:[#allocation35 + $0x2a0] ss:$8 sps:$4 sm:$0xff]  }
 0xe6c   : > { %5232 = vmatpush1.bf16.msra.mxu1 %v6962_v45  ;;  %v7030_v45 = vld [vmem:[#allocation35 + $0x2b4] ss:$8 sps:$4 sm:$0xff]  }
 0xe6d   : > { %5233 = vmatprep.subr.bf16.mxu1 %v6967_v47  ;;  %v7028_v47 = vld [vmem:[#allocation35 + $0x2b0] ss:$8 sps:$4 sm:$0xff]  }
 0xe70   : > { %5234 = vmatpush1.bf16.msra.mxu1 %v6965_v48  ;;  %v7033_v48 = vld [vmem:[#allocation35 + $0x2c4] ss:$8 sps:$4 sm:$0xff]  }
 0xe71   : > { %5235 = vmatprep.subr.bf16.mxu1 %v6970_v49  ;;  %v7031_v49 = vld [vmem:[#allocation35 + $0x2c0] ss:$8 sps:$4 sm:$0xff]  }
 0xe74   : > { %5236 = vmatpush1.bf16.msra.mxu1 %v6968_v1  ;;  %v7036_v1 = vld [vmem:[#allocation35 + $0x2d4] ss:$8 sps:$4 sm:$0xff]  }
 0xe75   : > { %5237 = vmatprep.subr.bf16.mxu1 %v6973_v50  ;;  %v7034_v50 = vld [vmem:[#allocation35 + $0x2d0] ss:$8 sps:$4 sm:$0xff]  }
 0xe78   : > { %5238 = vmatpush1.bf16.msra.mxu1 %v6971_v56  ;;  %v7039_v56 = vld [vmem:[#allocation35 + $0x2e4] ss:$8 sps:$4 sm:$0xff]  }
 0xe79   : > { %5239 = vmatprep.subr.bf16.mxu1 %v6976_v20  ;;  %v7037_v20 = vld [vmem:[#allocation35 + $0x2e0] ss:$8 sps:$4 sm:$0xff]  }
 0xe7c   : > { %5240 = vmatpush1.bf16.msra.mxu1 %v6974_v61 }
 0xe7d   : > { %5241 = vmatprep.subr.bf16.mxu1 %v6979_v63  ;;  %v7042_v63 = vld [vmem:[#allocation35 + $0x2f4] ss:$8 sps:$4 sm:$0xff]  }
 0xe80   : > { %5242 = vmatpush1.bf16.msra.mxu1 %v6977_v0 }
 0xe81   : > { %5243 = vmatprep.subr.bf16.mxu1 %v6982_v4 }
 0xe84   : > { %5244 = vmatpush1.bf16.msra.mxu1 %v6980_v39 }
 0xe85   : > { %5245 = vmatprep.subr.bf16.mxu1 %v6985_v5 }
 0xe88   : > { %5246 = vmatpush1.bf16.msra.mxu1 %v6983_v6  ;;  %v7040_v6 = vld [vmem:[#allocation35 + $0x2f0] ss:$8 sps:$4 sm:$0xff]  }
 0xe89   : > { %5247 = vmatprep.subr.bf16.mxu1 %v6988_v7 }
 0xe8c   : > { %5248 = vmatpush1.bf16.msra.mxu1 %v6986_v26 }
 0xe8d   : > { %5249 = vmatprep.subr.bf16.mxu1 %v6991_v8  ;;  %v7045_v8 = vld [vmem:[#allocation35 + $0x304] ss:$8 sps:$4 sm:$0xff]  }
 0xe8e   : > { %v4299_v52 = vpop.f32.mrb[40].mxu0  ;;  %v8640_v53 = vpop.f32.mrb[16].mxu1 }
 0xe8f   : > { %v4390_v54 = vmax.f32 %v4299_v52, 0.0  ;;  %v4301_v58 = vpop.f32.mrb[41].mxu0  ;;  %v4342_v59 = vpop.f32.mrb[17].mxu1  ;;  %v4392_v61 = vmax.f32 %v8640_v53, 0.0 }
 0xe90   : > { %v4391_v46 = vmax.f32 %v4301_v58, 0.0  ;;  %v4393_v41 = vmax.f32 %v4342_v59, 0.0  ;;  %v4303_v11 = vpop.f32.mrb[42].mxu0  ;;  %v4344_v12 = vpop.f32.mrb[18].mxu1  ;;  %5250 = vmatpush1.bf16.msra.mxu1 %v6989_v9  ;;  %v7046_v58 = vld [vmem:[#allocation35 + $0x310] ss:$8 sps:$4 sm:$0xff]  }
 0xe91   : > { %v4398_v14 = vmul.f32 %v4390_v54, %v4390_v54  ;;  %v4304_v15 = vpop.f32.mrb[43].mxu0  ;;  %v4345_v34 = vpop.f32.mrb[19].mxu1  ;;  %5251 = vmatprep.subr.bf16.mxu1 %v6994_v55  ;;  %v4400_v7 = vmul.f32 %v4392_v61, %v4392_v61  ;;  %v7043_v55 = vld [vmem:[#allocation35 + $0x300] ss:$8 sps:$4 sm:$0xff]   ;;  %v7048_v54 = vld [vmem:[#allocation35 + $0x314] ss:$8 sps:$4 sm:$0xff]  }
 0xe92   : > { %v4399_v17 = vmul.f32 %v4391_v46, %v4391_v46  ;;  %v4401_v21 = vmul.f32 %v4393_v41, %v4393_v41  ;;  %v7051_v59 = vld [vmem:[#allocation35 + $0x324] ss:$8 sps:$4 sm:$0xff]   ;;  %v7049_v46 = vld [vmem:[#allocation35 + $0x320] ss:$8 sps:$4 sm:$0xff]   ;;  %v7054_v41 = vld [vmem:[#allocation35 + $0x334] ss:$8 sps:$4 sm:$0xff]  }
 0xe93   : > { %v4406_v19 = vpack.c.bf16 %v4398_v14, %v4398_v14  ;;  %v4408_v52 = vpack.c.bf16 %v4400_v7, %v4400_v7  ;;  %v7052_v11 = vld [vmem:[#allocation35 + $0x330] ss:$8 sps:$4 sm:$0xff]   ;;  %v7057_v12 = vld [vmem:[#allocation35 + $0x344] ss:$8 sps:$4 sm:$0xff]   ;;  %v7060_v14 = vld [vmem:[#allocation35 + $0x354] ss:$8 sps:$4 sm:$0xff]  }
 0xe94   : > { %v4407_v35 = vpack.c.bf16 %v4399_v17, %v4399_v17  ;;  %5252 = vmatpush1.bf16.msra.mxu1 %v6992_v13  ;;  %v4409_v36 = vpack.c.bf16 %v4401_v21, %v4401_v21  ;;  %v7055_v13 = vld [vmem:[#allocation35 + $0x340] ss:$8 sps:$4 sm:$0xff]   ;;  %v7058_v15 = vld [vmem:[#allocation35 + $0x350] ss:$8 sps:$4 sm:$0xff]   ;;  %v7063_v34 = vld [vmem:[#allocation35 + $0x364] ss:$8 sps:$4 sm:$0xff]  }
 0xe95   : > { %5262 = vmatprep.subr.bf16.mxu1 %v6997_v10  ;;  %v7061_v10 = vld [vmem:[#allocation35 + $0x360] ss:$8 sps:$4 sm:$0xff]   ;;  %v7066_v17 = vld [vmem:[#allocation35 + $0x374] ss:$8 sps:$4 sm:$0xff]   ;;  %v7064_v21 = vld [vmem:[#allocation35 + $0x370] ss:$8 sps:$4 sm:$0xff]  }
 0xe96   : > { %5253 = vmatprep.mubr.bf16.mxu1 %v4407_v35  ;;  %v7069_v35 = vld [vmem:[#allocation35 + $0x384] ss:$8 sps:$4 sm:$0xff]  }
 0xe97   : > { %5254 = vmatmul.mubr.bf16.vlgmr.msra.gmra.mrb[20].mxu1 %v4406_v19  ;;  %v7072_v19 = vld [vmem:[#allocation35 + $0x394] ss:$8 sps:$4 sm:$0xff]  }
 0xe98   : > { %5263 = vmatpush1.bf16.msra.mxu1 %v6995_v43  ;;  %5294 = vmatprep.mubr.bf16.mxu1 %v4409_v36  ;;  %v7067_v43 = vld [vmem:[#allocation35 + $0x380] ss:$8 sps:$4 sm:$0xff]   ;;  %v7075_v36 = vld [vmem:[#allocation35 + $0x3a4] ss:$8 sps:$4 sm:$0xff]  }
 0xe99   : > { %5264 = vmatprep.subr.bf16.mxu1 %v7000_v23  ;;  %v7070_v23 = vld [vmem:[#allocation35 + $0x390] ss:$8 sps:$4 sm:$0xff]  }
 0xe9c   : > { %5265 = vmatpush1.bf16.msra.mxu1 %v6998_v57  ;;  %v7073_v57 = vld [vmem:[#allocation35 + $0x3a0] ss:$8 sps:$4 sm:$0xff]  }
 0xe9d   : > { %5266 = vmatprep.subr.bf16.mxu1 %v7003_v25  ;;  %v7078_v25 = vld [vmem:[#allocation35 + $0x3b4] ss:$8 sps:$4 sm:$0xff]  }
 0xea0   : > { %5267 = vmatpush1.bf16.msra.mxu1 %v7001_v27  ;;  %v7076_v27 = vld [vmem:[#allocation35 + $0x3b0] ss:$8 sps:$4 sm:$0xff]  }
 0xea1   : > { %5268 = vmatprep.subr.bf16.mxu1 %v7006_v28  ;;  %v7081_v28 = vld [vmem:[#allocation35 + $0x3c4] ss:$8 sps:$4 sm:$0xff]  }
 0xea4   : > { %5269 = vmatpush1.bf16.msra.mxu1 %v7004_v29  ;;  %v7079_v29 = vld [vmem:[#allocation35 + $0x3c0] ss:$8 sps:$4 sm:$0xff]  }
 0xea5   : > { %5270 = vmatprep.subr.bf16.mxu1 %v7009_v30  ;;  %v7084_v30 = vld [vmem:[#allocation35 + $0x3d4] ss:$8 sps:$4 sm:$0xff]  }
 0xea8   : > { %5271 = vmatpush1.bf16.msra.mxu1 %v7007_v31  ;;  %v7082_v31 = vld [vmem:[#allocation35 + $0x3d0] ss:$8 sps:$4 sm:$0xff]  }
 0xea9   : > { %5272 = vmatprep.subr.bf16.mxu1 %v7012_v32  ;;  %v7087_v32 = vld [vmem:[#allocation35 + $0x3e4] ss:$8 sps:$4 sm:$0xff]  }
 0xeac   : > { %5273 = vmatpush1.bf16.msra.mxu1 %v7010_v18  ;;  %v7085_v18 = vld [vmem:[#allocation35 + $0x3e0] ss:$8 sps:$4 sm:$0xff]  }
 0xead   : > { %5274 = vmatprep.subr.bf16.mxu1 %v7015_v16 }
 0xeb0   : > { %5275 = vmatpush1.bf16.msra.mxu1 %v7013_v33  ;;  %v7090_v33 = vld [vmem:[#allocation35 + $0x3f4] ss:$8 sps:$4 sm:$0xff]  }
 0xeb1   : > { %5276 = vmatprep.subr.bf16.mxu1 %v7018_v51  ;;  %v7088_v51 = vld [vmem:[#allocation35 + $0x3f0] ss:$8 sps:$4 sm:$0xff]  }
 0xeb4   : > { %5277 = vmatpush1.bf16.msra.mxu1 %v7016_v37 }
 0xeb5   : > { %5278 = vmatprep.subr.bf16.mxu1 %v7021_v38 }
 0xeb8   : > { %5279 = vmatpush1.bf16.msra.mxu1 %v7019_v3  ;;  %v5344_v3 = vsub.f32 0.0, %v8636_v22 }
 0xeb9   : > { %5280 = vmatprep.subr.bf16.mxu1 %v7024_v40  ;;  %v5345_v40 = vsub.f32 0.0, %v8638_v24 }
 0xebc   : > { %5281 = vmatpush1.bf16.msra.mxu1 %v7022_v2  ;;  %v5346_v2 = vmul.f32 1.442695, %v5344_v3 }
 0xebd   : > { %5282 = vmatprep.subr.bf16.mxu1 %v7027_v42  ;;  %v5348_v42 = vmul.f32 1.442695, %v5345_v40 }
 0xebe   : > { %7111 = vpow2.f32 %v5346_v2 }
 0xebf   : > { %7113 = vpow2.f32 %v5348_v42 }
 0xec0   : > { %5283 = vmatpush1.bf16.msra.mxu1 %v7025_v44 }
 0xec1   : > { %5284 = vmatprep.subr.bf16.mxu1 %v7030_v45 }
 0xec4   : > { %5285 = vmatpush1.bf16.msra.mxu1 %v7028_v47 }
 0xec5   : > { %5286 = vmatprep.subr.bf16.mxu1 %v7033_v48 }
 0xec8   : > { %5287 = vmatpush1.bf16.msra.mxu1 %v7031_v49  ;;  %v7112_v44 = vpop.eup %7111 }
 0xec9   : > { %5288 = vmatprep.subr.bf16.mxu1 %v7036_v1  ;;  %v7114_v45 = vpop.eup %7113  ;;  %v5350_v47 = vadd.f32 1.0, %v7112_v44 }
 0xeca   : > { %v5351_v48 = vadd.f32 1.0, %v7114_v45 }
 0xecb   : > { %7115 = vrcp.f32 %v5350_v47 }
 0xecc   : > { %5289 = vmatpush1.bf16.msra.mxu1 %v7034_v50  ;;  %7117 = vrcp.f32 %v5351_v48 }
 0xecd   : > { %5290 = vmatprep.subr.bf16.mxu1 %v7039_v56 }
 0xece   : > { %v8643_v0 = vpop.f32.mrb[44].mxu0 }
 0xecf   : > { %v4383_v4 = vpop.f32.mrb[45].mxu0  ;;  %v4394_v16 = vmax.f32 %v8643_v0, 0.0 }
 0xed0   : > { %v4395_v39 = vmax.f32 %v4383_v4, 0.0  ;;  %v4385_v5 = vpop.f32.mrb[46].mxu0  ;;  %5291 = vmatpush1.bf16.msra.mxu1 %v7037_v20 }
 0xed1   : > { %v4386_v26 = vpop.f32.mrb[47].mxu0  ;;  %5292 = vmatprep.subr.bf16.mxu1 %v7042_v63  ;;  %v4402_v37 = vmul.f32 %v4394_v16, %v4394_v16 }
 0xed2   : > { %v4403_v9 = vmul.f32 %v4395_v39, %v4395_v39 }
 0xed3   : > { %v4410_v38 = vpack.c.bf16 %v4402_v37, %v4402_v37 }
 0xed4   : > { %5293 = vmatpush1.bf16.msra.mxu1 %v7040_v6  ;;  %v4411_v53 = vpack.c.bf16 %v4403_v9, %v4403_v9 }
 0xed5   : > { %5303 = vmatprep.subr.bf16.mxu1 %v7045_v8  ;;  %v7116_v49 = vpop.eup %7115 }
 0xed6   : > { %v7118_v50 = vpop.eup %7117 }
 0xed7   : > { %5295 = vmatmul.mubr.bf16.vlgmr.msra.gmra.mrb[20].mxu1 %v4408_v52 }
 0xed8   : > { %5304 = vmatpush1.bf16.msra.mxu1 %v7043_v55  ;;  %5335 = vmatprep.mubr.bf16.mxu1 %v4411_v53 }
 0xed9   : > { %5305 = vmatprep.subr.bf16.mxu1 %v7048_v54 }
 0xedc   : > { %5306 = vmatpush1.bf16.msra.mxu1 %v7046_v58 }
 0xedd   : > { %5307 = vmatprep.subr.bf16.mxu1 %v7051_v59 }
 0xee0   : > { %5308 = vmatpush1.bf16.msra.mxu1 %v7049_v46 }
 0xee1   : > { %5309 = vmatprep.subr.bf16.mxu1 %v7054_v41 }
 0xee4   : > { %5310 = vmatpush1.bf16.msra.mxu1 %v7052_v11 }
 0xee5   : > { %5311 = vmatprep.subr.bf16.mxu1 %v7057_v12 }
 0xee8   : > { %5312 = vmatpush1.bf16.msra.mxu1 %v7055_v13 }
 0xee9   : > { %5313 = vmatprep.subr.bf16.mxu1 %v7060_v14 }
 0xeec   : > { %5314 = vmatpush1.bf16.msra.mxu1 %v7058_v15 }
 0xeed   : > { %5315 = vmatprep.subr.bf16.mxu1 %v7063_v34 }
 0xef0   : > { %5316 = vmatpush1.bf16.msra.mxu1 %v7061_v10 }
 0xef1   : > { %5317 = vmatprep.subr.bf16.mxu1 %v7066_v17 }
 0xef4   : > { %5318 = vmatpush1.bf16.msra.mxu1 %v7064_v21 }
 0xef5   : > { %5319 = vmatprep.subr.bf16.mxu1 %v7069_v35 }
 0xef8   : > { %5320 = vmatpush1.bf16.msra.mxu1 %v7067_v43 }
 0xef9   : > { %5321 = vmatprep.subr.bf16.mxu1 %v7072_v19 }
 0xefc   : > { %5322 = vmatpush1.bf16.msra.mxu1 %v7070_v23 }
 0xefd   : > { %5323 = vmatprep.subr.bf16.mxu1 %v7075_v36 }
 0xf00   : > { %5324 = vmatpush1.bf16.msra.mxu1 %v7073_v57 }
 0xf01   : > { %5325 = vmatprep.subr.bf16.mxu1 %v7078_v25 }
 0xf04   : > { %5326 = vmatpush1.bf16.msra.mxu1 %v7076_v27 }
 0xf05   : > { %5327 = vmatprep.subr.bf16.mxu1 %v7081_v28 }
 0xf08   : > { %5328 = vmatpush1.bf16.msra.mxu1 %v7079_v29 }
 0xf09   : > { %5329 = vmatprep.subr.bf16.mxu1 %v7084_v30 }
 0xf0c   : > { %5330 = vmatpush1.bf16.msra.mxu1 %v7082_v31 }
 0xf0d   : > { %5331 = vmatprep.subr.bf16.mxu1 %v7087_v32 }
 0xf10   : > { %5332 = vmatpush1.bf16.msra.mxu1 %v7085_v18 }
 0xf11   : > { %5333 = vmatprep.subr.bf16.mxu1 %v7090_v33 }
 0xf14   : > { %5334 = vmatpush1.bf16.msra.mxu1 %v7088_v51 }
 0xf17   : > { %5336 = vmatmul.mubr.bf16.vlgmr.msra.gmra.mrb[20].mxu1 %v4410_v38 }
 0xfea   : > { %v5337_v1 = vpop.f32.mrb[20].mxu1 }
 0xfeb   : > { %v5356_v56 = vmul.f32 %v7116_v49, %v5337_v1  ;;  %v5339_v22 = vpop.f32.mrb[21].mxu1 }
 0xfec   : > { %v5357_v24 = vmul.f32 %v7118_v50, %v5339_v22  ;;  %v5341_v20 = vpop.f32.mrb[22].mxu1 }
 0xfed   : > { %v5358_v61 = vadd.f32 %v5356_v56, %v8566_v60  ;;  %v5342_v63 = vpop.f32.mrb[23].mxu1 }
 0xfee   : > { %v5359_v0 = vadd.f32 %v5357_v24, %v8568_v62 }
 0xfef   : > { %5362 = vst [vmem:[%s818_s2] sm:$0xff] %v5358_v61 }
 0xff0   : > { %5363 = vst [vmem:[%s818_s2 + $0x8] sm:$0xff] %v5359_v0 }
 0xff1   : > { %7638 = shalt.err (!%p7635_p1)
}
 0xff2   : > { %s7639_s20 = scalar_lea.hbm %s8656_s3, 256  ;;  %s7643_s25 = scalar_lea.hbm %s8794_s9, 512 }
 0xff3   : > { %p7640_p3 = scmp.ne.s32.totalorder %s8656_s3, %s7639_s20  ;;  %p7644_p0 = scmp.lt.u32.totalorder %s8656_s3, %s8794_s9 }
 0xff4   : > { %p7645_p2 = scmp.lt.u32.totalorder %s7643_s25, %s7639_s20  ;;  %p7647_p10 = scmp.lt.u32.totalorder %s7639_s20, %s8656_s3 }
 0xff5   : > { %p7641_p9 = pnand %p7640_p3, %p8795_p12 }
 0xff6   : > { %p7646_p8 = por %p7645_p2, %p7644_p0 }
 0xff7   : > { %p7642_p6 = pneg %p7641_p9 }
 0xff8   : > { %p7648_p11 = por %p7647_p10, %p7646_p8 }
 0xffa   : > { %p7649_p13 = pnand %p7648_p11, %p7642_p6 }
 0xffc   : > { %7652 = shalt.err (!%p7649_p13)
}
 0xffd   : > { %6344 = dma.vmem_to_hbm [thread:$0]  (%p8795_p12), %s8658_s7, 256, %s8656_s3, %s5365_s19  }
 0xffe PF: > { %s8796_s27 = sld [smem:[#allocation49_spill]]  ;;  %p8797_p5 = scmp.ne.s32.totalorder %s8768_s24, 0 }
 0xfff   : > { %p8798_p7 = scmp.ge.s32.totalorder %s7727_s30, 2 }
0x1001   : > { %p6403_p4 = pnand %p8798_p7, %p8797_p5 }
0x1004   : > { %s5391_s21 = sand.u32 1, %s8796_s27  }
0x1005   : > { %s5392_s29 = scalar_lea.sflag [#allocation10], %s5391_s21 }
0x1006   : > { %7710 = dma.done.wait (!%p6403_p4), %s5392_s29, 256  }
0x1007   : > { %7712 = vsyncadd (!%p6403_p4), %s5392_s29, 4294967040  ;;  %s8799_s27 = sld [smem:[#allocation50_spill]]  ;;  %s8800_s28 = sld [smem:[#allocation51_spill]] }
0x1008   : > { %p40_p1 = scmp.ge.s32.totalorder %s8256_s5, 4   ;;  %s8801_s29 = smov %s8268_s0 }
0x1009   : > { %s8802_s30 = smov %s8256_s5 }
0x100a   :  { %42 = sbr.rel (!%p40_p1) target bundleno = 23 (0x17), region = 212 }
0x1011   :  { %5397 = vsyncpa [#allocation9], 1 }
0x1012   :  { %5399 = vsyncpa [#allocation9 + $0x1], 1 }
0x1013   :  { %5400 = vsyncpa [#allocation12], 1 }
0x1014   :  { %5401 = vsyncpa [#allocation15], 1 }
0x1015   :  { %5402 = vsyncpa [#allocation18], 1 }
0x1016   :  { %5403 = vsyncpa [#allocation21], 1 }
0x1017   :  { %5404 = vsyncpa [#allocation24], 1 }
0x1018   :  { %5405 = vsyncpa [#allocation27], 1 }
0x1019   :  { %5406 = vsyncpa [#allocation30], 1 }
0x101a   :  { %5407 = vsyncpa [#allocation33], 1 }
0x101b   :  { %5408 = vsyncpa [#allocation36], 1 }
0x101c   :  { %5409 = vsyncpa [#allocation10], 1 }
0x101d   :  { %5411 = vsyncpa [#allocation10 + $0x1], 1 }

</bundles_post_ra>
